<compile_context>
chip_gen: v5e
topology: v5e:2x2
jax: 0.10.0
libtpu: 0.0.40
codegen_flags: <defaults>
</compile_context>

<pallas_src>
import numpy as np
import jax
import jax.numpy as jnp
from jax import lax
from jax.experimental import pallas as pl
from jax.experimental.pallas import tpu as pltpu

SAMPLE_RATE = 16000
FRAME_RATE = 200
FRAME_SIZE = SAMPLE_RATE // FRAME_RATE   # 80 samples per frame
HOP_SIZE = FRAME_SIZE // 2               # 40


# ---------------------------------------------------------------------------
# glue helpers: F.interpolate(mode='linear', align_corners=True)
# ---------------------------------------------------------------------------
def _lerp_weights(T_in, n_out, L_out):
    scale = 0.0 if T_in <= 1 else (T_in - 1) / (L_out - 1)
    pos = jnp.arange(n_out, dtype=jnp.float32) * scale
    i0 = jnp.clip(jnp.floor(pos), 0, T_in - 1).astype(jnp.int32)
    i1 = jnp.minimum(i0 + 1, T_in - 1)
    frac = pos - i0.astype(jnp.float32)
    return i0, i1, frac


def _lerp_time(x, n_out, L_out):
    """Gather-based lerp of x[..., T] at the first n_out positions of the L_out-long interp."""
    i0, i1, frac = _lerp_weights(x.shape[-1], n_out, L_out)
    return x[..., i0] * (1.0 - frac) + x[..., i1] * frac


def _banded_lerp(T_in, L, L_pad, L_BLK, WIN):
    """Banded align_corners lerp weights.

    Returns offs[n_blk] (first input frame used by each sample block, numpy) and
    W_band[n_blk, WIN, L_BLK] with  up_blk = stacked[:, offs[j]:offs[j]+WIN] @ W_band[j].
    Columns >= L (sample padding) get zero weight.
    """
    n_blk = L_pad // L_BLK
    scale = 0.0 if T_in <= 1 else (T_in - 1) / (L - 1)
    pos = np.arange(L_pad, dtype=np.float64) * scale
    i0 = np.clip(np.floor(pos), 0, T_in - 1).astype(np.int64)
    i1 = np.minimum(i0 + 1, T_in - 1)
    frac = (pos - i0).astype(np.float32)
    # i0 is monotone, so the block minimum is i0 at the block's first column.
    offs = np.minimum(i0[::L_BLK], max(T_in - WIN, 0)).astype(np.int64)
    jidx = np.arange(L_pad) // L_BLK
    cloc = np.arange(L_pad) % L_BLK
    valid = np.arange(L_pad) < L
    W = np.zeros((n_blk, WIN, L_BLK), np.float32)
    np.add.at(W, (jidx[valid], (i0 - offs[jidx])[valid], cloc[valid]), (1.0 - frac)[valid])
    np.add.at(W, (jidx[valid], (i1 - offs[jidx])[valid], cloc[valid]), frac[valid])
    return offs, jnp.asarray(W)


# ---------------------------------------------------------------------------
# DDSP synthesizer forward (Pallas kernels)
# ---------------------------------------------------------------------------
def ddsp_synthesize(f0, harmonic_dist, filter_coeffs, noise_amp=None, phase_shift=None,
                    noise_key=None):
    B, _, T = f0.shape
    H = harmonic_dist.shape[1]
    NC = filter_coeffs.shape[1]
    F = FRAME_SIZE
    HOP = HOP_SIZE
    L = T * F
    HALF = NC // 2
    # TODO(synk): reference F.conv1d with the even default n_filter_coeffs=512 yields frames of
    # length F+1 and a cross-batch weight; we implement the intended per-batch 'same' FIR,
    # which requires an odd number of filter taps.
    assert NC % 2 == 1, "n_filter_coeffs must be odd for a well-defined 'same' FIR"

    # ======================= kernel 1: harmonic oscillator =======================
    # lane block: largest of {2560, 1280, 640} that still leaves >=2 grid steps
    # (pipelining, and both TensorCores busy on v7x).  Tail is padded and cropped.
    if L >= 2 * 2560:
        L_BLK = 2560
    elif L >= 2 * 1280:
        L_BLK = 1280
    else:
        L_BLK = 640
    L_pad = ((L + L_BLK - 1) // L_BLK) * L_BLK
    n_blk = L_pad // L_BLK
    WIN = L_BLK // F + 8            # frames touched by one block (+ lerp neighbour), 8-aligned
    BP = ((B + 7) // 8) * 8         # batch padded to full sublane tiles -> aligned row groups
    ROWS = (2 + H) * BP
    T_pad = max(T, WIN)

    offs, W_band = _banded_lerp(T, L, L_pad, L_BLK, WIN)     # W_band: [n_blk, WIN, L_BLK]

    def _pad_b(x):                                           # (B, T) -> (BP, T), zero rows
        return jnp.pad(x.astype(jnp.float32), ((0, BP - B), (0, 0)))

    f0_2d = _pad_b(f0[:, 0, :])
    ph_2d = (jnp.zeros((BP, T), jnp.float32) if phase_shift is None
             else _pad_b(phase_shift[:, 0, :]))
    amps = jnp.pad(jnp.transpose(harmonic_dist.astype(jnp.float32), (1, 0, 2)),
                   ((0, 0), (0, BP - B), (0, 0)))            # (H, BP, T)
    # one stacked operand so the whole (banded) upsampling is a single MXU matmul per block.
    # f0/phase kept in f32 on purpose: reduced precision there becomes audible phase error.
    # TODO(synk): the harmonic-amp rows could matmul in bf16 (half the DMA bytes) with f0/phase
    # kept f32 in a second tiny matmul; with the banded W the traffic is already small.
    stacked = jnp.concatenate([f0_2d[None], ph_2d[None], amps], axis=0)   # (2+H, BP, T)
    stacked = stacked.reshape(ROWS, T)
    stacked = jnp.pad(stacked, ((0, 0), (0, T_pad - T)))
    widx = offs[:, None] + np.arange(WIN)[None, :]                        # (n_blk, WIN) numpy
    stacked_win = jnp.transpose(stacked[:, widx], (1, 0, 2))              # (n_blk, ROWS, WIN)

    two_pi_over_sr = float(2.0 * np.pi / SAMPLE_RATE)
    RESEED = 16      # re-anchor the Chebyshev sin recurrence with an exact sin every 16 harmonics

    def osc_kernel(stk_ref, w_ref, out_ref):
        j = pl.program_id(0)
        # banded upsampling of f0 / phase / all harmonic amps: one small-K MXU matmul
        up = jnp.dot(stk_ref[0], w_ref[0], preferred_element_type=jnp.float32)  # (ROWS, L_BLK)
        f0_up = up[0:BP]
        ph_up = up[BP:2 * BP]
        tt = (lax.broadcasted_iota(jnp.int32, (BP, L_BLK), 1)
              + j * L_BLK).astype(jnp.float32)                # absolute sample index
        theta = two_pi_over_sr * f0_up * tt                   # 2*pi*f0*t/sr
        # sin bank via angle-addition recurrence: s_h = sin(h*theta + ph)
        c2 = 2.0 * jnp.cos(theta)
        s_prev = jnp.sin(ph_up)                               # h = 0
        s_cur = jnp.sin(theta + ph_up)                        # h = 1
        acc = s_cur * up[2 * BP:3 * BP]
        for h in range(2, H + 1):
            if h % RESEED == 0:                               # periodic exact re-seed (EUP slot)
                s_prev = jnp.sin((h - 1.0) * theta + ph_up)
                s_cur = jnp.sin(float(h) * theta + ph_up)
            else:
                s_next = c2 * s_cur - s_prev
                s_prev = s_cur
                s_cur = s_next
            acc = acc + s_cur * up[(1 + h) * BP:(2 + h) * BP]
        out_ref[...] = acc

    # TODO(synk): for B < 8 the recurrence still uses B of 8 sublanes; batching >=8 utterances
    # (or a post-matmul lane->sublane retile) would fill the VALU.
    source_full = pl.pallas_call(
        osc_kernel,
        out_shape=jax.ShapeDtypeStruct((BP, L_pad), jnp.float32),
        grid=(n_blk,),
        in_specs=[
            pl.BlockSpec((1, ROWS, WIN), lambda j: (j, 0, 0)),
            pl.BlockSpec((1, WIN, L_BLK), lambda j: (j, 0, 0)),
        ],
        out_specs=pl.BlockSpec((BP, L_BLK), lambda j: (0, j)),
        compiler_params=pltpu.CompilerParams(
            dimension_semantics=("parallel",),
            # per-block working set is ~10 MiB even at H=100 / L_BLK=2560, so 32 MiB is safe on
            # every generation (v7x has only 64 MiB physical VMEM; v5e/v6e could go higher).
            vmem_limit_bytes=32 * 1024 * 1024),
    )(stacked_win, W_band)
    source = source_full[:B, :L]

    if noise_amp is not None:
        # TODO(synk): torch.randn_like RNG stream cannot be reproduced; uses JAX PRNG instead.
        if noise_key is None:
            noise_key = jax.random.PRNGKey(0)
        na_up = _lerp_time(noise_amp[:, 0, :].astype(jnp.float32), L, L)
        source = source + jax.random.normal(noise_key, (B, L), jnp.float32) * na_up

    # ================= kernel 2: time-varying FIR + Hann analysis/synthesis =================
    FPAD = 128                                    # lane-dense output frames (F=80 -> 128 lanes)
    FPB = 32                                      # hops per grid step (sublane axis)
    CW = ((NC - 1 + FPAD + 127) // 128) * 128     # zero-padded conv working width in-kernel
    NGRP = T + 1                                  # hops per 50%-overlap parity group
    NHOPS = 2 * NGRP                              # == len(range(0, L+F, HOP)) of the reference
    NHPP = ((NHOPS + FPB - 1) // FPB) * FPB       # hop axis padded to a block multiple

    n_idx = np.arange(F, dtype=np.float32)
    window_np = (0.5 - 0.5 * np.cos(2.0 * np.pi * n_idx / F)).astype(np.float32)  # periodic Hann
    win3 = jnp.asarray(window_np).reshape(1, 1, F)                        # analysis window
    winp3 = jnp.asarray(np.pad(window_np, (0, FPAD - F))).reshape(1, 1, FPAD)  # synthesis window

    # even / odd hop frames each tile the padded timeline contiguously -> two reshapes,
    # no framing gather and no CL-wide chunk materialisation.  Hops are ordered
    # [all even, all odd] so the OLA epilogue needs no strided gathers.
    src_pad = jnp.pad(source, ((0, 0), (F, F)))                           # (B, L + 2F)
    ev_frames = src_pad[:, :NGRP * F].reshape(B, NGRP, F)                 # hop k=2j  starts j*F
    od_frames = src_pad[:, HOP:HOP + NGRP * F].reshape(B, NGRP, F)        # hop k=2j+1 at j*F+HOP
    frames_src = jnp.concatenate([ev_frames, od_frames], axis=1)          # (B, NHOPS, F)
    frames_src = jnp.pad(frames_src, ((0, 0), (0, NHPP - NHOPS), (0, 0)))

    # taps for hop k are the upsampled coeffs at index k (matches F.conv1d loop: i // hop_size)
    taps_all = _lerp_time(filter_coeffs.astype(jnp.float32), NHOPS, L)    # (B, NC, NHOPS)
    taps_eo = jnp.concatenate([taps_all[:, :, 0::2], taps_all[:, :, 1::2]], axis=2)
    taps = jnp.transpose(taps_eo, (0, 2, 1))                              # (B, NHOPS, NC)
    taps = jnp.pad(taps, ((0, 0), (0, NHPP - NHOPS), (0, 0)))

    def filt_kernel(src_ref, tap_ref, win_ref, winp_ref, out_ref):
        wf = src_ref[...] * win_ref[...]                                  # (1, FPB, F) windowed
        parts = []
        if HALF > 0:
            parts.append(jnp.zeros((1, FPB, HALF), jnp.float32))
        parts.append(wf)
        parts.append(jnp.zeros((1, FPB, CW - HALF - F), jnp.float32))
        chunk = jnp.concatenate(parts, axis=-1)                           # zero-padded FIR input
        tp = tap_ref[...]
        acc = chunk[:, :, 0:FPAD] * tp[:, :, 0:1]
        if NC <= 128:
            for m in range(1, NC):                                        # short tap loop, unrolled
                acc = acc + chunk[:, :, m:m + FPAD] * tp[:, :, m:m + 1]
        else:
            def body(m, a):                                               # large-NC path
                sl = lax.dynamic_slice_in_dim(chunk, m, FPAD, axis=2)
                t1 = lax.dynamic_slice_in_dim(tp, m, 1, axis=2)
                return a + sl * t1
            acc = lax.fori_loop(1, NC, body, acc, unroll=8)
        out_ref[...] = acc * winp_ref[...]        # synthesis window; zeroes the pad lanes >= F

    frames_out = pl.pallas_call(
        filt_kernel,
        out_shape=jax.ShapeDtypeStruct((B, NHPP, FPAD), jnp.float32),
        grid=(B, NHPP // FPB),
        in_specs=[
            pl.BlockSpec((1, FPB, F), lambda b, i: (b, i, 0)),
            pl.BlockSpec((1, FPB, NC), lambda b, i: (b, i, 0)),
            pl.BlockSpec((1, 1, F), lambda b, i: (0, 0, 0)),
            pl.BlockSpec((1, 1, FPAD), lambda b, i: (0, 0, 0)),
        ],
        out_specs=pl.BlockSpec((1, FPB, FPAD), lambda b, i: (b, i, 0)),
        compiler_params=pltpu.CompilerParams(
            dimension_semantics=("parallel", "parallel"),
            vmem_limit_bytes=32 * 1024 * 1024),
    )(frames_src, taps, win3, winp3)

    # 50%-overlap add: each parity group tiles the padded timeline contiguously, so the whole
    # OLA is two dense adds (offsets 0 and HOP) — no per-hop partial stores, no strided gathers.
    ev_o = frames_out[:, 0:NGRP, 0:F].reshape(B, NGRP * F)
    od_o = frames_out[:, NGRP:2 * NGRP, 0:F].reshape(B, NGRP * F)
    out_pad = jnp.pad(ev_o, ((0, 0), (0, F))) + jnp.pad(od_o, ((0, 0), (HOP, F - HOP)))
    return out_pad[:, F:F + L]                                            # crop the F pads


# ---------------------------------------------------------------------------
# pure-JAX reference (same intended semantics) for validation
# ---------------------------------------------------------------------------
def ddsp_reference(f0, harmonic_dist, filter_coeffs):
    B, _, T = f0.shape
    H = harmonic_dist.shape[1]
    NC = filter_coeffs.shape[1]
    F = FRAME_SIZE
    L = T * F
    HOP = HOP_SIZE
    HALF = NC // 2
    NHOPS = len(range(0, L + F, HOP))
    f0u = _lerp_time(f0[:, 0, :], L, L)
    hdu = _lerp_time(harmonic_dist, L, L)
    tt = jnp.arange(L, dtype=jnp.float32)
    base = (2.0 * np.pi / SAMPLE_RATE) * f0u * tt
    src = jnp.zeros((B, L), jnp.float32)
    for h in range(H):
        src = src + jnp.sin(base * (h + 1)) * hdu[:, h, :]
    taps = _lerp_time(filter_coeffs, NHOPS, L)                            # [B, NC, NHOPS]
    window = 0.5 - 0.5 * jnp.cos(2.0 * np.pi * jnp.arange(F, dtype=jnp.float32) / F)
    src_pad = jnp.pad(src, ((0, 0), (F, F)))
    filtered = jnp.zeros_like(src_pad)
    for k in range(NHOPS):
        i = k * HOP
        frame = src_pad[:, i:i + F] * window
        wk = taps[:, :, k]
        fpad = jnp.pad(frame, ((0, 0), (HALF, HALF)))
        out_frame = jnp.zeros((B, F), jnp.float32)
        for m in range(NC):
            out_frame = out_frame + fpad[:, m:m + F] * wk[:, m:m + 1]
        filtered = filtered.at[:, i:i + F].add(out_frame * window)
    return filtered[:, F:F + L]


if __name__ == "__main__":
    key = jax.random.PRNGKey(0)
    k1, k2, k3 = jax.random.split(key, 3)
    B, T, H, NC = 2, 16, 8, 33      # small shapes; NC odd (see assertion above)
    f0 = jax.random.uniform(k1, (B, 1, T), jnp.float32, 80.0, 160.0)
    harmonic_dist = jax.random.uniform(k2, (B, H, T), jnp.float32)
    filter_coeffs = 0.1 * jax.random.normal(k3, (B, NC, T), jnp.float32)

    out = jax.block_until_ready(ddsp_synthesize(f0, harmonic_dist, filter_coeffs))
    assert out.shape == (B, T * FRAME_SIZE)

    ref = jax.block_until_ready(jax.jit(ddsp_reference)(f0, harmonic_dist, filter_coeffs))
    np.testing.assert_allclose(np.asarray(out), np.asarray(ref), rtol=2e-2, atol=2e-2)
    print("KERNEL_OK")
</pallas_src>

<mosaic_0001>
module attributes {stable_mosaic.version = 11 : i64} {
  func.func @osc_kernel(%arg0: i32, %arg1: memref<1x80x16xf32, #tpu.memory_space<vmem>>, %arg2: memref<1x16x640xf32, #tpu.memory_space<vmem>>, %arg3: memref<8x640xf32, #tpu.memory_space<vmem>>) attributes {dimension_semantics = [#tpu.dimension_semantics<parallel>], iteration_bounds = array<i64: 2>, scalar_prefetch = 0 : i64, scratch_operands = 0 : i64, tpu.core_type = #tpu.core_type<tc>, window_params = [{transform_indices = @transform_0, window_bounds = array<i64: 1, 80, 16>}, {transform_indices = @transform_1, window_bounds = array<i64: 1, 16, 640>}, {transform_indices = @transform_2, window_bounds = array<i64: 8, 640>}]} {
    %c0 = arith.constant 0 : index
    %c0_0 = arith.constant 0 : index
    %c0_1 = arith.constant 0 : index
    %0 = vector.load %arg1[%c0, %c0_0, %c0_1] : memref<1x80x16xf32, #tpu.memory_space<vmem>>, vector<1x80x16xf32>
    %1 = vector.shape_cast %0 : vector<1x80x16xf32> to vector<80x16xf32>
    %c0_2 = arith.constant 0 : index
    %c0_3 = arith.constant 0 : index
    %c0_4 = arith.constant 0 : index
    %2 = vector.load %arg2[%c0_2, %c0_3, %c0_4] : memref<1x16x640xf32, #tpu.memory_space<vmem>>, vector<1x16x640xf32>
    %3 = vector.shape_cast %2 : vector<1x16x640xf32> to vector<16x640xf32>
    %cst = arith.constant dense<0.000000e+00> : vector<80x640xf32>
    %4 = tpu.matmul %1, %3, %cst {dimension_numbers = #tpu.dot_dimension_numbers<[1], [0], [0], [1], [0, 0, 1, 1], [], []>} : vector<80x16xf32>, vector<16x640xf32>, vector<80x640xf32> -> vector<80x640xf32>
    %5 = vector.extract_strided_slice %4 {offsets = [0, 0], sizes = [8, 640], strides = [1, 1]} : vector<80x640xf32> to vector<8x640xf32>
    %6 = vector.extract_strided_slice %4 {offsets = [8, 0], sizes = [8, 640], strides = [1, 1]} : vector<80x640xf32> to vector<8x640xf32>
    %7 = tpu.iota {dimensions = array<i32: 1>} : vector<8x640xi32>
    %c640_i32 = arith.constant 640 : i32
    %8 = arith.muli %arg0, %c640_i32 : i32
    %9 = vector.broadcast %8 : i32 to vector<8x640xi32>
    %10 = arith.addi %7, %9 : vector<8x640xi32>
    %11 = arith.sitofp %10 : vector<8x640xi32> to vector<8x640xf32>
    %cst_5 = arith.constant 3.9269909E-4 : f32
    %12 = vector.broadcast %cst_5 : f32 to vector<8x640xf32>
    %13 = arith.mulf %12, %5 : vector<8x640xf32>
    %14 = arith.mulf %13, %11 : vector<8x640xf32>
    %15 = math.cos %14 : vector<8x640xf32>
    %cst_6 = arith.constant 2.000000e+00 : f32
    %16 = vector.broadcast %cst_6 : f32 to vector<8x640xf32>
    %17 = arith.mulf %16, %15 : vector<8x640xf32>
    %18 = math.sin %6 : vector<8x640xf32>
    %19 = arith.addf %14, %6 : vector<8x640xf32>
    %20 = math.sin %19 : vector<8x640xf32>
    %21 = vector.extract_strided_slice %4 {offsets = [16, 0], sizes = [8, 640], strides = [1, 1]} : vector<80x640xf32> to vector<8x640xf32>
    %22 = arith.mulf %20, %21 : vector<8x640xf32>
    %23 = arith.mulf %17, %20 : vector<8x640xf32>
    %24 = arith.subf %23, %18 : vector<8x640xf32>
    %25 = vector.extract_strided_slice %4 {offsets = [24, 0], sizes = [8, 640], strides = [1, 1]} : vector<80x640xf32> to vector<8x640xf32>
    %26 = arith.mulf %24, %25 : vector<8x640xf32>
    %27 = arith.addf %22, %26 : vector<8x640xf32>
    %28 = arith.mulf %17, %24 : vector<8x640xf32>
    %29 = arith.subf %28, %20 : vector<8x640xf32>
    %30 = vector.extract_strided_slice %4 {offsets = [32, 0], sizes = [8, 640], strides = [1, 1]} : vector<80x640xf32> to vector<8x640xf32>
    %31 = arith.mulf %29, %30 : vector<8x640xf32>
    %32 = arith.addf %27, %31 : vector<8x640xf32>
    %33 = arith.mulf %17, %29 : vector<8x640xf32>
    %34 = arith.subf %33, %24 : vector<8x640xf32>
    %35 = vector.extract_strided_slice %4 {offsets = [40, 0], sizes = [8, 640], strides = [1, 1]} : vector<80x640xf32> to vector<8x640xf32>
    %36 = arith.mulf %34, %35 : vector<8x640xf32>
    %37 = arith.addf %32, %36 : vector<8x640xf32>
    %38 = arith.mulf %17, %34 : vector<8x640xf32>
    %39 = arith.subf %38, %29 : vector<8x640xf32>
    %40 = vector.extract_strided_slice %4 {offsets = [48, 0], sizes = [8, 640], strides = [1, 1]} : vector<80x640xf32> to vector<8x640xf32>
    %41 = arith.mulf %39, %40 : vector<8x640xf32>
    %42 = arith.addf %37, %41 : vector<8x640xf32>
    %43 = arith.mulf %17, %39 : vector<8x640xf32>
    %44 = arith.subf %43, %34 : vector<8x640xf32>
    %45 = vector.extract_strided_slice %4 {offsets = [56, 0], sizes = [8, 640], strides = [1, 1]} : vector<80x640xf32> to vector<8x640xf32>
    %46 = arith.mulf %44, %45 : vector<8x640xf32>
    %47 = arith.addf %42, %46 : vector<8x640xf32>
    %48 = arith.mulf %17, %44 : vector<8x640xf32>
    %49 = arith.subf %48, %39 : vector<8x640xf32>
    %50 = vector.extract_strided_slice %4 {offsets = [64, 0], sizes = [8, 640], strides = [1, 1]} : vector<80x640xf32> to vector<8x640xf32>
    %51 = arith.mulf %49, %50 : vector<8x640xf32>
    %52 = arith.addf %47, %51 : vector<8x640xf32>
    %53 = arith.mulf %17, %49 : vector<8x640xf32>
    %54 = arith.subf %53, %44 : vector<8x640xf32>
    %55 = vector.extract_strided_slice %4 {offsets = [72, 0], sizes = [8, 640], strides = [1, 1]} : vector<80x640xf32> to vector<8x640xf32>
    %56 = arith.mulf %54, %55 : vector<8x640xf32>
    %57 = arith.addf %52, %56 : vector<8x640xf32>
    %c0_7 = arith.constant 0 : index
    %c0_8 = arith.constant 0 : index
    %58 = vector.load %arg3[%c0_7, %c0_8] : memref<8x640xf32, #tpu.memory_space<vmem>>, vector<8x640xf32>
    tpu.vector_store %arg3[%c0_7, %c0_8], %57 {strides = array<i32>} : memref<8x640xf32, #tpu.memory_space<vmem>>, vector<8x640xf32>,
    return
  }
  func.func @transform_0(%arg0: i32) -> (i32, i32, i32) {
    %c0_i32 = arith.constant 0 : i32
    %c0_i32_0 = arith.constant 0 : i32
    %c0_i32_1 = arith.constant 0 : i32
    return %arg0, %c0_i32, %c0_i32_0 : i32, i32, i32
  }
  func.func @transform_1(%arg0: i32) -> (i32, i32, i32) {
    %c0_i32 = arith.constant 0 : i32
    %c0_i32_0 = arith.constant 0 : i32
    %c0_i32_1 = arith.constant 0 : i32
    return %arg0, %c0_i32, %c0_i32_0 : i32, i32, i32
  }
  func.func @transform_2(%arg0: i32) -> (i32, i32) {
    %c0_i32 = arith.constant 0 : i32
    %c0_i32_0 = arith.constant 0 : i32
    return %c0_i32, %arg0 : i32, i32
  }
}

</mosaic_0001>

<bundles_post_ra>
// kernel: tpu_custom_call.1
= control target key start
LH: loop header
LB: loop body
LE: loop exit
PB: predicated region body
PF: predicated region fallthrough
CT: control target
= control target key end

     0   :  { %7 = vsyncpa [#allocation3], 0  ;;  %s5910_s0 = inlined_call_operand.vmem [shape: f32[2,80,16], index: 0, kind: input, shape index: {}]   ;;  %s5911_s1 = inlined_call_operand.vmem [shape: f32[2,16,640], index: 1, kind: input, shape index: {}]   ;;  %s5912_s2 = inlined_call_operand.hbm [shape: f32[8,1280], index: 2, kind: output, shape index: {}]  }
   0x1   :  { %9 = vsyncpa [#allocation3 + $0x1], 0  ;;  %s3290_s9 = smov 0   ;;  %s3292_s10 = smov 0  }
   0x2   :  { %s3294_s11 = smov 0   ;;  %s3296_s12 = smov 0  }
   0x3 LB: > { %s3311_s13 = sadd.s32 4294967295, %s3266_s12   ;;  %s3045_s14 = sadd.s32 4294967294, %s3266_s12   ;;  %s3266_s12 = sphi %s3296_s12, %s6089_s12   ;;  %s3262_s11 = sphi %s3294_s11, %s6088_s11   ;;  %s3258_s10 = sphi %s3292_s10, %s6087_s10   ;;  %s3254_s9 = sphi %s3290_s9, %s6086_s9  }
   0x4   : > { %s3315_s15 = sadd.s32 1, %s3266_s12   ;;  %s74_s16 = sadd.s32 1, %s3262_s11 }
   0x5   : > { %s71_s17 = ssub.s32 %s3266_s12, %s3315_s15  ;;  %p84_p0 = scmp.ne.s32.totalorder %s3262_s11, %s3258_s10 }
   0x6   : > { %p72_p1 = scmp.eq.s32.totalorder %s71_s17, 0  ;;  %p85_p2 = scmp.eq.s32.totalorder %s3311_s13, 1 }
   0x7   : > { %p90_p3 = scmp.ne.s32.totalorder %s3258_s10, %s3254_s9  ;;  %p91_p4 = scmp.eq.s32.totalorder %s3045_s14, 1 }
   0x8   : > { %s3326_s18 = scalar_select %p72_p1, %s3262_s11, %s74_s16  }
   0x9   : > { %p3328_p5 = por %p85_p2, %p84_p0  ;;  %p3332_p6 = por %p91_p4, %p90_p3 }
   0xa   : > { %p3048_p7 = scmp.ge.s32.totalorder %s3266_s12, 1  ;;  %p125_p8 = scmp.lt.s32.totalorder %s3266_s12, 3 }
   0xc   : > { %p126_p9 = pnand %p3048_p7, %p125_p8 }
   0xe   : > { %129 = sbr.rel (%p126_p9) target bundleno = 788 (0x314), region = 28 }
  0x13   : > { %p152_p10 = scmp.lt.s32.totalorder %s3311_s13, 1  ;;  %vm183_vm0 = vcmask 130048   ;;  %v449_v20 = vlaneseq  ;;  %s455_s29 = smul.u32 640, %s3311_s13  ;;  %v5928_v54 = vmov 683565275  }
  0x14   : > { %v5925_v56 = vmov 2475754826   ;;  %v5921_v58 = vmov 2131351028   ;;  %v5917_v60 = vmov 2102212464  }
  0x15   : > { %s153_s21 = scalar_select %p152_p10, %s3311_s13, 1  ;;  %v450_v21 = vand.u32 127, %v449_v20  ;;  %v456_v26 = vstv %s455_s29  ;;  %v5915_v62 = vmov 920167782  }
  0x16   : > { %s149_s30 = sand.u32 1, %s3258_s10   ;;  %s3149_s5 = smul.u32 40, %s3311_s13 }
  0x17   : > { %s3157_s22 = smul.u32 80, %s153_s21  ;;  %v451_v22 = vadd.s32 128, %v450_v21  ;;  %v452_v23 = vadd.s32 256, %v450_v21  ;;  %v453_v24 = vadd.s32 384, %v450_v21  ;;  %v454_v25 = vadd.s32 512, %v450_v21  ;;  %s2958_s16 = scalar_lea.sflag [#allocation3], %s149_s30 }
  0x18   : > { %v457_v31 = vadd.s32 %v456_v26, %v450_v21  ;;  %s3156_s3 = smul.u32 40, %s149_s30  ;;  %s2969_s8 = scalar_lea.hbm %s5912_s2, %s3149_s5 }
  0x19   : > { %s161_s25 = scalar_lea.vmem %s5911_s1, %s3157_s22  ;;  %s3346_s28 = scalar_lea.vmem %s5910_s0, %s3157_s22  ;;  %v3420_v27 = vadd.s32 %v456_v26, %v451_v22  ;;  %v3422_v28 = vadd.s32 %v456_v26, %v452_v23  ;;  %v3424_v29 = vadd.s32 %v456_v26, %v453_v24  ;;  %v3426_v30 = vadd.s32 %v456_v26, %v454_v25 }
  0x1a   : > { %v178_v0 = vld [vmem:[%s161_s25 + $0x28] sm:$0xff]  ;;  %v173_v1 = vld [vmem:[%s161_s25] sm:$0xff]  ;;  %v166_v3 = vld [vmem:[%s3346_s28 + $0x18] sm:$0xff]  ;;  %v462_v32 = vcvt.s32.f32 %v457_v31  ;;  %s4044_s4 = scalar_lea.vmem [#allocation2], %s3156_s3  ;;  %s2973_s13 = sshll.u32 %s2969_s8, 4  ;;  %s2974_s13 = int_to_ptr.hbm [resolvable:$true] %s2973_s13 }
  0x1b   : > { %228 = vmatpush.msra.mxu0 %v178_v0  ;;  %3150 = vmatpush.msra.mxu1 %v178_v0  ;;  %v163_v2 = vld [vmem:[%s3346_s28] sm:$0xff]  ;;  %v3351_v4 = vld [vmem:[%s3346_s28 + $0x30] sm:$0xff]  ;;  %v3354_v5 = vld [vmem:[%s3346_s28 + $0x38] sm:$0xff]  ;;  %s2971_s14 = sshll.u32 %s4044_s4, 4  ;;  %s3218_s17 = sshra.s32 %s2974_s13, 4  ;;  %s2972_s14 = int_to_ptr.vmem [resolvable:$true] %s2971_s14  ;;  %s3219_s17 = int_to_ptr.hbm [resolvable:$true] %s3218_s17 }
  0x1c   : > { %3151 = vmatpush.msra.mxu2 %v178_v0  ;;  %3152 = vmatpush.msra.mxu3 %v178_v0  ;;  %v181_v6 = vld [vmem:[%s161_s25 + $0x40] sm:$0xff]  ;;  %v180_v7 = vld [vmem:[%s161_s25 + $0x38] sm:$0xff]  ;;  %v179_v8 = vld [vmem:[%s161_s25 + $0x30] sm:$0xff]  ;;  %s3220_s21 = scalar_lea.hbm %s3219_s17, 40  ;;  %s3224_s24 = scalar_lea.hbm %s5912_s2, 80 }
  0x1d   : > { %229 = vmatpush.msra.mxu0 %v173_v1  ;;  %3153 = vmatpush.msra.mxu1 %v173_v1  ;;  %v182_v9 = vld [vmem:[%s161_s25 + $0x48] sm:$0xff]  ;;  %v175_v10 = vld [vmem:[%s161_s25 + $0x10] sm:$0xff]  ;;  %v176_v11 = vld [vmem:[%s161_s25 + $0x18] sm:$0xff]  ;;  %p3221_p11 = scmp.ne.s32.totalorder %s3219_s17, %s3220_s21  ;;  %p3225_p0 = scmp.lt.s32.totalorder %s3219_s17, %s5912_s2 }
  0x1e   : > { %3154 = vmatpush.msra.mxu2 %v173_v1  ;;  %3155 = vmatpush.msra.mxu3 %v173_v1  ;;  %v174_v12 = vld [vmem:[%s161_s25 + $0x8] sm:$0xff]  ;;  %v177_v13 = vld [vmem:[%s161_s25 + $0x20] sm:$0xff]  ;;  %v165_v17 = vld [vmem:[%s3346_s28 + $0x10] sm:$0xff]  ;;  %p3226_p1 = scmp.lt.s32.totalorder %s3224_s24, %s3220_s21 }
  0x1f   : > { %3051 = vmatmul.msk.f32.vlgmr.msra.gmra.mxu0 %vm183_vm0, %v163_v2  ;;  %3054 = vmatmul.msk.f32.vlgmr.msra.gmra.mxu1 %vm183_vm0, %v166_v3  ;;  %v164_v14 = vld [vmem:[%s3346_s28 + $0x8] sm:$0xff]  ;;  %v167_v15 = vld [vmem:[%s3346_s28 + $0x20] sm:$0xff]  ;;  %p3222_p12 = pnand %p3221_p11, %p3328_p5 }
  0x20   : > { %3057 = vmatmul.msk.f32.vlgmr.msra.gmra.mxu2 %vm183_vm0, %v3351_v4  ;;  %3058 = vmatmul.msk.f32.vlgmr.msra.gmra.mxu3 %vm183_vm0, %v3354_v5  ;;  %v171_v16 = vld [vmem:[%s3346_s28 + $0x40] sm:$0xff]  ;;  %v168_v18 = vld [vmem:[%s3346_s28 + $0x28] sm:$0xff]  ;;  %p3227_p2 = por %p3226_p1, %p3225_p0 }
  0x21   : > { %369 = vmatpush.msrb.mxu3 %v181_v6  ;;  %322 = vmatpush.msrb.mxu2 %v180_v7  ;;  %v172_v19 = vld [vmem:[%s3346_s28 + $0x48] sm:$0xff]  ;;  %v5919_v7 = vmov 1326507024   ;;  %p3223_p13 = pneg %p3222_p12 }
  0x22   : > { %275 = vmatpush.msrb.mxu1 %v179_v8  ;;  %416 = vmatpush.msrb.mxu0 %v182_v9 }
  0x23   : > { %323 = vmatpush.msrb.mxu2 %v175_v10  ;;  %370 = vmatpush.msrb.mxu3 %v176_v11  ;;  %p3228_p3 = pnand %p3227_p2, %p3223_p13 }
  0x24   : > { %276 = vmatpush.msrb.mxu1 %v174_v12  ;;  %417 = vmatpush.msrb.mxu0 %v177_v13 }
  0x27   : > { %3052 = vmatmul.msk.f32.gmra.mxu0 %vm183_vm0, %v164_v14  ;;  %3055 = vmatmul.msk.f32.gmra.mxu1 %vm183_vm0, %v167_v15 }
  0x28   : > { %3059 = vmatmul.msk.f32.gmra.mxu3 %vm183_vm0, %v171_v16  ;;  %3071 = vmatmul.msk.f32.vlgmr.msrb.gmra.mxu2 %vm183_vm0, %v163_v2 }
  0x2f   : > { %3053 = vmatmul.msk.f32.gmra.mxu0 %vm183_vm0, %v165_v17  ;;  %3056 = vmatmul.msk.f32.gmra.mxu1 %vm183_vm0, %v168_v18 }
  0x30   : > { %3060 = vmatmul.msk.f32.gmra.mxu3 %vm183_vm0, %v172_v19  ;;  %3072 = vmatmul.msk.f32.gmra.mxu2 %vm183_vm0, %v164_v14 }
  0x37   : > { %3061 = vmatmul.msk.f32.vlgmr.msrb.gmra.mxu1 %vm183_vm0, %v163_v2  ;;  %3091 = vmatmul.msk.f32.vlgmr.msrb.gmra.mxu0 %vm183_vm0, %v163_v2 }
  0x38   : > { %3081 = vmatmul.msk.f32.vlgmr.msrb.gmra.mxu3 %vm183_vm0, %v163_v2  ;;  %3073 = vmatmul.msk.f32.gmra.mxu2 %vm183_vm0, %v165_v17 }
  0x3f   : > { %3062 = vmatmul.msk.f32.gmra.mxu1 %vm183_vm0, %v164_v14  ;;  %3092 = vmatmul.msk.f32.gmra.mxu0 %vm183_vm0, %v164_v14 }
  0x40   : > { %3082 = vmatmul.msk.f32.gmra.mxu3 %vm183_vm0, %v164_v14  ;;  %3074 = vmatmul.msk.f32.gmra.mxu2 %vm183_vm0, %v166_v3 }
  0x47   : > { %3063 = vmatmul.msk.f32.gmra.mxu1 %vm183_vm0, %v165_v17  ;;  %3093 = vmatmul.msk.f32.gmra.mxu0 %vm183_vm0, %v165_v17 }
  0x48   : > { %3075 = vmatmul.msk.f32.gmra.mxu2 %vm183_vm0, %v167_v15  ;;  %3083 = vmatmul.msk.f32.gmra.mxu3 %vm183_vm0, %v165_v17 }
  0x4f   : > { %3064 = vmatmul.msk.f32.gmra.mxu1 %vm183_vm0, %v166_v3  ;;  %3094 = vmatmul.msk.f32.gmra.mxu0 %vm183_vm0, %v166_v3 }
  0x50   : > { %3076 = vmatmul.msk.f32.gmra.mxu2 %vm183_vm0, %v168_v18  ;;  %3084 = vmatmul.msk.f32.gmra.mxu3 %vm183_vm0, %v166_v3 }
  0x57   : > { %3065 = vmatmul.msk.f32.gmra.mxu1 %vm183_vm0, %v167_v15  ;;  %3095 = vmatmul.msk.f32.gmra.mxu0 %vm183_vm0, %v167_v15 }
  0x58   : > { %3077 = vmatmul.msk.f32.gmra.mxu2 %vm183_vm0, %v3351_v4  ;;  %3085 = vmatmul.msk.f32.gmra.mxu3 %vm183_vm0, %v167_v15 }
  0x5f   : > { %3066 = vmatmul.msk.f32.gmra.mxu1 %vm183_vm0, %v168_v18  ;;  %3096 = vmatmul.msk.f32.gmra.mxu0 %vm183_vm0, %v168_v18 }
  0x60   : > { %3078 = vmatmul.msk.f32.gmra.mxu2 %vm183_vm0, %v3354_v5  ;;  %3086 = vmatmul.msk.f32.gmra.mxu3 %vm183_vm0, %v168_v18 }
  0x67   : > { %3067 = vmatmul.msk.f32.gmra.mxu1 %vm183_vm0, %v3351_v4  ;;  %3097 = vmatmul.msk.f32.gmra.mxu0 %vm183_vm0, %v3351_v4 }
  0x68   : > { %3079 = vmatmul.msk.f32.gmra.mxu2 %vm183_vm0, %v171_v16  ;;  %3087 = vmatmul.msk.f32.gmra.mxu3 %vm183_vm0, %v3351_v4 }
  0x6f   : > { %3068 = vmatmul.msk.f32.gmra.mxu1 %vm183_vm0, %v3354_v5  ;;  %3098 = vmatmul.msk.f32.gmra.mxu0 %vm183_vm0, %v3354_v5 }
  0x70   : > { %3080 = vmatmul.msk.f32.gmra.mxu2 %vm183_vm0, %v172_v19  ;;  %3088 = vmatmul.msk.f32.gmra.mxu3 %vm183_vm0, %v3354_v5 }
  0x77   : > { %3069 = vmatmul.msk.f32.gmra.mxu1 %vm183_vm0, %v171_v16  ;;  %3099 = vmatmul.msk.f32.gmra.mxu0 %vm183_vm0, %v171_v16 }
  0x78   : > { %3089 = vmatmul.msk.f32.gmra.mxu3 %vm183_vm0, %v171_v16 }
  0x7f   : > { %3070 = vmatmul.msk.f32.gmra.mxu1 %vm183_vm0, %v172_v19  ;;  %3100 = vmatmul.msk.f32.gmra.mxu0 %vm183_vm0, %v172_v19 }
  0x80   : > { %3090 = vmatmul.msk.f32.gmra.mxu3 %vm183_vm0, %v172_v19 }
  0x9c   : > { %v231_v33 = vpop.f32.mrf.mxu0 }
  0x9d   : > { %v467_v34 = vmul.f32 0.0003926991, %v231_v33 }
  0x9f   : > { %v3431_v35 = vmul.f32 %v467_v34, %v462_v32 }
  0xa1   : > { %v480_v36 = vand.u32 2139095040, %v3431_v35  ;;  %v477_v37 = vand.u32 2147483647, %v3431_v35 }
  0xa3   : > { %v481_v38 = vshrl.u32 %v480_v36, 23  ;;  %v484_v41 = vand.u32 8388607, %v477_v37 }
  0xa4   : > { %v3435_v39 = vpop.f32.mrf.mxu0 }
  0xa5   : > { %v3101_v40 = vadd.s32 4294967169, %v481_v38  ;;  %v1255_v42 = vand.u32 2139095040, %v3435_v39  ;;  %v485_v45 = vor.u32 8388608, %v484_v41  ;;  %v1252_v47 = vand.u32 2147483647, %v3435_v39 }
  0xa6   : > { %v3443_v50 = vadd.f32 %v3431_v35, %v3435_v39 }
  0xa7   : > { %v487_v43 = vadd.s32 1, %v3101_v40  ;;  %v1256_v44 = vshrl.u32 %v1255_v42, 23  ;;  %v3452_v0 = vshll.u32 %v485_v45, 8  ;;  %v1259_v1 = vand.u32 8388607, %v1252_v47 }
  0xa8   : > { %v2035_v5 = vand.u32 2139095040, %v3443_v50 }
  0xa9   : > { %vm488_vm1 = vcmp.gt.s32.totalorder %v487_v43, 0  ;;  %v3116_v48 = vadd.s32 4294967169, %v1256_v44  ;;  %v526_v17 = vand.u32 65535, %v3452_v0  ;;  %v1260_v18 = vor.u32 8388608, %v1259_v1 }
  0xaa   : > { %v489_v46 = vsel %vm488_vm1, %v487_v43, 0  ;;  %v527_v32 = vshrl.u32 %v3452_v0, 16 }
  0xab   : > { %v491_v49 = vand.u32 31, %v489_v46  ;;  %v3445_v51 = vshrl.u32 %v489_v46, 5  ;;  %v1262_v52 = vadd.s32 1, %v3116_v48  ;;  %v3495_v44 = vshll.u32 %v1260_v18, 8 }
  0xad   : > { %v492_v53 = vsub.s32 32, %v491_v49  ;;  %v494_v55 = vshll.u32 %v5928_v54, %v491_v49  ;;  %v497_v57 = vshll.u32 %v5925_v56, %v491_v49  ;;  %v500_v59 = vshll.u32 %v5921_v58, %v491_v49 }
  0xae   : > { %v503_v61 = vshll.u32 %v5917_v60, %v491_v49  ;;  %v506_v63 = vshll.u32 %v5915_v62, %v491_v49  ;;  %vm509_vm2 = vcmp.lt.s32.totalorder %v3445_v51, 1  ;;  %vm512_vm3 = vcmp.lt.s32.totalorder %v3445_v51, 4 }
  0xaf   : > { %v495_v2 = vshrl.u32 %v5925_v56, %v492_v53  ;;  %v498_v3 = vshrl.u32 %v5921_v58, %v492_v53  ;;  %v501_v4 = vshrl.u32 %v5917_v60, %v492_v53  ;;  %v504_v6 = vshrl.u32 %v5915_v62, %v492_v53 }
  0xb0   : > { %v507_v8 = vshrl.u32 %v5919_v7, %v492_v53  ;;  %vm1263_vm4 = vcmp.gt.s32.totalorder %v1262_v52, 0  ;;  %vm511_vm5 = vcmp.lt.s32.totalorder %v3445_v51, 3  ;;  %v493_v19 = vshrl.u32 %v5928_v54, %v492_v53 }
  0xb1   : > { %v496_v9 = vor.u32 %v495_v2, %v494_v55  ;;  %v499_v10 = vor.u32 %v498_v3, %v497_v57  ;;  %v502_v11 = vor.u32 %v501_v4, %v500_v59  ;;  %v505_v12 = vor.u32 %v504_v6, %v503_v61 }
  0xb2   : > { %v508_v13 = vor.u32 %v507_v8, %v506_v63  ;;  %v1264_v14 = vsel %vm1263_vm4, %v1262_v52, 0  ;;  %vm510_vm6 = vcmp.lt.s32.totalorder %v3445_v51, 2 }
  0xb3   : > { %v517_v15 = vsel %vm509_vm2, %v496_v9, %v499_v10  ;;  %v521_v16 = vsel %vm509_vm2, %v499_v10, %v502_v11  ;;  %v518_v20 = vsel %vm512_vm3, %v505_v12, 920167782  ;;  %v514_v22 = vsel %vm512_vm3, %v502_v11, 2102212464 }
  0xb4   : > { %v522_v21 = vsel %vm512_vm3, %v508_v13, 1326507024  ;;  %v519_v23 = vsel %vm511_vm5, %v502_v11, %v518_v20  ;;  %v1266_v25 = vand.u32 31, %v1264_v14  ;;  %v3487_v33 = vshrl.u32 %v1264_v14, 5 }
  0xb5   : > { %v523_v24 = vsel %vm511_vm5, %v505_v12, %v522_v21  ;;  %v520_v26 = vsel %vm510_vm6, %v517_v15, %v519_v23  ;;  %v513_v41 = vsel %vm509_vm2, %v493_v19, %v496_v9  ;;  %v515_v42 = vsel %vm511_vm5, %v499_v10, %v514_v22 }
  0xb6   : > { %v524_v31 = vsel %vm510_vm6, %v521_v16, %v523_v24  ;;  %v550_v38 = vand.u32 65535, %v520_v26  ;;  %v551_v40 = vshrl.u32 %v520_v26, 16  ;;  %v3493_v43 = vsub.s32 32, %v1266_v25 }
  0xb7   : > { %v528_v34 = vand.u32 65535, %v524_v31  ;;  %v529_v36 = vshrl.u32 %v524_v31, 16  ;;  %v1269_v48 = vshll.u32 %v5928_v54, %v1266_v25  ;;  %v1272_v49 = vshll.u32 %v5925_v56, %v1266_v25 }
  0xb8   : > { %v553_v53 = vmul.u32 %v551_v40, %v526_v17  ;;  %v554_v55 = vmul.u32 %v550_v38, %v527_v32  ;;  %v1275_v57 = vshll.u32 %v5921_v58, %v1266_v25  ;;  %v552_v63 = vmul.u32 %v550_v38, %v526_v17 }
  0xb9   : > { %v531_v45 = vmul.u32 %v529_v36, %v526_v17  ;;  %v532_v46 = vmul.u32 %v528_v34, %v527_v32  ;;  %v530_v52 = vmul.u32 %v528_v34, %v526_v17  ;;  %v533_v59 = vmul.u32 %v529_v36, %v527_v32 }
  0xba   : > { %v555_v1 = vmul.u32 %v551_v40, %v527_v32  ;;  %vm1284_vm7 = vcmp.lt.s32.totalorder %v3487_v33, 1  ;;  %v556_v6 = vshll.u32 %v553_v53, 16  ;;  %v558_v9 = vshll.u32 %v554_v55, 16 }
  0xbb   : > { %v534_v61 = vshll.u32 %v531_v45, 16  ;;  %v535_v2 = vshrl.u32 %v531_v45, 16  ;;  %v536_v3 = vshll.u32 %v532_v46, 16  ;;  %v537_v4 = vshrl.u32 %v532_v46, 16 }
  0xbc   : > { %v1270_v10 = vshrl.u32 %v5925_v56, %v3493_v43  ;;  %v5930_v11 = vmov 0   ;;  %vm560_vm9 = vc.u32 %v552_v63, %v556_v6  ;;  %v562_v13 = vadd.s32 %v556_v6, %v552_v63 }
  0xbd   : > { %vm538_vm8 = vc.u32 %v530_v52, %v534_v61  ;;  %v540_v8 = vadd.s32 %v534_v61, %v530_v52  ;;  %v1273_v14 = vshrl.u32 %v5921_v58, %v3493_v43  ;;  %v557_v16 = vshrl.u32 %v553_v53, 16 }
  0xbe   : > { %v539_v12 = vsel %vm538_vm8, 1, %v5930_v11  ;;  %v561_v17 = vsel %vm560_vm9, 1, %v5930_v11  ;;  %vm564_vm11 = vc.u32 %v562_v13, %v558_v9  ;;  %v1271_v20 = vor.u32 %v1270_v10, %v1269_v48 }
  0xbf   : > { %v541_v15 = vadd.s32 %v539_v12, %v533_v59  ;;  %vm542_vm10 = vc.u32 %v540_v8, %v536_v3  ;;  %v563_v19 = vadd.s32 %v561_v17, %v555_v1  ;;  %v565_v22 = vsel %vm564_vm11, 1, %v5930_v11 }
  0xc0   : > { %v543_v18 = vsel %vm542_vm10, 1, %v5930_v11  ;;  %v3509_v23 = vor.u32 %v1273_v14, %v1272_v49  ;;  %v1276_v24 = vshrl.u32 %v5917_v60, %v3493_v43  ;;  %v1278_v31 = vshll.u32 %v5917_v60, %v1266_v25 }
  0xc1   : > { %v545_v21 = vadd.s32 %v543_v18, %v541_v15  ;;  %v567_v26 = vadd.s32 %v565_v22, %v563_v19  ;;  %v1279_v32 = vshrl.u32 %v5915_v62, %v3493_v43  ;;  %v1281_v34 = vshll.u32 %v5915_v62, %v1266_v25 }
  0xc2   : > { %v559_v38 = vshrl.u32 %v554_v55, 16  ;;  %v1277_v40 = vor.u32 %v1276_v24, %v1275_v57  ;;  %v1282_v45 = vshrl.u32 %v5919_v7, %v3493_v43  ;;  %vm1286_vm12 = vcmp.lt.s32.totalorder %v3487_v33, 3 }
  0xc3   : > { %v546_v36 = vadd.s32 %v545_v21, %v535_v2  ;;  %v568_v46 = vadd.s32 %v567_v26, %v557_v16  ;;  %v1280_v48 = vor.u32 %v1279_v32, %v1278_v31  ;;  %vm1287_vm13 = vcmp.lt.s32.totalorder %v3487_v33, 4 }
  0xc4   : > { %v3523_v52 = vadd.s32 %v562_v13, %v558_v9  ;;  %v1283_v53 = vor.u32 %v1282_v45, %v1281_v34  ;;  %v2036_v25 = vshrl.u32 %v2035_v5, 23  ;;  %v516_v55 = vsel %vm510_vm6, %v513_v41, %v515_v42 }
  0xc5   : > { %v3521_v49 = vadd.s32 %v546_v36, %v537_v4  ;;  %v569_v57 = vadd.s32 %v568_v46, %v559_v38  ;;  %v1292_v59 = vsel %vm1284_vm7, %v1271_v20, %v3509_v23  ;;  %v1293_v61 = vsel %vm1287_vm13, %v1280_v48, 920167782 }
  0xc6   : > { %vm1285_vm15 = vcmp.lt.s32.totalorder %v3487_v33, 2  ;;  %v1294_v63 = vsel %vm1286_vm12, %v1277_v40, %v1293_v61  ;;  %v1301_v5 = vand.u32 65535, %v3495_v44  ;;  %v1296_v42 = vsel %vm1284_vm7, %v3509_v23, %v1277_v40 }
  0xc7   : > { %vm572_vm14 = vc.u32 %v3521_v49, %v3523_v52  ;;  %v573_v51 = vadd.s32 1, %v569_v57  ;;  %v1295_v41 = vsel %vm1285_vm15, %v1292_v59, %v1294_v63  ;;  %v1297_v1 = vsel %vm1287_vm13, %v1283_v53, 1326507024 }
  0xc8   : > { %v570_v2 = vmul.u32 %v3452_v0, %v516_v55  ;;  %v1298_v3 = vsel %vm1286_vm12, %v1280_v48, %v1297_v1  ;;  %v1325_v4 = vand.u32 65535, %v1295_v41  ;;  %v1326_v6 = vshrl.u32 %v1295_v41, 16 }
  0xc9   : > { %v574_v8 = vsel %vm572_vm14, %v573_v51, %v569_v57  ;;  %v1268_v9 = vshrl.u32 %v5928_v54, %v3493_v43  ;;  %v1299_v10 = vsel %vm1285_vm15, %v1296_v42, %v1298_v3  ;;  %v1302_v12 = vshrl.u32 %v3495_v44, 16 }
  0xca   : > { %v575_v13 = vadd.s32 %v574_v8, %v570_v2  ;;  %v1303_v14 = vand.u32 65535, %v1299_v10  ;;  %v1304_v15 = vshrl.u32 %v1299_v10, 16  ;;  %v3131_v16 = vadd.s32 4294967169, %v2036_v25 }
  0xcb   : > { %v1328_v17 = vmul.u32 %v1326_v6, %v1301_v5  ;;  %v1329_v0 = vmul.u32 %v1325_v4, %v1302_v12  ;;  %v1288_v22 = vsel %vm1284_vm7, %v1268_v9, %v1271_v20  ;;  %v1289_v43 = vsel %vm1287_vm13, %v1277_v40, 2102212464 }
  0xcc   : > { %v576_v18 = vadd.s32 536870912, %v575_v13  ;;  %v1306_v19 = vmul.u32 %v1304_v15, %v1301_v5  ;;  %v1307_v21 = vmul.u32 %v1303_v14, %v1302_v12  ;;  %v1327_v24 = vmul.u32 %v1325_v4, %v1301_v5 }
  0xcd   : > { %v1331_v26 = vshll.u32 %v1328_v17, 16  ;;  %v1305_v32 = vmul.u32 %v1303_v14, %v1301_v5  ;;  %v2042_v36 = vadd.s32 1, %v3131_v16  ;;  %v1308_v38 = vmul.u32 %v1304_v15, %v1302_v12 }
  0xce   : > { %v3559_v31 = vshrl.u32 %v576_v18, 30  ;;  %v1309_v34 = vshll.u32 %v1306_v19, 16  ;;  %v1333_v45 = vshll.u32 %v1329_v0, 16  ;;  %v1311_v53 = vshll.u32 %v1307_v21, 16 }
  0xcf   : > { %vm1335_vm0 = vc.u32 %v1327_v24, %v1331_v26  ;;  %v1337_v46 = vadd.s32 %v1331_v26, %v1327_v24  ;;  %v1330_v55 = vmul.u32 %v1326_v6, %v1302_v12  ;;  %vm2043_vm4 = vcmp.gt.s32.totalorder %v2042_v36, 0 }
  0xd0   : > { %v578_v48 = vshll.u32 %v3559_v31, 30  ;;  %vm1313_vm1 = vc.u32 %v1305_v32, %v1309_v34  ;;  %v1315_v25 = vadd.s32 %v1309_v34, %v1305_v32  ;;  %v1336_v40 = vsel %vm1335_vm0, 1, %v5930_v11 }
  0xd1   : > { %v1314_v20 = vsel %vm1313_vm1, 1, %v5930_v11  ;;  %vm1339_vm2 = vc.u32 %v1337_v46, %v1333_v45  ;;  %v1290_v61 = vsel %vm1286_vm12, %v3509_v23, %v1289_v43  ;;  %v1338_v5 = vadd.s32 %v1336_v40, %v1330_v55 }
  0xd2   : > { %v579_v57 = vsub.s32 %v575_v13, %v578_v48  ;;  %v1316_v59 = vadd.s32 %v1314_v20, %v1308_v38  ;;  %vm1317_vm3 = vc.u32 %v1315_v25, %v1311_v53  ;;  %v1340_v51 = vsel %vm1339_vm2, 1, %v5930_v11 }
  0xd3   : > { %v1318_v63 = vsel %vm1317_vm3, 1, %v5930_v11  ;;  %v1310_v1 = vshrl.u32 %v1306_v19, 16  ;;  %v1332_v2 = vshrl.u32 %v1328_v17, 16  ;;  %v1342_v3 = vadd.s32 %v1340_v51, %v1338_v5 }
  0xd4   : > { %vm580_vm5 = vcmp.lt.s32.totalorder %v579_v57, 0  ;;  %v581_v41 = vsub.s32 0, %v579_v57  ;;  %v1320_v42 = vadd.s32 %v1318_v63, %v1316_v59  ;;  %v2044_v4 = vsel %vm2043_vm4, %v2042_v36, 0 }
  0xd5   : > { %v1291_v8 = vsel %vm1285_vm15, %v1288_v22, %v1290_v61  ;;  %v1312_v9 = vshrl.u32 %v1307_v21, 16  ;;  %v1334_v23 = vshrl.u32 %v1329_v0, 16  ;;  %v1343_v13 = vadd.s32 %v1342_v3, %v1332_v2 }
  0xd6   : > { %v582_v6 = vsel %vm580_vm5, %v581_v41, %v579_v57  ;;  %v1321_v12 = vadd.s32 %v1320_v42, %v1310_v1  ;;  %v2046_v14 = vand.u32 31, %v2044_v4  ;;  %v3573_v18 = vadd.s32 %v1337_v46, %v1333_v45 }
  0xd7   : > { %v583_v10 = vclz %v582_v6  ;;  %v1344_v43 = vadd.s32 %v1343_v13, %v1334_v23  ;;  %v571_v17 = vadd.s32 %v3523_v52, %v3521_v49  ;;  %v1345_v19 = vmul.u32 %v3495_v44, %v1291_v8 }
  0xd8   : > { %v3571_v16 = vadd.s32 %v1321_v12, %v1312_v9  ;;  %v3578_v24 = vsub.s32 32, %v2046_v14  ;;  %v2032_v0 = vand.u32 2147483647, %v3443_v50  ;;  %v3583_v22 = vshrl.u32 %v2044_v4, 5 }
  0xd9   : > { %v3102_v15 = vadd.s32 4294967294, %v583_v10  ;;  %v1348_v33 = vadd.s32 1, %v1344_v43  ;;  %v2049_v26 = vshll.u32 %v5928_v54, %v2046_v14  ;;  %v2052_v32 = vshll.u32 %v5925_v56, %v2046_v14 }
  0xda   : > { %vm1347_vm7 = vc.u32 %v3571_v16, %v3573_v18  ;;  %v2050_v44 = vshrl.u32 %v5925_v56, %v3578_v24  ;;  %v2053_v45 = vshrl.u32 %v5921_v58, %v3578_v24  ;;  %v2055_v46 = vshll.u32 %v5921_v58, %v2046_v14 }
  0xdb   : > { %vm3103_vm6 = vcmp.lt.s32.totalorder %v3102_v15, 0  ;;  %v1349_v52 = vsel %vm1347_vm7, %v1348_v33, %v1344_v43  ;;  %v2056_v25 = vshrl.u32 %v5917_v60, %v3578_v24  ;;  %v2058_v20 = vshll.u32 %v5917_v60, %v2046_v14 }
  0xdc   : > { %v586_v21 = vsel %vm3103_vm6, 0, %v3102_v15  ;;  %v1350_v38 = vadd.s32 %v1349_v52, %v1345_v19  ;;  %v2059_v40 = vshrl.u32 %v5915_v62, %v3578_v24  ;;  %v2061_v59 = vshll.u32 %v5915_v62, %v2046_v14 }
  0xdd   : > { %v587_v34 = vsub.s32 32, %v586_v21  ;;  %v591_v49 = vsub.s32 4294967266, %v586_v21  ;;  %v588_v36 = vshll.u32 %v579_v57, %v586_v21  ;;  %v2062_v57 = vshrl.u32 %v5919_v7, %v3578_v24 }
  0xde   : > { %v1351_v55 = vadd.s32 536870912, %v1350_v38  ;;  %v2039_v5 = vand.u32 8388607, %v2032_v0  ;;  %v3604_v41 = vor.u32 %v2053_v45, %v2052_v32  ;;  %v3606_v42 = vor.u32 %v2056_v25, %v2055_v46 }
  0xdf   : > { %v589_v48 = vshrl.u32 %v571_v17, %v587_v34  ;;  %v592_v53 = vadd.s32 127, %v591_v49  ;;  %v2060_v1 = vor.u32 %v2059_v40, %v2058_v20  ;;  %v3608_v3 = vor.u32 %v2050_v44, %v2049_v26 }
  0xe0   : > { %v3602_v51 = vshrl.u32 %v1351_v55, 30  ;;  %v2063_v4 = vor.u32 %v2062_v57, %v2061_v59  ;;  %vm2064_vm8 = vcmp.lt.s32.totalorder %v3583_v22, 1  ;;  %vm2067_vm9 = vcmp.lt.s32.totalorder %v3583_v22, 4 }
  0xe1   : > { %v590_v61 = vor.u32 %v589_v48, %v588_v36  ;;  %v593_v63 = vshll.u32 %v592_v53, 23  ;;  %v2040_v10 = vor.u32 8388608, %v2039_v5  ;;  %v2073_v12 = vsel %vm2067_vm9, %v2060_v1, 920167782 }
  0xe2   : > { %v1353_v6 = vshll.u32 %v3602_v51, 30  ;;  %vm2065_vm10 = vcmp.lt.s32.totalorder %v3583_v22, 2  ;;  %v2076_v13 = vsel %vm2064_vm8, %v3604_v41, %v3606_v42  ;;  %vm2066_vm11 = vcmp.lt.s32.totalorder %v3583_v22, 3 }
  0xe3   : > { %v594_v2 = vor.u32 4788187, %v593_v63  ;;  %v597_v9 = vcvt.s32.f32 %v590_v61  ;;  %v2072_v15 = vsel %vm2064_vm8, %v3608_v3, %v3604_v41  ;;  %v2077_v43 = vsel %vm2067_vm9, %v2063_v4, 1326507024  ;;  %v3662_v61 = vpop.f32.mrf.mxu2 }
  0xe4   : > { %v1354_v23 = vsub.s32 %v1350_v38, %v1353_v6  ;;  %v2074_v19 = vsel %vm2066_vm11, %v3606_v42, %v2073_v12  ;;  %v2078_v33 = vsel %vm2066_vm11, %v2060_v1, %v2077_v43  ;;  %vm479_vm13 = vcmp.lt.s32.totalorder %v3431_v35, 0 }
  0xe5   : > { %v595_v8 = vand.u32 2147483647, %v594_v2  ;;  %v2079_v26 = vsel %vm2065_vm10, %v2076_v13, %v2078_v33  ;;  %v3635_v32 = vshll.u32 %v2040_v10, 8  ;;  %vm3639_vm14 = vcmp.le.f32.partialorder %v477_v37, 0.7853982 }
  0xe6   : > { %vm1355_vm12 = vcmp.lt.s32.totalorder %v1354_v23, 0  ;;  %v1356_v17 = vsub.s32 0, %v1354_v23  ;;  %v2083_v52 = vand.u32 65535, %v2079_v26  ;;  %v2084_v44 = vshrl.u32 %v2079_v26, 16 }
  0xe7   : > { %v598_v14 = vmul.f32 %v597_v9, %v595_v8  ;;  %v2075_v45 = vsel %vm2065_vm10, %v2072_v15, %v2074_v19  ;;  %v2081_v46 = vand.u32 65535, %v3635_v32  ;;  %v2082_v37 = vshrl.u32 %v3635_v32, 16 }
  0xe8   : > { %v1357_v49 = vsel %vm1355_vm12, %v1356_v17, %v1354_v23  ;;  %v2106_v40 = vshrl.u32 %v2075_v45, 16  ;;  %v1346_v5 = vadd.s32 %v3573_v18, %v3571_v16  ;;  %v2105_v4 = vand.u32 65535, %v2075_v45 }
  0xe9   : > { %v599_v21 = vxor.u32 2147483648, %v598_v14  ;;  %v1358_v38 = vclz %v1357_v49  ;;  %v2086_v20 = vmul.u32 %v2084_v44, %v2081_v46  ;;  %v3658_v55 = vmul.u32 %v2083_v52, %v2082_v37 }
  0xea   : > { %v2085_v2 = vmul.u32 %v2083_v52, %v2081_v46  ;;  %v2088_v9 = vmul.u32 %v2084_v44, %v2082_v37  ;;  %v2109_v26 = vmul.u32 %v2105_v4, %v2082_v37  ;;  %v2069_v45 = vsel %vm2067_vm9, %v3606_v42, 2102212464 }
  0xeb   : > { %v600_v36 = vsel %vm479_vm13, %v599_v21, %v598_v14  ;;  %v3117_v25 = vadd.s32 4294967294, %v1358_v38  ;;  %v2089_v63 = vshll.u32 %v2086_v20, 16  ;;  %v2091_v10 = vshll.u32 %v3658_v55, 16 }
  0xec   : > { %v3651_v48 = vsel %vm3639_vm14, %v3431_v35, %v600_v36  ;;  %v2108_v14 = vmul.u32 %v2106_v40, %v2081_v46  ;;  %v464_v38 = vcvt.s32.f32 %v3422_v28  ;;  %vm1254_vm4 = vcmp.lt.s32.totalorder %v3435_v39, 0 }
  0xed   : > { %v3656_v53 = vmul.f32 %v3651_v48, %v3651_v48  ;;  %vm3118_vm15 = vcmp.lt.s32.totalorder %v3117_v25, 0  ;;  %vm2093_vm0 = vc.u32 %v2085_v2, %v2089_v63  ;;  %v2095_v13 = vadd.s32 %v2089_v63, %v2085_v2 }
  0xee   : > { %v1361_v1 = vsel %vm3118_vm15, 0, %v3117_v25  ;;  %v2094_v19 = vsel %vm2093_vm0, 1, %v5930_v11  ;;  %v2111_v36 = vshll.u32 %v2108_v14, 16  ;;  %v2107_v25 = vmul.u32 %v2105_v4, %v2081_v46 }
  0xef   : > { %v606_v59 = vmul.f32 -0.001358992, %v3656_v53  ;;  %v613_v57 = vmul.f32 -0.00019511016, %v3656_v53  ;;  %v1362_v8 = vsub.s32 32, %v1361_v1  ;;  %v1366_v12 = vsub.s32 4294967266, %v1361_v1 }
  0xf0   : > { %v1363_v43 = vshll.u32 %v1354_v23, %v1361_v1  ;;  %v2096_v18 = vadd.s32 %v2094_v19, %v2088_v9  ;;  %vm2097_vm1 = vc.u32 %v2095_v13, %v2091_v10  ;;  %v2048_v23 = vshrl.u32 %v5928_v54, %v3578_v24 }
  0xf1   : > { %v614_v6 = vadd.f32 0.008332121, %v613_v57  ;;  %v607_v15 = vadd.f32 0.041655596, %v606_v59  ;;  %v1364_v17 = vshrl.u32 %v1346_v5, %v1362_v8  ;;  %v1367_v16 = vadd.s32 127, %v1366_v12  ;;  %v325_v8 = vpop.f32.mrf.mxu2 }
  0xf2   : > { %v2098_v21 = vsel %vm2097_vm1, 1, %v5930_v11  ;;  %v2090_v5 = vshrl.u32 %v2086_v20, 16  ;;  %v2110_v1 = vmul.u32 %v2106_v40, %v2082_v37  ;;  %v2113_v2 = vshll.u32 %v2109_v26, 16 }
  0xf3   : > { %v615_v33 = vmul.f32 %v614_v6, %v3656_v53  ;;  %v1365_v49 = vor.u32 %v1364_v17, %v1363_v43  ;;  %v1368_v52 = vshll.u32 %v1367_v16, 23  ;;  %v2100_v44 = vadd.s32 %v2098_v21, %v2096_v18 }
  0xf4   : > { %v608_v59 = vmul.f32 %v607_v15, %v3656_v53  ;;  %vm2115_vm2 = vc.u32 %v2107_v25, %v2111_v36  ;;  %v2117_v6 = vadd.s32 %v2111_v36, %v2107_v25  ;;  %v601_v12 = vsub.s32 4, %v3559_v31 }
  0xf5   : > { %v616_v57 = vadd.f32 -0.16666654, %v615_v33  ;;  %v1369_v63 = vor.u32 4788187, %v1368_v52  ;;  %v1372_v28 = vcvt.s32.f32 %v1365_v49  ;;  %v2101_v10 = vadd.s32 %v2100_v44, %v2090_v5 }
  0xf6   : > { %v2116_v24 = vsel %vm2115_vm2, 1, %v5930_v11  ;;  %v2068_v42 = vsel %vm2064_vm8, %v2048_v23, %v3608_v3  ;;  %vm2119_vm3 = vc.u32 %v2117_v6, %v2113_v2  ;;  %v2092_v37 = vshrl.u32 %v3658_v55, 16 }
  0xf7   : > { %v1370_v9 = vand.u32 2147483647, %v1369_v63  ;;  %v2118_v46 = vadd.s32 %v2116_v24, %v2110_v1  ;;  %v2120_v20 = vsel %vm2119_vm3, 1, %v5930_v11  ;;  %v469_v40 = vmul.f32 0.0003926991, %v325_v8 }
  0xf8   : > { %v609_v13 = vadd.f32 -0.4999988, %v608_v59  ;;  %v2070_v15 = vsel %vm2066_vm11, %v3604_v41, %v2069_v45  ;;  %v2112_v43 = vshrl.u32 %v2108_v14, 16  ;;  %v617_v19 = vmul.f32 %v616_v57, %v3656_v53 }
  0xf9   : > { %v1373_v4 = vmul.f32 %v1372_v28, %v1370_v9  ;;  %v2122_v17 = vadd.s32 %v2120_v20, %v2118_v46  ;;  %v2102_v16 = vadd.s32 %v2101_v10, %v2092_v37  ;;  %v3688_v3 = vmul.f32 %v469_v40, %v464_v38  ;;  %v3724_v28 = vpop.f32.mrf.mxu2 }
  0xfa   : > { %v1376_v18 = vsub.s32 4, %v3602_v51  ;;  %v2114_v21 = vshrl.u32 %v2109_v26, 16  ;;  %v2121_v49 = vadd.s32 %v2117_v6, %v2113_v2  ;;  %v2071_v44 = vsel %vm2065_vm10, %v2068_v42, %v2070_v15  ;;  %5978 = vst [vmem:[#allocation5_spill] sm:$0xff] %v3724_v28 }
  0xfb   : > { %v1374_v33 = vxor.u32 2147483648, %v1373_v4  ;;  %v2123_v55 = vadd.s32 %v2122_v17, %v2112_v43  ;;  %v788_v14 = vand.u32 2139095040, %v3688_v3  ;;  %v602_v36 = vsel %vm479_vm13, %v601_v12, %v3559_v31 }
  0xfc   : > { %v610_v38 = vmul.f32 %v609_v13, %v3656_v53  ;;  %v618_v23 = vadd.f32 1.0, %v617_v19  ;;  %vm2127_vm5 = vc.u32 %v2102_v16, %v2121_v49  ;;  %vm3701_vm6 = vcmp.le.f32.partialorder %v1252_v47, 0.7853982 }
  0xfd   : > { %v1375_v52 = vsel %vm1254_vm4, %v1374_v33, %v1373_v4  ;;  %v2124_v41 = vadd.s32 %v2123_v55, %v2114_v21  ;;  %v1377_v22 = vsel %vm1254_vm4, %v1376_v18, %v3602_v51  ;;  %v789_v25 = vshrl.u32 %v788_v14, 23 }
  0xfe   : > { %v3709_v59 = vsel %vm3701_vm6, %v3435_v39, %v1375_v52  ;;  %v2125_v31 = vmul.u32 %v3635_v32, %v2071_v44  ;;  %v5914_v53 = vand.u32 2147483647, %v3688_v3  ;;  %v604_v57 = vsel %vm3639_vm14, 0, %v602_v36 }
  0xff   : > { %v2128_v45 = vadd.s32 1, %v2124_v41  ;;  %v3107_v63 = vadd.s32 4294967169, %v789_v25  ;;  %v611_v5 = vadd.f32 1.0, %v610_v38  ;;  %v619_v1 = vmul.f32 %v618_v23, %v3651_v48 }
 0x100   : > { %v1379_v51 = vsel %vm3701_vm6, 0, %v1377_v22  ;;  %v3720_v6 = vmul.f32 %v3709_v59, %v3709_v59  ;;  %v621_v32 = vand.u32 3, %v604_v57  ;;  %v792_v34 = vand.u32 8388607, %v5914_v53 }
 0x101   : > { %v2129_v47 = vsel %vm2127_vm5, %v2128_v45, %v2124_v41  ;;  %v795_v8 = vadd.s32 1, %v3107_v63  ;;  %v1396_v10 = vadd.s32 3, %v1379_v51  ;;  %v624_v24 = vxor.u32 2147483648, %v619_v1 }
 0x102   : > { %v2130_v2 = vadd.s32 %v2129_v47, %v2125_v31  ;;  %v627_v48 = vxor.u32 2147483648, %v611_v5  ;;  %v1388_v46 = vmul.f32 -0.00019511016, %v3720_v6  ;;  %v1381_v4 = vmul.f32 -0.001358992, %v3720_v6 }
 0x103   : > { %vm796_vm7 = vcmp.gt.s32.totalorder %v795_v8, 0  ;;  %v1565_v20 = vand.u32 2139095040, %v3724_v28  ;;  %vm622_vm8 = vcmp.lt.s32.totalorder %v621_v32, 2  ;;  %v793_v13 = vor.u32 8388608, %v792_v34 }
 0x104   : > { %v2131_v9 = vadd.s32 536870912, %v2130_v2  ;;  %v797_v42 = vsel %vm796_vm7, %v795_v8, 0  ;;  %vm623_vm9 = vcmp.eq.s32.totalorder %v621_v32, 0  ;;  %vm626_vm10 = vcmp.eq.s32.totalorder %v621_v32, 2 }
 0x105   : > { %v799_v37 = vand.u32 31, %v797_v42  ;;  %v3732_v15 = vand.u32 3, %v1396_v10  ;;  %v628_v17 = vsel %vm626_vm10, %v627_v48, %v619_v1  ;;  %v2126_v19 = vadd.s32 %v2121_v49, %v2102_v16 }
 0x106   : > { %v3726_v12 = vshrl.u32 %v2131_v9, 30  ;;  %v5913_v18 = vand.u32 2147483647, %v3724_v28  ;;  %v625_v21 = vsel %vm623_vm9, %v611_v5, %v624_v24  ;;  %v1389_v55 = vadd.f32 0.008332121, %v1388_v46 }
 0x107   : > { %v3734_v43 = vsub.s32 32, %v799_v37  ;;  %v1382_v52 = vadd.f32 0.041655596, %v1381_v4  ;;  %v1566_v44 = vshrl.u32 %v1565_v20, 23  ;;  %v3737_v14 = vshrl.u32 %v797_v42, 5 }
 0x108   : > { %v2133_v40 = vshll.u32 %v3726_v12, 30  ;;  %v3739_v36 = vshll.u32 %v793_v13, 8  ;;  %v802_v38 = vshll.u32 %v5928_v54, %v799_v37  ;;  %v805_v16 = vshll.u32 %v5925_v56, %v799_v37 }
 0x109   : > { %v803_v23 = vshrl.u32 %v5925_v56, %v3734_v43  ;;  %v806_v49 = vshrl.u32 %v5921_v58, %v3734_v43  ;;  %v808_v22 = vshll.u32 %v5921_v58, %v799_v37  ;;  %v809_v45 = vshrl.u32 %v5917_v60, %v3734_v43 }
 0x10a   : > { %v2134_v33 = vsub.s32 %v2130_v2, %v2133_v40  ;;  %v811_v25 = vshll.u32 %v5917_v60, %v799_v37  ;;  %v629_v31 = vsel %vm622_vm8, %v625_v21, %v628_v17  ;;  %v812_v47 = vshrl.u32 %v5915_v62, %v3734_v43 }
 0x10b   : > { %v3122_v63 = vadd.s32 4294967169, %v1566_v44  ;;  %v1390_v5 = vmul.f32 %v1389_v55, %v3720_v6  ;;  %v1383_v1 = vmul.f32 %v1382_v52, %v3720_v6  ;;  %v814_v51 = vshll.u32 %v5915_v62, %v799_v37 }
 0x10c   : > { %vm2135_vm11 = vcmp.lt.s32.totalorder %v2134_v33, 0  ;;  %v2136_v41 = vsub.s32 0, %v2134_v33  ;;  %v815_v2 = vshrl.u32 %v5919_v7, %v3734_v43  ;;  %v3759_v9 = vor.u32 %v803_v23, %v802_v38 }
 0x10d   : > { %v3761_v34 = vor.u32 %v806_v49, %v805_v16  ;;  %v834_v32 = vand.u32 65535, %v3739_v36  ;;  %vm620_vm12 = vweird.f32 %v3431_v35  ;;  %v3765_v10 = vor.u32 %v809_v45, %v808_v22 }
 0x10e   : > { %v2137_v26 = vsel %vm2135_vm11, %v2136_v41, %v2134_v33  ;;  %v813_v24 = vor.u32 %v812_v47, %v811_v25  ;;  %v816_v48 = vor.u32 %v815_v2, %v814_v51  ;;  %vm817_vm13 = vcmp.lt.s32.totalorder %v3737_v14, 1 }
 0x10f   : > { %v2138_v57 = vclz %v2137_v26  ;;  %vm820_vm15 = vcmp.lt.s32.totalorder %v3737_v14, 4  ;;  %v3770_v42 = vshrl.u32 %v3739_v36, 16  ;;  %v1572_v46 = vadd.s32 1, %v3122_v63 }
 0x110   : > { %v1391_v4 = vadd.f32 -0.16666654, %v1390_v5  ;;  %v1384_v37 = vadd.f32 -0.4999988, %v1383_v1  ;;  %vm819_vm0 = vcmp.lt.s32.totalorder %v3737_v14, 3  ;;  %vm2034_vm1 = vcmp.lt.s32.totalorder %v3443_v50, 0 }
 0x111   : > { %v3132_v8 = vadd.s32 4294967294, %v2138_v57  ;;  %vm818_vm2 = vcmp.lt.s32.totalorder %v3737_v14, 2  ;;  %v825_v17 = vsel %vm817_vm13, %v3759_v9, %v3761_v34  ;;  %v826_v55 = vsel %vm820_vm15, %v813_v24, 920167782 }
 0x112   : > { %v829_v52 = vsel %vm817_vm13, %v3761_v34, %v3765_v10  ;;  %v830_v44 = vsel %vm820_vm15, %v816_v48, 1326507024  ;;  %v827_v23 = vsel %vm819_vm0, %v3765_v10, %v826_v55  ;;  %v1392_v16 = vmul.f32 %v1391_v4, %v3720_v6 }
 0x113   : > { %vm3133_vm14 = vcmp.lt.s32.totalorder %v3132_v8, 0  ;;  %v828_v49 = vsel %vm818_vm2, %v825_v17, %v827_v23  ;;  %vm1573_vm3 = vcmp.gt.s32.totalorder %v1572_v46, 0  ;;  %v1385_v57 = vmul.f32 %v1384_v37, %v3720_v6 }
 0x114   : > { %v2141_v20 = vsel %vm3133_vm14, 0, %v3132_v8  ;;  %v2156_v47 = vsub.s32 4, %v3726_v12  ;;  %v858_v63 = vand.u32 65535, %v828_v49  ;;  %v859_v5 = vshrl.u32 %v828_v49, 16 }
 0x115   : > { %v2142_v40 = vsub.s32 32, %v2141_v20  ;;  %v2146_v13 = vsub.s32 4294967266, %v2141_v20  ;;  %v2143_v21 = vshll.u32 %v2134_v33, %v2141_v20  ;;  %v831_v33 = vsel %vm819_vm0, %v813_v24, %v830_v44 }
 0x116   : > { %v832_v26 = vsel %vm818_vm2, %v829_v52, %v831_v33  ;;  %v630_v1 = vsel %vm620_vm12, nan, %v629_v31  ;;  %v3805_v8 = vand.u32 8388607, %v5913_v18  ;;  %v1393_v24 = vadd.f32 1.0, %v1392_v16 }
 0x117   : > { %v2144_v41 = vshrl.u32 %v2126_v19, %v2142_v40  ;;  %v2147_v38 = vadd.s32 127, %v2146_v13  ;;  %v836_v19 = vand.u32 65535, %v832_v26  ;;  %v837_v25 = vshrl.u32 %v832_v26, 16 }
 0x118   : > { %v3807_v4 = vmul.u32 %v859_v5, %v834_v32  ;;  %v1574_v6 = vsel %vm1573_vm3, %v1572_v46, 0  ;;  %v860_v13 = vmul.u32 %v858_v63, %v834_v32  ;;  %v3811_v35 = vadd.f32 1.0, %v1385_v57 }
 0x119   : > { %v2145_v22 = vor.u32 %v2144_v41, %v2143_v21  ;;  %v2148_v45 = vshll.u32 %v2147_v38, 23  ;;  %v3801_v2 = vmul.u32 %v837_v25, %v834_v32  ;;  %v838_v48 = vmul.u32 %v836_v19, %v834_v32 }
 0x11a   : > { %v2157_v31 = vsel %vm2034_vm1, %v2156_v47, %v3726_v12  ;;  %v3817_v17 = vmul.u32 %v836_v19, %v3770_v42  ;;  %v864_v21 = vshll.u32 %v3807_v4, 16  ;;  %vm1402_vm4 = vcmp.eq.s32.totalorder %v3732_v15, 2 }
 0x11b   : > { %v2149_v51 = vor.u32 4788187, %v2148_v45  ;;  %v2152_v20 = vcvt.s32.f32 %v2145_v22  ;;  %v842_v40 = vshll.u32 %v3801_v2, 16  ;;  %vm3823_vm5 = vcmp.le.f32.partialorder %v2032_v0, 0.7853982 }
 0x11c   : > { %v3828_v55 = vmul.u32 %v858_v63, %v3770_v42  ;;  %v3830_v52 = vmul.f32 2.0, %v630_v1  ;;  %v1570_v12 = vor.u32 8388608, %v3805_v8  ;;  %v1576_v44 = vand.u32 31, %v1574_v6 }
 0x11d   : > { %v2150_v37 = vand.u32 2147483647, %v2149_v51  ;;  %vm846_vm6 = vc.u32 %v838_v48, %v842_v40  ;;  %v1394_v41 = vmul.f32 %v1393_v24, %v3709_v59  ;;  %v2159_v23 = vsel %vm3823_vm5, 0, %v2157_v31 }
 0x11e   : > { %vm868_vm7 = vc.u32 %v860_v13, %v864_v21  ;;  %v1403_v0 = vxor.u32 2147483648, %v3811_v35  ;;  %v841_v33 = vmul.u32 %v837_v25, %v3770_v42  ;;  %v844_v16 = vshll.u32 %v3817_v17, 16 }
 0x11f   : > { %v2153_v32 = vmul.f32 %v2152_v20, %v2150_v37  ;;  %v848_v49 = vadd.s32 %v842_v40, %v838_v48  ;;  %v847_v22 = vsel %vm846_vm6, 1, %v5930_v11  ;;  %v863_v45 = vmul.u32 %v859_v5, %v3770_v42 }
 0x120   : > { %v866_v59 = vshll.u32 %v3828_v55, 16  ;;  %v869_v57 = vsel %vm868_vm7, 1, %v5930_v11  ;;  %v3850_v25 = vadd.s32 %v864_v21, %v860_v13  ;;  %v3852_v47 = vsub.s32 32, %v1576_v44  ;;  %v3870_v21 = vpop.f32.mrf.mxu1 }
 0x121   : > { %v2154_v38 = vxor.u32 2147483648, %v2153_v32  ;;  %v1400_v63 = vxor.u32 2147483648, %v1394_v41  ;;  %v2176_v51 = vadd.s32 3, %v2159_v23  ;;  %v3858_v42 = vshrl.u32 %v5928_v54, %v3734_v43 }
 0x122   : > { %vm1399_vm8 = vcmp.eq.s32.totalorder %v3732_v15, 0  ;;  %v1404_v5 = vsel %vm1402_vm4, %v1403_v0, %v1394_v41  ;;  %v849_v24 = vadd.s32 %v847_v22, %v841_v33  ;;  %vm3863_vm9 = vc.u32 %v848_v49, %v844_v16 }
 0x123   : > { %v2155_v26 = vsel %vm2034_vm1, %v2154_v38, %v2153_v32  ;;  %v3867_v37 = vshrl.u32 %v1574_v6, 5  ;;  %v871_v13 = vadd.s32 %v869_v57, %v863_v45  ;;  %v1579_v31 = vshll.u32 %v5928_v54, %v1576_v44 }
 0x124   : > { %v3847_v19 = vsel %vm3823_vm5, %v3443_v50, %v2155_v26  ;;  %vm3875_vm10 = vc.u32 %v3850_v25, %v866_v59  ;;  %v1582_v46 = vshll.u32 %v5925_v56, %v1576_v44  ;;  %v1583_v6 = vshrl.u32 %v5921_v58, %v3852_v47 }
 0x125   : > { %v2160_v1 = vmul.f32 %v3847_v19, %v3847_v19  ;;  %v1588_v32 = vshll.u32 %v5917_v60, %v1576_v44  ;;  %v1585_v23 = vshll.u32 %v5921_v58, %v1576_v44  ;;  %v1586_v0 = vshrl.u32 %v5917_v60, %v3852_v47 }
 0x126   : > { %v1580_v33 = vshrl.u32 %v5925_v56, %v3852_v47  ;;  %v1589_v16 = vshrl.u32 %v5915_v62, %v3852_v47  ;;  %v1591_v49 = vshll.u32 %v5915_v62, %v1576_v44  ;;  %v1592_v26 = vshrl.u32 %v5919_v7, %v3852_v47 }
 0x127   : > { %v2161_v20 = vmul.f32 -0.001358992, %v2160_v1  ;;  %v2168_v40 = vmul.f32 -0.00019511016, %v2160_v1  ;;  %vm1398_vm11 = vcmp.lt.s32.totalorder %v3732_v15, 2  ;;  %v851_v57 = vsel %vm3863_vm9, 1, %v5930_v11 }
 0x128   : > { %v3900_v18 = vor.u32 %v1583_v6, %v1582_v46  ;;  %v1590_v53 = vor.u32 %v1589_v16, %v1588_v32  ;;  %v1593_v44 = vor.u32 %v1592_v26, %v1591_v49  ;;  %v3902_v7 = vor.u32 %v1586_v0, %v1585_v23 }
 0x129   : > { %v2162_v41 = vadd.f32 0.041655596, %v2161_v20  ;;  %v2169_v38 = vadd.f32 0.008332121, %v2168_v40  ;;  %v873_v20 = vsel %vm3875_vm10, 1, %v5930_v11  ;;  %v2177_v40 = vand.u32 3, %v2176_v51 }
 0x12a   : > { %vm1597_vm12 = vcmp.lt.s32.totalorder %v3867_v37, 4  ;;  %v3905_v58 = vor.u32 %v1580_v33, %v1579_v31  ;;  %vm1594_vm14 = vcmp.lt.s32.totalorder %v3867_v37, 1  ;;  %v1401_v51 = vsel %vm1399_vm8, %v3811_v35, %v1400_v63 }
 0x12b   : > { %v2163_v22 = vmul.f32 %v2162_v41, %v2160_v1  ;;  %v2170_v45 = vmul.f32 %v2169_v38, %v2160_v1  ;;  %v853_v41 = vadd.s32 %v851_v57, %v849_v24  ;;  %v875_v38 = vadd.s32 %v873_v20, %v871_v13 }
 0x12c   : > { %vm1596_vm1 = vcmp.lt.s32.totalorder %v3867_v37, 3  ;;  %vm2175_vm3 = vweird.f32 %v3443_v50  ;;  %v843_v46 = vshrl.u32 %v3801_v2, 16  ;;  %v865_v6 = vshrl.u32 %v3807_v4, 16 }
 0x12d   : > { %v2164_v62 = vadd.f32 -0.4999988, %v2163_v22  ;;  %v2171_v60 = vadd.f32 -0.16666654, %v2170_v45  ;;  %v1603_v24 = vsel %vm1597_vm12, %v1590_v53, 920167782  ;;  %vm1395_vm4 = vweird.f32 %v3435_v39 }
 0x12e   : > { %v1607_v13 = vsel %vm1597_vm12, %v1593_v44, 1326507024  ;;  %vm1595_vm5 = vcmp.lt.s32.totalorder %v3867_v37, 2  ;;  %v854_v2 = vadd.s32 %v853_v41, %v843_v46  ;;  %v876_v4 = vadd.s32 %v875_v38, %v865_v6 }
 0x12f   : > { %v2165_v48 = vmul.f32 %v2164_v62, %v2160_v1  ;;  %v2172_v43 = vmul.f32 %v2171_v60, %v2160_v1  ;;  %v1606_v60 = vsel %vm1594_vm14, %v3900_v18, %v3902_v7  ;;  %v3925_v62 = vpop.f32.mrf.mxu1  ;;  %v1602_v63 = vsel %vm1594_vm14, %v3905_v58, %v3900_v18 }
 0x130   : > { %v1608_v1 = vsel %vm1596_vm1, %v1590_v53, %v1607_v13  ;;  %v1604_v0 = vsel %vm1596_vm1, %v3902_v7, %v1603_v24  ;;  %v3939_v33 = vshll.u32 %v1570_v12, 8  ;;  %v1405_v16 = vsel %vm1398_vm11, %v1401_v51, %v1404_v5 }
 0x131   : > { %v2166_v31 = vadd.f32 1.0, %v2165_v48  ;;  %v2173_v35 = vadd.f32 1.0, %v2172_v43  ;;  %v845_v49 = vshrl.u32 %v3817_v17, 16  ;;  %v867_v26 = vshrl.u32 %v3828_v55, 16 }
 0x132   : > { %v1609_v53 = vsel %vm1595_vm5, %v1606_v60, %v1608_v1  ;;  %vm2178_vm6 = vcmp.lt.s32.totalorder %v2177_v40, 2  ;;  %vm2179_vm7 = vcmp.eq.s32.totalorder %v2177_v40, 0  ;;  %v822_v22 = vsel %vm820_vm15, %v3765_v10, 2102212464 }
 0x133   : > { %v2174_v32 = vmul.f32 %v2173_v35, %v3847_v19  ;;  %v2183_v23 = vxor.u32 2147483648, %v2166_v31  ;;  %vm2182_vm8 = vcmp.eq.s32.totalorder %v2177_v40, 2  ;;  %v3950_v8 = vadd.s32 %v854_v2, %v845_v49 }
 0x134   : > { %v877_v12 = vadd.s32 %v876_v4, %v867_v26  ;;  %v1605_v15 = vsel %vm1595_vm5, %v1602_v63, %v1604_v0  ;;  %v1611_v45 = vand.u32 65535, %v3939_v33  ;;  %v1614_v57 = vshrl.u32 %v1609_v53, 16  ;;  %v252_v63 = vpop.f32.mrf.mxu3 }
 0x135   : > { %v2180_v19 = vxor.u32 2147483648, %v2174_v32  ;;  %v2184_v5 = vsel %vm2182_vm8, %v2183_v23, %v2174_v32  ;;  %v821_v44 = vsel %vm817_vm13, %v3858_v42, %v3759_v9  ;;  %v823_v10 = vsel %vm819_vm0, %v3761_v34, %v822_v22 }
 0x136   : > { %v3965_v40 = vadd.s32 %v3850_v25, %v866_v59  ;;  %v1612_v38 = vshrl.u32 %v3939_v33, 16  ;;  %v1635_v51 = vand.u32 65535, %v1605_v15  ;;  %v1636_v48 = vshrl.u32 %v1605_v15, 16 }
 0x137   : > { %v2181_v17 = vsel %vm2179_vm7, %v2166_v31, %v2180_v19  ;;  %v1406_v43 = vsel %vm1395_vm4, nan, %v1405_v16  ;;  %v881_v42 = vadd.s32 1, %v877_v12  ;;  %v824_v34 = vsel %vm818_vm2, %v821_v44, %v823_v10  ;;  %v246_v25 = vpop.f32.mrf.mxu1 }
 0x138   : > { %v2185_v20 = vsel %vm2178_vm6, %v2181_v17, %v2184_v5  ;;  %vm880_vm13 = vc.u32 %v3950_v8, %v3965_v40  ;;  %v1613_v55 = vand.u32 65535, %v1609_v53  ;;  %v3977_v59 = vmul.u32 %v1614_v57, %v1611_v45 }
 0x139   : > { %v2186_v41 = vsel %vm2175_vm3, nan, %v2185_v20  ;;  %v1637_v46 = vmul.u32 %v1635_v51, %v1611_v45  ;;  %v1638_v6 = vmul.u32 %v1636_v48, %v1611_v45  ;;  %v3979_v24 = vmul.u32 %v1635_v51, %v1612_v38 }
 0x13a   : > { %v2812_v9 = vmul.f32 %v2186_v41, %v3830_v52  ;;  %v878_v13 = vmul.u32 %v3739_v36, %v824_v34  ;;  %v882_v31 = vsel %vm880_vm13, %v881_v42, %v877_v12  ;;  %v1615_v35 = vmul.u32 %v1613_v55, %v1611_v45 }
 0x13b   : > { %v3983_v14 = vmul.u32 %v1613_v55, %v1612_v38  ;;  %v1619_v60 = vshll.u32 %v3977_v59, 16  ;;  %v1641_v2 = vshll.u32 %v1638_v6, 16  ;;  %v1643_v32 = vshll.u32 %v3979_v24, 16 }
 0x13c   : > { %v2817_v50 = vsub.f32 %v2812_v9, %v1406_v43  ;;  %v883_v1 = vadd.s32 %v882_v31, %v878_v13  ;;  %v1640_v49 = vmul.u32 %v1636_v48, %v1612_v38  ;;  %v1618_v22 = vmul.u32 %v1614_v57, %v1612_v38  ;;  %v237_v57 = vpop.f32.mrf.mxu0 }
 0x13d   : > { %vm1645_vm15 = vc.u32 %v1637_v46, %v1641_v2  ;;  %v3987_v23 = vadd.s32 %v1641_v2, %v1637_v46  ;;  %v1621_v16 = vshll.u32 %v3983_v14, 16  ;;  %vm1623_vm0 = vc.u32 %v1615_v35, %v1619_v60 }
 0x13e   : > { %v2832_v39 = vmul.f32 %v2817_v50, %v3830_v52  ;;  %v1625_v36 = vadd.s32 %v1619_v60, %v1615_v35  ;;  %v1646_v53 = vsel %vm1645_vm15, 1, %v5930_v11  ;;  %v884_v19 = vadd.s32 536870912, %v883_v1 }
 0x13f   : > { %vm1649_vm2 = vc.u32 %v3987_v23, %v1643_v32  ;;  %v1624_v15 = vsel %vm1623_vm0, 1, %v5930_v11  ;;  %v278_v17 = vpop.f32.mrf.mxu1  ;;  %v463_v5 = vcvt.s32.f32 %v3420_v27  ;;  %v1648_v45 = vadd.s32 %v1646_v53, %v1640_v49  ;;  %v255_v27 = vpop.f32.mrf.mxu3 }
 0x140   : > { %v2837_v4 = vsub.f32 %v2832_v39, %v2186_v41  ;;  %vm1627_vm9 = vc.u32 %v1625_v36, %v1621_v16  ;;  %v2822_v44 = vmul.f32 %v2817_v50, %v3870_v21  ;;  %v1650_v10 = vsel %vm1649_vm2, 1, %v5930_v11 }
 0x141   : > { %v4000_v51 = vshrl.u32 %v884_v19, 30  ;;  %v1626_v38 = vadd.s32 %v1624_v15, %v1618_v22  ;;  %v468_v48 = vmul.f32 0.0003926991, %v278_v17  ;;  %v2807_v42 = vmul.f32 %v2186_v41, %v237_v57 }
 0x142   : > { %v2852_v0 = vmul.f32 %v2837_v4, %v3830_v52  ;;  %v2842_v43 = vmul.f32 %v2837_v4, %v3925_v62  ;;  %v1628_v34 = vsel %vm1627_vm9, 1, %v5930_v11  ;;  %v1652_v55 = vadd.s32 %v1650_v10, %v1648_v45 }
 0x143   : > { %v4005_v46 = vmul.f32 %v468_v48, %v463_v5  ;;  %v886_v13 = vshll.u32 %v4000_v51, 30  ;;  %v1630_v31 = vadd.s32 %v1628_v34, %v1626_v38  ;;  %v1642_v35 = vshrl.u32 %v1638_v6, 16 }
 0x144   : > { %v2857_v26 = vsub.f32 %v2852_v0, %v2817_v50  ;;  %v2827_v50 = vadd.f32 %v2822_v44, %v2807_v42  ;;  %v5985_v37 = vmov 2131351028  }
 0x145   : > { %v634_v2 = vand.u32 2139095040, %v4005_v46  ;;  %v1653_v0 = vadd.s32 %v1652_v55, %v1642_v35 }
 0x146   : > { %v2872_v12 = vmul.f32 %v2857_v26, %v3830_v52  ;;  %v2862_v39 = vmul.f32 %v2857_v26, %v246_v25  ;;  %v2847_v62 = vadd.f32 %v2842_v43, %v2827_v50  ;;  %v631_v43 = vand.u32 2147483647, %v4005_v46 }
 0x147   : > { %v635_v25 = vshrl.u32 %v634_v2, 23 }
 0x148   : > { %v2877_v20 = vsub.f32 %v2872_v12, %v2837_v4  ;;  %v1620_v4 = vshrl.u32 %v3977_v59, 16  ;;  %v2867_v36 = vadd.f32 %v2862_v39, %v2847_v62  ;;  %v1644_v12 = vshrl.u32 %v3979_v24, 16 }
 0x149   : > { %v1622_v59 = vshrl.u32 %v3983_v14, 16  ;;  %v3104_v15 = vadd.s32 4294967169, %v635_v25  ;;  %v638_v34 = vand.u32 8388607, %v631_v43  ;;  %v5988_v25 = vmov 1326507024  }
 0x14a   : > { %v2892_v9 = vmul.f32 %v2877_v20, %v3830_v52  ;;  %v2882_v41 = vmul.f32 %v2877_v20, %v3662_v61  ;;  %v1631_v53 = vadd.s32 %v1630_v31, %v1620_v4  ;;  %v1578_v61 = vshrl.u32 %v5928_v54, %v3852_v47 }
 0x14b   : > { %v1654_v5 = vadd.s32 %v1653_v0, %v1644_v12  ;;  %v641_v44 = vadd.s32 1, %v3104_v15  ;;  %v5986_v31 = vmov 2102212464   ;;  %v639_v0 = vor.u32 8388608, %v638_v34 }
 0x14c   : > { %v2897_v21 = vsub.f32 %v2892_v9, %v2857_v26  ;;  %v4013_v26 = vsub.s32 %v883_v1, %v886_v13  ;;  %v2887_v19 = vadd.f32 %v2882_v41, %v2867_v36  ;;  %v1599_v1 = vsel %vm1597_vm12, %v3902_v7, 2102212464 }
 0x14d   : > { %v1598_v14 = vsel %vm1594_vm14, %v1578_v61, %v3905_v58  ;;  %v1600_v57 = vsel %vm1596_vm1, %v3900_v18, %v1599_v1  ;;  %v4038_v7 = vadd.s32 %v3987_v23, %v1643_v32  ;;  %vm642_vm11 = vcmp.gt.s32.totalorder %v641_v44, 0 }
 0x14e   : > { %v2912_v60 = vmul.f32 %v2897_v21, %v3830_v52  ;;  %v2902_v49 = vmul.f32 %v2897_v21, %v252_v63  ;;  %v889_v45 = vsub.s32 0, %v4013_v26  ;;  %vm888_vm10 = vcmp.lt.s32.totalorder %v4013_v26, 0 }
 0x14f   : > { %v1658_v48 = vadd.s32 1, %v1654_v5  ;;  %v643_v9 = vsel %vm642_vm11, %v641_v44, 0  ;;  %v1601_v18 = vsel %vm1595_vm5, %v1598_v14, %v1600_v57  ;;  %v4078_v12 = vshll.u32 %v639_v0, 8 }
 0x150   : > { %v2917_v16 = vsub.f32 %v2912_v60, %v2877_v20  ;;  %v2907_v17 = vadd.f32 %v2902_v49, %v2887_v19  ;;  %v4026_v20 = vadd.s32 %v1631_v53, %v1622_v59  ;;  %v890_v42 = vsel %vm888_vm10, %v889_v45, %v4013_v26 }
 0x151   : > { %v645_v58 = vand.u32 31, %v643_v9  ;;  %v891_v32 = vclz %v890_v42  ;;  %v4054_v55 = vshrl.u32 %v643_v9, 5  ;;  %v5987_v60 = vmov 920167782  }
 0x152   : > { %v2922_v6 = vmul.f32 %v2917_v16, %v255_v27  ;;  %v2932_v22 = vmul.f32 %v2917_v16, %v3830_v52  ;;  %v258_v52 = vpop.f32.mrf.mxu3  ;;  %vm1657_vm12 = vc.u32 %v4026_v20, %v4038_v7  ;;  %v1655_v27 = vmul.u32 %v3939_v33, %v1601_v18 }
 0x153   : > { %v4049_v24 = vsub.s32 32, %v645_v58  ;;  %v1659_v23 = vsel %vm1657_vm12, %v1658_v48, %v1654_v5  ;;  %v651_v50 = vshll.u32 %v5925_v56, %v645_v58  ;;  %v657_v35 = vshll.u32 %v5986_v31, %v645_v58  ;;  %v419_v5 = vpop.f32.mrf.mxu0 }
 0x154   : > { %v2937_v63 = vsub.f32 %v2932_v22, %v2897_v21  ;;  %v2927_v10 = vadd.f32 %v2922_v6, %v2907_v17  ;;  %v648_v21 = vshll.u32 %v5928_v54, %v645_v58  ;;  %v1660_v41 = vadd.s32 %v1659_v23, %v1655_v27 }
 0x155   : > { %v649_v39 = vshrl.u32 %v5925_v56, %v4049_v24  ;;  %v652_v13 = vshrl.u32 %v5985_v37, %v4049_v24  ;;  %v658_v62 = vshrl.u32 %v5987_v60, %v4049_v24  ;;  %v654_v33 = vshll.u32 %v5985_v37, %v645_v58 }
 0x156   : > { %v2942_v47 = vmul.f32 %v2937_v63, %v258_v52  ;;  %v655_v2 = vshrl.u32 %v5986_v31, %v4049_v24  ;;  %v3108_v4 = vadd.s32 4294967294, %v891_v32  ;;  %v660_v49 = vshll.u32 %v5987_v60, %v645_v58 }
 0x157   : > { %v4068_v16 = vor.u32 %v649_v39, %v648_v21  ;;  %v4070_v36 = vor.u32 %v652_v13, %v651_v50  ;;  %v661_v53 = vshrl.u32 %v5988_v25, %v4049_v24  ;;  %v659_v6 = vor.u32 %v658_v62, %v657_v35 }
 0x158   : > { %v2947_v38 = vadd.f32 %v2942_v47, %v2927_v10  ;;  %vm663_vm14 = vcmp.lt.s32.totalorder %v4054_v55, 1  ;;  %v1661_v19 = vadd.s32 536870912, %v1660_v41  ;;  %v656_v22 = vor.u32 %v655_v2, %v654_v33 }
 0x159   : > { %vm3109_vm1 = vcmp.lt.s32.totalorder %v3108_v4, 0  ;;  %vm665_vm3 = vcmp.lt.s32.totalorder %v4054_v55, 3  ;;  %vm666_vm4 = vcmp.lt.s32.totalorder %v4054_v55, 4  ;;  %v662_v61 = vor.u32 %v661_v53, %v660_v49 }
 0x15a   : > { %2952 = vst [vmem:[%s4044_s4] sm:$0xff] %v2947_v38  ;;  %v671_v59 = vsel %vm663_vm14, %v4068_v16, %v4070_v36  ;;  %v672_v15 = vsel %vm666_vm4, %v659_v6, 920167782  ;;  %v4086_v17 = vsel %vm3109_vm1, 0, %v3108_v4  ;;  %v4088_v63 = vshrl.u32 %v1661_v19, 30 }
 0x15b   : > { %vm664_vm5 = vcmp.lt.s32.totalorder %v4054_v55, 2  ;;  %v673_v1 = vsel %vm665_vm3, %v656_v22, %v672_v15  ;;  %v675_v52 = vsel %vm663_vm14, %v4070_v36, %v656_v22  ;;  %v680_v44 = vand.u32 65535, %v4078_v12 }
 0x15c   : > { %v674_v45 = vsel %vm664_vm5, %v671_v59, %v673_v1  ;;  %v676_v10 = vsel %vm666_vm4, %v662_v61, 1326507024  ;;  %v681_v47 = vshrl.u32 %v4078_v12, 16  ;;  %v466_v38 = vcvt.s32.f32 %v3426_v30 }
 0x15d   : > { %v704_v14 = vand.u32 65535, %v674_v45  ;;  %v705_v57 = vshrl.u32 %v674_v45, 16  ;;  %v899_v48 = vsub.s32 4294967266, %v4086_v17  ;;  %v677_v9 = vsel %vm665_vm3, %v659_v6, %v676_v10 }
 0x15e   : > { %v471_v42 = vmul.f32 0.0003926991, %v419_v5  ;;  %v1663_v58 = vshll.u32 %v4088_v63, 30  ;;  %v678_v18 = vsel %vm664_vm5, %v675_v52, %v677_v9  ;;  %v647_v4 = vshrl.u32 %v5928_v54, %v4049_v24 }
 0x15f   : > { %v707_v32 = vmul.u32 %v705_v57, %v680_v44  ;;  %v708_v23 = vmul.u32 %v704_v14, %v681_v47  ;;  %v682_v34 = vand.u32 65535, %v678_v18  ;;  %v683_v27 = vshrl.u32 %v678_v18, 16 }
 0x160   : > { %v706_v21 = vmul.u32 %v704_v14, %v680_v44  ;;  %v900_v39 = vadd.s32 127, %v899_v48  ;;  %v4109_v35 = vmul.f32 %v471_v42, %v466_v38  ;;  %v4111_v62 = vsub.s32 %v1660_v41, %v1663_v58 }
 0x161   : > { %v710_v50 = vshll.u32 %v707_v32, 16  ;;  %v685_v13 = vmul.u32 %v683_v27, %v680_v44  ;;  %v686_v30 = vmul.u32 %v682_v34, %v681_v47  ;;  %v712_v33 = vshll.u32 %v708_v23, 16 }
 0x162   : > { %v684_v0 = vmul.u32 %v682_v34, %v680_v44  ;;  %v709_v53 = vmul.u32 %v705_v57, %v681_v47  ;;  %v668_v6 = vsel %vm666_vm4, %v656_v22, 2102212464  ;;  %v687_v19 = vmul.u32 %v683_v27, %v681_v47 }
 0x163   : > { %vm714_vm6 = vc.u32 %v706_v21, %v710_v50  ;;  %v716_v2 = vadd.s32 %v710_v50, %v706_v21  ;;  %v688_v49 = vshll.u32 %v685_v13, 16  ;;  %v690_v59 = vshll.u32 %v686_v30, 16 }
 0x164   : > { %v715_v61 = vsel %vm714_vm6, 1, %v5930_v11  ;;  %vm1665_vm13 = vcmp.lt.s32.totalorder %v4111_v62, 0  ;;  %v1666_v1 = vsub.s32 0, %v4111_v62  ;;  %v711_v52 = vshrl.u32 %v707_v32, 16 }
 0x165   : > { %vm718_vm7 = vc.u32 %v716_v2, %v712_v33  ;;  %vm692_vm8 = vc.u32 %v684_v0, %v688_v49  ;;  %v694_v41 = vadd.s32 %v688_v49, %v684_v0  ;;  %v717_v15 = vadd.s32 %v715_v61, %v709_v53 }
 0x166   : > { %v693_v24 = vsel %vm692_vm8, 1, %v5930_v11  ;;  %v719_v5 = vsel %vm718_vm7, 1, %v5930_v11  ;;  %v667_v44 = vsel %vm663_vm14, %v647_v4, %v4068_v16  ;;  %v669_v10 = vsel %vm665_vm3, %v4070_v36, %v668_v6 }
 0x167   : > { %v695_v45 = vadd.s32 %v693_v24, %v687_v19  ;;  %vm696_vm15 = vc.u32 %v694_v41, %v690_v59  ;;  %v721_v22 = vadd.s32 %v719_v5, %v717_v15  ;;  %v1096_v14 = vand.u32 2139095040, %v4109_v35 }
 0x168   : > { %v697_v47 = vsel %vm696_vm15, 1, %v5930_v11  ;;  %v689_v57 = vshrl.u32 %v685_v13, 16  ;;  %v713_v48 = vshrl.u32 %v708_v23, 16  ;;  %v895_v42 = vsub.s32 32, %v4086_v17 }
 0x169   : > { %v699_v38 = vadd.s32 %v697_v47, %v695_v45  ;;  %v722_v9 = vadd.s32 %v721_v22, %v711_v52  ;;  %v901_v58 = vshll.u32 %v900_v39, 23  ;;  %v1097_v18 = vshrl.u32 %v1096_v14, 23 }
 0x16a   : > { %v691_v32 = vshrl.u32 %v686_v30, 16  ;;  %v879_v16 = vadd.s32 %v3965_v40, %v3950_v8  ;;  %v1667_v36 = vsel %vm1665_vm13, %v1666_v1, %v4111_v62  ;;  %v670_v21 = vsel %vm664_vm5, %v667_v44, %v669_v10 }
 0x16b   : > { %v700_v34 = vadd.s32 %v699_v38, %v689_v57  ;;  %v723_v27 = vadd.s32 %v722_v9, %v713_v48  ;;  %v3113_v50 = vadd.s32 4294967169, %v1097_v18  ;;  %v4140_v13 = vadd.s32 %v716_v2, %v712_v33  ;;  %v372_v2 = vpop.f32.mrf.mxu3 }
 0x16c   : > { %v897_v4 = vshrl.u32 %v879_v16, %v895_v42  ;;  %v902_v30 = vor.u32 4788187, %v901_v58  ;;  %v1668_v49 = vclz %v1667_v36  ;;  %v724_v53 = vmul.u32 %v4078_v12, %v670_v21 }
 0x16d   : > { %v4138_v23 = vadd.s32 %v700_v34, %v691_v32  ;;  %v727_v39 = vadd.s32 1, %v723_v27  ;;  %v1103_v0 = vadd.s32 1, %v3113_v50  ;;  %v5924_v8 = vand.u32 2147483647, %v4109_v35 }
 0x16e   : > { %v896_v55 = vshll.u32 %v4013_v26, %v4086_v17  ;;  %v465_v19 = vcvt.s32.f32 %v3424_v29  ;;  %v903_v41 = vand.u32 2147483647, %v902_v30  ;;  %v3123_v15 = vadd.s32 4294967294, %v1668_v49 }
 0x16f   : > { %vm726_vm0 = vc.u32 %v4138_v23, %v4140_v13  ;;  %vm1104_vm2 = vcmp.gt.s32.totalorder %v1103_v0, 0  ;;  %v1100_v12 = vand.u32 8388607, %v5924_v8  ;;  %v470_v45 = vmul.f32 0.0003926991, %v372_v2 }
 0x170   : > { %v728_v40 = vsel %vm726_vm0, %v727_v39, %v723_v27  ;;  %v1105_v33 = vsel %vm1104_vm2, %v1103_v0, 0  ;;  %v898_v59 = vor.u32 %v897_v4, %v896_v55  ;;  %vm3124_vm10 = vcmp.lt.s32.totalorder %v3123_v15, 0 }
 0x171   : > { %v729_v6 = vadd.s32 %v728_v40, %v724_v53  ;;  %v1107_v61 = vand.u32 31, %v1105_v33  ;;  %v4155_v17 = vshrl.u32 %v1105_v33, 5  ;;  %v1101_v57 = vor.u32 8388608, %v1100_v12 }
 0x172   : > { %v905_v14 = vcvt.s32.f32 %v898_v59  ;;  %v4174_v58 = vmul.f32 %v470_v45, %v465_v19  ;;  %v4192_v30 = vsel %vm3124_vm10, 0, %v3123_v15  ;;  %vm787_vm1 = vcmp.lt.s32.totalorder %v3688_v3, 0 }
 0x173   : > { %v4151_v1 = vsub.s32 32, %v1107_v61  ;;  %v1110_v24 = vshll.u32 %v5928_v54, %v1107_v61  ;;  %v1113_v5 = vshll.u32 %v5925_v56, %v1107_v61  ;;  %v730_v26 = vadd.s32 536870912, %v729_v6 }
 0x174   : > { %v1116_v52 = vshll.u32 %v5985_v37, %v1107_v61  ;;  %v1119_v29 = vshll.u32 %v5986_v31, %v1107_v61  ;;  %v1122_v47 = vshll.u32 %v5987_v60, %v1107_v61  ;;  %5989 = vst [vmem:[#allocation6_spill] sm:$0xff] %v4174_v58  ;;  %v906_v18 = vmul.f32 %v905_v14, %v903_v41 }
 0x175   : > { %v1111_v22 = vshrl.u32 %v5925_v56, %v4151_v1  ;;  %v1114_v44 = vshrl.u32 %v5985_v37, %v4151_v1  ;;  %v1117_v10 = vshrl.u32 %v5986_v31, %v4151_v1  ;;  %v1120_v38 = vshrl.u32 %v5987_v60, %v4151_v1 }
 0x176   : > { %v1123_v48 = vshrl.u32 %v5988_v25, %v4151_v1  ;;  %vm1125_vm9 = vcmp.lt.s32.totalorder %v4155_v17, 1  ;;  %v4179_v27 = vshrl.u32 %v730_v26, 30  ;;  %vm1128_vm11 = vcmp.lt.s32.totalorder %v4155_v17, 4 }
 0x177   : > { %v4170_v9 = vor.u32 %v1111_v22, %v1110_v24  ;;  %v4172_v42 = vor.u32 %v1114_v44, %v1113_v5  ;;  %v4176_v32 = vor.u32 %v1117_v10, %v1116_v52  ;;  %v1121_v34 = vor.u32 %v1120_v38, %v1119_v29 }
 0x178   : > { %v1124_v16 = vor.u32 %v1123_v48, %v1122_v47  ;;  %vm1127_vm12 = vcmp.lt.s32.totalorder %v4155_v17, 3  ;;  %v4183_v36 = vshll.u32 %v1101_v57, 8  ;;  %v942_v39 = vand.u32 2139095040, %v4174_v58 }
 0x179   : > { %v1133_v21 = vsel %vm1125_vm9, %v4170_v9, %v4172_v42  ;;  %v1134_v50 = vsel %vm1128_vm11, %v1121_v34, 920167782  ;;  %v907_v4 = vxor.u32 2147483648, %v906_v18  ;;  %v1137_v0 = vsel %vm1125_vm9, %v4172_v42, %v4176_v32 }
 0x17a   : > { %v732_v49 = vshll.u32 %v4179_v27, 30  ;;  %vm1126_vm14 = vcmp.lt.s32.totalorder %v4155_v17, 2  ;;  %v1135_v53 = vsel %vm1127_vm12, %v4176_v32, %v1134_v50  ;;  %v1138_v40 = vsel %vm1128_vm11, %v1124_v16, 1326507024 }
 0x17b   : > { %v1136_v55 = vsel %vm1126_vm14, %v1133_v21, %v1135_v53  ;;  %v1139_v33 = vsel %vm1127_vm12, %v1121_v34, %v1138_v40  ;;  %v1142_v2 = vand.u32 65535, %v4183_v36  ;;  %v943_v41 = vshrl.u32 %v942_v39, 23 }
 0x17c   : > { %v1140_v19 = vsel %vm1126_vm14, %v1137_v0, %v1139_v33  ;;  %v1166_v61 = vand.u32 65535, %v1136_v55  ;;  %v1167_v59 = vshrl.u32 %v1136_v55, 16  ;;  %v1676_v15 = vsub.s32 4294967266, %v4192_v30 }
 0x17d   : > { %v1143_v12 = vshrl.u32 %v4183_v36, 16  ;;  %v1144_v24 = vand.u32 65535, %v1140_v19  ;;  %v1145_v5 = vshrl.u32 %v1140_v19, 16  ;;  %v908_v45 = vsel %vm787_vm1, %v907_v4, %v906_v18 }
 0x17e   : > { %v4217_v26 = vsub.s32 %v729_v6, %v732_v49  ;;  %v1169_v52 = vmul.u32 %v1167_v59, %v1142_v2  ;;  %v5990_v44 = vand.u32 2147483647, %v3688_v3  ;;  %v3110_v14 = vadd.s32 4294967169, %v943_v41 }
 0x17f   : > { %v1147_v29 = vmul.u32 %v1145_v5, %v1142_v2  ;;  %v1148_v22 = vmul.u32 %v1144_v24, %v1143_v12  ;;  %v1170_v47 = vmul.u32 %v1166_v61, %v1143_v12  ;;  %v4230_v38 = vadd.s32 127, %v1676_v15 }
 0x180   : > { %vm4221_vm3 = vcmp.le.f32.partialorder %v5990_v44, 0.7853982  ;;  %v1146_v6 = vmul.u32 %v1144_v24, %v1142_v2  ;;  %vm734_vm4 = vcmp.lt.s32.totalorder %v4217_v26, 0  ;;  %v735_v18 = vsub.s32 0, %v4217_v26 }
 0x181   : > { %v4228_v57 = vsel %vm4221_vm3, %v3688_v3, %v908_v45  ;;  %v1150_v48 = vshll.u32 %v1147_v29, 16  ;;  %v1168_v34 = vmul.u32 %v1166_v61, %v1142_v2  ;;  %v1172_v16 = vshll.u32 %v1169_v52, 16 }
 0x182   : > { %v1149_v21 = vmul.u32 %v1145_v5, %v1143_v12  ;;  %v1152_v50 = vshll.u32 %v1148_v22, 16  ;;  %v1171_v0 = vmul.u32 %v1167_v59, %v1143_v12  ;;  %v1174_v49 = vshll.u32 %v1170_v47, 16 }
 0x183   : > { %vm1154_vm5 = vc.u32 %v1146_v6, %v1150_v48  ;;  %v1156_v39 = vadd.s32 %v1150_v48, %v1146_v6  ;;  %v949_v53 = vadd.s32 1, %v3110_v14  ;;  %vm1176_vm7 = vc.u32 %v1168_v34, %v1172_v16 }
 0x184   : > { %v1155_v4 = vsel %vm1154_vm5, 1, %v5930_v11  ;;  %v1178_v55 = vadd.s32 %v1172_v16, %v1168_v34  ;;  %v736_v33 = vsel %vm734_vm4, %v735_v18, %v4217_v26  ;;  %v1109_v2 = vshrl.u32 %v5928_v54, %v4151_v1 }
 0x185   : > { %v1157_v40 = vadd.s32 %v1155_v4, %v1149_v21  ;;  %vm1158_vm6 = vc.u32 %v1156_v39, %v1152_v50  ;;  %v1177_v61 = vsel %vm1176_vm7, 1, %v5930_v11  ;;  %v1151_v41 = vshrl.u32 %v1147_v29, 16 }
 0x186   : > { %v1159_v19 = vsel %vm1158_vm6, 1, %v5930_v11  ;;  %v1179_v59 = vadd.s32 %v1177_v61, %v1171_v0  ;;  %vm1180_vm8 = vc.u32 %v1178_v55, %v1174_v49  ;;  %v1130_v12 = vsel %vm1128_vm11, %v4176_v32, 2102212464 }
 0x187   : > { %v1161_v15 = vadd.s32 %v1159_v19, %v1157_v40  ;;  %v1153_v24 = vshrl.u32 %v1148_v22, 16  ;;  %v1181_v5 = vsel %vm1180_vm8, 1, %v5930_v11  ;;  %vm950_vm13 = vcmp.gt.s32.totalorder %v949_v53, 0 }
 0x188   : > { %v1173_v44 = vshrl.u32 %v1169_v52, 16  ;;  %v1183_v14 = vadd.s32 %v1181_v5, %v1179_v59  ;;  %v951_v1 = vsel %vm950_vm13, %v949_v53, 0  ;;  %v737_v6 = vclz %v736_v33 }
 0x189   : > { %v1162_v45 = vadd.s32 %v1161_v15, %v1151_v41  ;;  %v1129_v29 = vsel %vm1125_vm9, %v1109_v2, %v4170_v9  ;;  %v5923_v48 = vand.u32 2147483647, %v4174_v58  ;;  %v953_v18 = vand.u32 31, %v951_v1 }
 0x18a   : > { %v1131_v32 = vsel %vm1127_vm12, %v4172_v42, %v1130_v12  ;;  %v1175_v34 = vshrl.u32 %v1170_v47, 16  ;;  %v1184_v16 = vadd.s32 %v1183_v14, %v1173_v44  ;;  %v4255_v21 = vadd.s32 %v1178_v55, %v1174_v49 }
 0x18b   : > { %v4253_v22 = vadd.s32 %v1162_v45, %v1153_v24  ;;  %v4257_v52 = vsub.s32 32, %v953_v18  ;;  %v4261_v50 = vmul.f32 %v4228_v57, %v4228_v57  ;;  %v1672_v9 = vsub.s32 32, %v4192_v30 }
 0x18c   : > { %v4266_v39 = vadd.f32 %v3688_v3, %v3724_v28  ;;  %v1185_v4 = vadd.s32 %v1184_v16, %v1175_v34  ;;  %v1678_v42 = vshll.u32 %v4230_v38, 23  ;;  %v1132_v47 = vsel %vm1126_vm14, %v1129_v29, %v1131_v32 }
 0x18d   : > { %vm1188_vm15 = vc.u32 %v4253_v22, %v4255_v21  ;;  %v946_v0 = vand.u32 8388607, %v5923_v48  ;;  %v3105_v49 = vadd.s32 4294967294, %v737_v6  ;;  %v4275_v40 = vshrl.u32 %v951_v1, 5 }
 0x18e   : > { %5993 = vst [vmem:[#allocation7_spill] sm:$0xff] %v4266_v39  ;;  %v1189_v53 = vadd.s32 1, %v1185_v4  ;;  %v957_v55 = vshrl.u32 %v5925_v56, %v4257_v52  ;;  %v960_v33 = vshrl.u32 %v5985_v37, %v4257_v52  ;;  %v963_v17 = vshrl.u32 %v5986_v31, %v4257_v52 }
 0x18f   : > { %v965_v38 = vshll.u32 %v5986_v31, %v953_v18  ;;  %v966_v2 = vshrl.u32 %v5987_v60, %v4257_v52  ;;  %v1186_v19 = vmul.u32 %v4183_v36, %v1132_v47  ;;  %v968_v41 = vshll.u32 %v5987_v60, %v953_v18 }
 0x190   : > { %v1190_v61 = vsel %vm1188_vm15, %v1189_v53, %v1185_v4  ;;  %v969_v15 = vshrl.u32 %v5988_v25, %v4257_v52  ;;  %v956_v59 = vshll.u32 %v5928_v54, %v953_v18  ;;  %v959_v12 = vshll.u32 %v5925_v56, %v953_v18 }
 0x191   : > { %v962_v24 = vshll.u32 %v5985_v37, %v953_v18  ;;  %v967_v5 = vor.u32 %v966_v2, %v965_v38  ;;  %v1656_v45 = vadd.s32 %v4038_v7, %v4026_v20  ;;  %v2345_v44 = vand.u32 2139095040, %v4266_v39 }
 0x192   : > { %v1191_v14 = vadd.s32 %v1190_v61, %v1186_v19  ;;  %v970_v36 = vor.u32 %v969_v15, %v968_v41  ;;  %v4296_v1 = vor.u32 %v957_v55, %v956_v59  ;;  %v4298_v6 = vor.u32 %v960_v33, %v959_v12 }
 0x193   : > { %v4300_v29 = vor.u32 %v963_v17, %v962_v24  ;;  %vm974_vm0 = vcmp.lt.s32.totalorder %v4275_v40, 4  ;;  %v909_v32 = vsub.s32 4, %v4000_v51  ;;  %v921_v18 = vmul.f32 -0.00019511016, %v4261_v50 }
 0x194   : > { %v1674_v34 = vshrl.u32 %v1656_v45, %v1672_v9  ;;  %v980_v20 = vsel %vm974_vm0, %v967_v5, 920167782  ;;  %v1673_v7 = vshll.u32 %v4111_v62, %v4192_v30  ;;  %v1679_v16 = vor.u32 4788187, %v1678_v42 }
 0x195   : > { %vm3106_vm2 = vcmp.lt.s32.totalorder %v3105_v49, 0  ;;  %v947_v4 = vor.u32 8388608, %v946_v0  ;;  %v1192_v47 = vadd.s32 536870912, %v1191_v14  ;;  %vm971_vm9 = vcmp.lt.s32.totalorder %v4275_v40, 1 }
 0x196   : > { %vm973_vm10 = vcmp.lt.s32.totalorder %v4275_v40, 3  ;;  %v984_v53 = vsel %vm974_vm0, %v970_v36, 1326507024  ;;  %v2346_v55 = vshrl.u32 %v2345_v44, 23  ;;  %v979_v9 = vsel %vm971_vm9, %v4296_v1, %v4298_v6 }
 0x197   : > { %v981_v62 = vsel %vm973_vm10, %v4300_v29, %v980_v20  ;;  %v983_v30 = vsel %vm971_vm9, %v4298_v6, %v4300_v29  ;;  %v914_v42 = vmul.f32 -0.001358992, %v4261_v50  ;;  %v1675_v0 = vor.u32 %v1674_v34, %v1673_v7 }
 0x198   : > { %v985_v33 = vsel %vm973_vm10, %v967_v5, %v984_v53  ;;  %v922_v17 = vadd.f32 0.008332121, %v921_v18  ;;  %v4327_v38 = vsel %vm3106_vm2, 0, %v3105_v49  ;;  %vm972_vm11 = vcmp.lt.s32.totalorder %v4275_v40, 2 }
 0x199   : > { %v4330_v2 = vshll.u32 %v947_v4, 8  ;;  %v1680_v19 = vand.u32 2147483647, %v1679_v16  ;;  %v4332_v61 = vshrl.u32 %v1192_v47, 30  ;;  %v982_v41 = vsel %vm972_vm11, %v979_v9, %v981_v62 }
 0x19a   : > { %v986_v15 = vsel %vm972_vm11, %v983_v30, %v985_v33  ;;  %v4341_v59 = vsel %vm787_vm1, %v909_v32, %v4000_v51  ;;  %v3137_v49 = vadd.s32 4294967169, %v2346_v55  ;;  %v1682_v12 = vcvt.s32.f32 %v1675_v0 }
 0x19b   : > { %v745_v24 = vsub.s32 4294967266, %v4327_v38  ;;  %v990_v5 = vand.u32 65535, %v986_v15  ;;  %v991_v45 = vshrl.u32 %v986_v15, 16  ;;  %v915_v44 = vadd.f32 0.041655596, %v914_v42 }
 0x19c   : > { %v988_v36 = vand.u32 65535, %v4330_v2  ;;  %v1013_v18 = vshrl.u32 %v982_v41, 16  ;;  %v923_v34 = vmul.f32 %v922_v17, %v4261_v50  ;;  %v1683_v20 = vmul.f32 %v1682_v12, %v1680_v19 }
 0x19d   : > { %v1194_v7 = vshll.u32 %v4332_v61, 30  ;;  %v989_v16 = vshrl.u32 %v4330_v2, 16  ;;  %v912_v51 = vsel %vm4221_vm3, 0, %v4341_v59  ;;  %v1012_v4 = vand.u32 65535, %v982_v41 }
 0x19e   : > { %v993_v32 = vmul.u32 %v991_v45, %v988_v36  ;;  %v4351_v47 = vadd.s32 1, %v3137_v49  ;;  %v741_v53 = vsub.s32 32, %v4327_v38  ;;  %v746_v55 = vadd.s32 127, %v745_v24 }
 0x19f   : > { %v994_v9 = vmul.u32 %v990_v5, %v989_v16  ;;  %v916_v62 = vmul.f32 %v915_v44, %v4261_v50  ;;  %v992_v30 = vmul.u32 %v990_v5, %v988_v36  ;;  %v1015_v0 = vmul.u32 %v1013_v18, %v988_v36 }
 0x1a0   : > { %v996_v42 = vshll.u32 %v993_v32, 16  ;;  %v924_v33 = vadd.f32 -0.16666654, %v923_v34  ;;  %v1684_v17 = vxor.u32 2147483648, %v1683_v20  ;;  %v725_v19 = vadd.s32 %v4140_v13, %v4138_v23 }
 0x1a1   : > { %v4357_v15 = vsub.s32 %v1191_v14, %v1194_v7  ;;  %vm1564_vm12 = vcmp.lt.s32.totalorder %v3724_v28, 0  ;;  %v998_v41 = vshll.u32 %v994_v9, 16  ;;  %v1016_v12 = vmul.u32 %v1012_v4, %v989_v16  ;;  %v4366_v7 = vpop.f32.mrf.mxu1 }
 0x1a2   : > { %vm1000_vm14 = vc.u32 %v992_v30, %v996_v42  ;;  %v1002_v49 = vadd.s32 %v996_v42, %v992_v30  ;;  %v742_v24 = vshll.u32 %v4217_v26, %v4327_v38  ;;  %v743_v44 = vshrl.u32 %v725_v19, %v741_v53  ;;  %5994 = vst [vmem:[#allocation8_spill] sm:$0xff] %v4366_v7 }
 0x1a3   : > { %v747_v5 = vshll.u32 %v746_v55, 23  ;;  %v995_v48 = vmul.u32 %v991_v45, %v989_v16  ;;  %v1001_v34 = vsel %vm1000_vm14, 1, %v5930_v11  ;;  %v1014_v8 = vmul.u32 %v1012_v4, %v988_v36 }
 0x1a4   : > { %vm1004_vm1 = vc.u32 %v1002_v49, %v998_v41  ;;  %v1018_v56 = vshll.u32 %v1015_v0, 16  ;;  %vm1196_vm4 = vcmp.lt.s32.totalorder %v4357_v15, 0  ;;  %v1197_v23 = vsub.s32 0, %v4357_v15 }
 0x1a5   : > { %v1003_v13 = vadd.s32 %v1001_v34, %v995_v48  ;;  %v1005_v14 = vsel %vm1004_vm1, 1, %v5930_v11  ;;  %v5995_v30 = vand.u32 2147483647, %v3724_v28  ;;  %v5996_v26 = vmov 0 }
 0x1a6   : > { %v1017_v38 = vmul.u32 %v1013_v18, %v989_v16  ;;  %v1020_v45 = vshll.u32 %v1016_v12, 16  ;;  %vm1022_vm6 = vc.u32 %v1014_v8, %v1018_v56  ;;  %v1024_v36 = vadd.s32 %v1018_v56, %v1014_v8 }
 0x1a7   : > { %vm4370_vm5 = vcmp.le.f32.partialorder %v5995_v30, 0.7853982  ;;  %v748_v4 = vor.u32 4788187, %v747_v5  ;;  %v997_v53 = vshrl.u32 %v993_v32, 16  ;;  %v1007_v55 = vadd.s32 %v1005_v14, %v1003_v13 }
 0x1a8   : > { %v5997_v26 = vsel %vm4370_vm5, 4294967295, %v5996_v26  ;;  %v1023_v42 = vsel %vm1022_vm6, 1, %v5930_v11  ;;  %v744_v48 = vor.u32 %v743_v44, %v742_v24  ;;  %vm1026_vm7 = vc.u32 %v1024_v36, %v1020_v45 }
 0x1a9   : > { %5998 = vst [vmem:[#allocation9_spill] sm:$0xff] %v5997_v26  ;;  %v1025_v19 = vadd.s32 %v1023_v42, %v1017_v38  ;;  %v1410_v41 = vand.u32 2139095040, %v4366_v7  ;;  %v1198_v49 = vsel %vm1196_vm4, %v1197_v23, %v4357_v15  ;;  %v999_v34 = vshrl.u32 %v994_v9, 16 }
 0x1aa   : > { %v1008_v30 = vadd.s32 %v1007_v55, %v997_v53  ;;  %v1027_v18 = vsel %vm1026_vm7, 1, %v5930_v11  ;;  %v976_v56 = vsel %vm974_vm0, %v4300_v29, 2102212464  ;;  %v1019_v8 = vshrl.u32 %v1015_v0, 16 }
 0x1ab   : > { %v1029_v16 = vadd.s32 %v1027_v18, %v1025_v19  ;;  %v1411_v32 = vshrl.u32 %v1410_v41, 23  ;;  %v1685_v24 = vsel %vm1564_vm12, %v1684_v17, %v1683_v20  ;;  %v749_v44 = vand.u32 2147483647, %v748_v4 }
 0x1ac   : > { %v955_v5 = vshrl.u32 %v5928_v54, %v4257_v52  ;;  %v4387_v13 = vadd.s32 %v1008_v30, %v999_v34  ;;  %v1199_v9 = vclz %v1198_v49  ;;  %v1021_v23 = vshrl.u32 %v1016_v12, 16 }
 0x1ad   : > { %v1030_v14 = vadd.s32 %v1029_v16, %v1019_v8  ;;  %v3119_v38 = vadd.s32 4294967169, %v1411_v32  ;;  %v751_v53 = vcvt.s32.f32 %v744_v48  ;;  %v977_v0 = vsel %vm973_vm10, %v4298_v6, %v976_v56 }
 0x1ae   : > { %v975_v29 = vsel %vm971_vm9, %v955_v5, %v4296_v1  ;;  %v4395_v20 = vadd.s32 %v1024_v36, %v1020_v45  ;;  %v917_v17 = vadd.f32 -0.4999988, %v916_v62  ;;  %v925_v52 = vmul.f32 %v924_v33, %v4261_v50 }
 0x1af   : > { %v1031_v4 = vadd.s32 %v1030_v14, %v1021_v23  ;;  %v1417_v55 = vadd.s32 1, %v3119_v38  ;;  %v4401_v12 = vsel %vm4370_vm5, %v3724_v28, %v1685_v24  ;;  %v752_v42 = vmul.f32 %v751_v53, %v749_v44 }
 0x1b0   : > { %vm1034_vm8 = vc.u32 %v4387_v13, %v4395_v20  ;;  %v3114_v1 = vadd.s32 4294967294, %v1199_v9  ;;  %v978_v6 = vsel %vm972_vm11, %v975_v29, %v977_v0  ;;  %v4411_v62 = vand.u32 3, %v912_v51 }
 0x1b1   : > { %v1035_v45 = vadd.s32 1, %v1031_v4  ;;  %vm1418_vm13 = vcmp.gt.s32.totalorder %v1417_v55, 0  ;;  %vm2353_vm15 = vcmp.gt.s32.totalorder %v4351_v47, 0  ;;  %v918_v36 = vmul.f32 %v917_v17, %v4261_v50 }
 0x1b2   : > { %v1419_v33 = vsel %vm1418_vm13, %v1417_v55, 0  ;;  %v926_v48 = vadd.f32 1.0, %v925_v52  ;;  %v4417_v40 = vmul.f32 %v4401_v12, %v4401_v12  ;;  %v753_v49 = vxor.u32 2147483648, %v752_v42 }
 0x1b3   : > { %v1036_v19 = vsel %vm1034_vm8, %v1035_v45, %v1031_v4  ;;  %v1421_v41 = vand.u32 31, %v1419_v33  ;;  %v1032_v34 = vmul.u32 %v4330_v2, %v978_v6  ;;  %v5927_v10 = vand.u32 2147483647, %v4366_v7 }
 0x1b4   : > { %5999 = vst [vmem:[#allocation10_spill] sm:$0xff] %v4417_v40  ;;  %vm3115_vm3 = vcmp.lt.s32.totalorder %v3114_v1, 0  ;;  %vm633_vm0 = vcmp.lt.s32.totalorder %v4005_v46, 0  ;;  %v919_v50 = vadd.f32 1.0, %v918_v36  ;;  %v927_v30 = vmul.f32 %v926_v48, %v4228_v57 }
 0x1b5   : > { %v4421_v59 = vsub.s32 32, %v1421_v41  ;;  %v4424_v51 = vadd.s32 %v1036_v19, %v1032_v34  ;;  %v2354_v18 = vsel %vm2353_vm15, %v4351_v47, 0  ;;  %vm4432_vm2 = vcmp.le.f32.partialorder %v631_v43, 0.7853982 }
 0x1b6   : > { %vm931_vm9 = vcmp.eq.s32.totalorder %v4411_v62, 0  ;;  %vm934_vm10 = vcmp.eq.s32.totalorder %v4411_v62, 2  ;;  %v1698_v56 = vmul.f32 -0.00019511016, %v4417_v40  ;;  %v754_v8 = vsel %vm633_vm0, %v753_v49, %v752_v42 }
 0x1b7   : > { %v4441_v57 = vsel %vm3115_vm3, 0, %v3114_v1  ;;  %v1414_v47 = vand.u32 8388607, %v5927_v10  ;;  %v1424_v16 = vshll.u32 %v5928_v54, %v1421_v41  ;;  %v6002_v43 = vmov 2475754826  }
 0x1b8   : > { %v1425_v32 = vshrl.u32 %v6002_v43, %v4421_v59  ;;  %v1427_v24 = vshll.u32 %v6002_v43, %v1421_v41  ;;  %v1428_v44 = vshrl.u32 %v5985_v37, %v4421_v59  ;;  %v1038_v5 = vadd.s32 536870912, %v4424_v51 }
 0x1b9   : > { %v4452_v9 = vshrl.u32 %v1419_v33, 5  ;;  %v1433_v23 = vshll.u32 %v5986_v31, %v1421_v41  ;;  %v1434_v14 = vshrl.u32 %v5987_v60, %v4421_v59  ;;  %v1430_v38 = vshll.u32 %v5985_v37, %v1421_v41 }
 0x1ba   : > { %v1431_v53 = vshrl.u32 %v5986_v31, %v4421_v59  ;;  %v1436_v29 = vshll.u32 %v5987_v60, %v1421_v41  ;;  %v1437_v0 = vshrl.u32 %v5988_v25, %v4421_v59  ;;  %v932_v17 = vxor.u32 2147483648, %v927_v30 }
 0x1bb   : > { %v935_v52 = vxor.u32 2147483648, %v919_v50  ;;  %v1699_v4 = vadd.f32 0.008332121, %v1698_v56  ;;  %v4463_v55 = vand.u32 31, %v2354_v18  ;;  %v4468_v42 = vsel %vm4432_vm2, %v4005_v46, %v754_v8 }
 0x1bc   : > { %v1207_v1 = vsub.s32 4294967266, %v4441_v57  ;;  %v4471_v6 = vor.u32 %v1425_v32, %v1424_v16  ;;  %v4473_v45 = vor.u32 %v1428_v44, %v1427_v24  ;;  %vm930_vm11 = vcmp.lt.s32.totalorder %v4411_v62, 2 }
 0x1bd   : > { %6003 = vst [vmem:[#allocation11_spill] sm:$0xff] %v4463_v55  ;;  %v4476_v33 = vshrl.u32 %v1038_v5, 30  ;;  %v1415_v36 = vor.u32 8388608, %v1414_v47  ;;  %v1435_v48 = vor.u32 %v1434_v14, %v1433_v23  ;;  %vm1439_vm14 = vcmp.lt.s32.totalorder %v4452_v9, 1  ;;  %v4507_v14 = vpop.f32.mrf.mxu0 }
 0x1be   : > { %v4479_v19 = vshrl.u32 %v2354_v18, 5  ;;  %v4481_v41 = vor.u32 %v1431_v53, %v1430_v38  ;;  %v1438_v49 = vor.u32 %v1437_v0, %v1436_v29  ;;  %vm1442_vm1 = vcmp.lt.s32.totalorder %v4452_v9, 4 }
 0x1bf   : > { %v4486_v56 = vsub.s32 32, %v4463_v55  ;;  %v4490_v8 = vmul.f32 %v4468_v42, %v4468_v42  ;;  %vm1441_vm4 = vcmp.lt.s32.totalorder %v4452_v9, 3  ;;  %v933_v18 = vsel %vm931_vm9, %v919_v50, %v932_v17 }
 0x1c0   : > { %6004 = vst [vmem:[#allocation12_spill] sm:$0xff] %v4479_v19  ;;  %v936_v47 = vsel %vm934_vm10, %v935_v52, %v927_v30  ;;  %v1208_v16 = vadd.s32 127, %v1207_v1  ;;  %v1447_v32 = vsel %vm1439_vm14, %v4471_v6, %v4473_v45  ;;  %v1700_v24 = vmul.f32 %v1699_v4, %v4417_v40 }
 0x1c1   : > { %6005 = vst [vmem:[#allocation13_spill] sm:$0xff] %v4486_v56  ;;  %v1040_v44 = vshll.u32 %v4476_v33, 30  ;;  %v1448_v5 = vsel %vm1442_vm1, %v1435_v48, 920167782  ;;  %v4505_v23 = vshll.u32 %v1415_v36, 8  ;;  %vm1440_vm6 = vcmp.lt.s32.totalorder %v4452_v9, 2 }
 0x1c2   : > { %v1449_v50 = vsel %vm1441_vm4, %v4481_v41, %v1448_v5  ;;  %v1451_v30 = vsel %vm1439_vm14, %v4473_v45, %v4481_v41  ;;  %v1452_v38 = vsel %vm1442_vm1, %v1438_v49, 1326507024  ;;  %v760_v53 = vmul.f32 -0.001358992, %v4490_v8 }
 0x1c3   : > { %v767_v29 = vmul.f32 -0.00019511016, %v4490_v8  ;;  %v1450_v0 = vsel %vm1440_vm6, %v1447_v32, %v1449_v50  ;;  %v1453_v17 = vsel %vm1441_vm4, %v1435_v48, %v1452_v38  ;;  %v1203_v52 = vsub.s32 32, %v4441_v57 }
 0x1c4   : > { %v1209_v4 = vshll.u32 %v1208_v16, 23  ;;  %v1454_v1 = vsel %vm1440_vm6, %v1451_v30, %v1453_v17  ;;  %v1875_v36 = vand.u32 2139095040, %v4507_v14  ;;  %v1456_v49 = vand.u32 65535, %v4505_v23 }
 0x1c5   : > { %v1457_v5 = vshrl.u32 %v4505_v23, 16  ;;  %v1458_v10 = vand.u32 65535, %v1454_v1  ;;  %v1459_v54 = vshrl.u32 %v1454_v1, 16  ;;  %v937_v32 = vsel %vm930_vm11, %v933_v18, %v936_v47 }
 0x1c6   : > { %v1187_v48 = vadd.s32 %v4255_v21, %v4253_v22  ;;  %v4536_v50 = vsub.s32 %v4424_v51, %v1040_v44  ;;  %v1481_v16 = vshrl.u32 %v1450_v0, 16  ;;  %v1701_v38 = vadd.f32 -0.16666654, %v1700_v24 }
 0x1c7   : > { %v1461_v30 = vmul.u32 %v1459_v54, %v1456_v49  ;;  %v4538_v17 = vmul.u32 %v1458_v10, %v1457_v5  ;;  %v1480_v34 = vand.u32 65535, %v1450_v0  ;;  %vm928_vm7 = vweird.f32 %v3688_v3 }
 0x1c8   : > { %v761_v11 = vadd.f32 0.041655596, %v760_v53  ;;  %v768_v26 = vadd.f32 0.008332121, %v767_v29  ;;  %v1204_v62 = vshll.u32 %v4357_v15, %v4441_v57  ;;  %v1205_v18 = vshrl.u32 %v1187_v48, %v1203_v52 }
 0x1c9   : > { %v1210_v47 = vor.u32 4788187, %v1209_v4  ;;  %v1460_v1 = vmul.u32 %v1458_v10, %v1456_v49  ;;  %v1464_v22 = vshll.u32 %v1461_v30, 16  ;;  %v1876_v21 = vshrl.u32 %v1875_v36, 23 }
 0x1ca   : > { %vm1042_vm8 = vcmp.lt.s32.totalorder %v4536_v50, 0  ;;  %v1043_v51 = vsub.s32 0, %v4536_v50  ;;  %v1463_v24 = vmul.u32 %v1459_v54, %v1457_v5  ;;  %v1483_v44 = vmul.u32 %v1481_v16, %v1456_v49 }
 0x1cb   : > { %v1466_v0 = vshll.u32 %v4538_v17, 16  ;;  %vm1468_vm13 = vc.u32 %v1460_v1, %v1464_v22  ;;  %v1470_v19 = vadd.s32 %v1464_v22, %v1460_v1  ;;  %v1484_v53 = vmul.u32 %v1480_v34, %v1457_v5 }
 0x1cc   : > { %v1206_v29 = vor.u32 %v1205_v18, %v1204_v62  ;;  %v6006_v56 = vmov 0   ;;  %v1482_v15 = vmul.u32 %v1480_v34, %v1456_v49  ;;  %v1486_v57 = vshll.u32 %v1483_v44, 16 }
 0x1cd   : > { %v1469_v55 = vsel %vm1468_vm13, 1, %v6006_v56  ;;  %v1211_v52 = vand.u32 2147483647, %v1210_v47  ;;  %vm1472_vm15 = vc.u32 %v1470_v19, %v1466_v0  ;;  %v3128_v4 = vadd.s32 4294967169, %v1876_v21 }
 0x1ce   : > { %v1471_v10 = vadd.s32 %v1469_v55, %v1463_v24  ;;  %v1044_v36 = vsel %vm1042_vm8, %v1043_v51, %v4536_v50  ;;  %v1473_v54 = vsel %vm1472_vm15, 1, %v6006_v56  ;;  %v1485_v48 = vmul.u32 %v1481_v16, %v1457_v5 }
 0x1cf   : > { %vm1490_vm3 = vc.u32 %v1482_v15, %v1486_v57  ;;  %v1488_v1 = vshll.u32 %v1484_v53, 16  ;;  %v1492_v18 = vadd.s32 %v1486_v57, %v1482_v15  ;;  %v755_v34 = vsub.s32 4, %v4179_v27 }
 0x1d0   : > { %v1475_v39 = vadd.s32 %v1473_v54, %v1471_v10  ;;  %v1491_v62 = vsel %vm1490_vm3, 1, %v6006_v56  ;;  %v762_v49 = vmul.f32 %v761_v11, %v4490_v8  ;;  %v1213_v55 = vcvt.s32.f32 %v1206_v29 }
 0x1d1   : > { %v1493_v19 = vadd.s32 %v1491_v62, %v1485_v48  ;;  %v938_v47 = vsel %vm928_vm7, nan, %v937_v32  ;;  %v769_v22 = vmul.f32 %v768_v26, %v4490_v8  ;;  %v1465_v21 = vshrl.u32 %v1461_v30, 16 }
 0x1d2   : > { %vm1494_vm9 = vc.u32 %v1492_v18, %v1488_v1  ;;  %v6007_v5 = vsub.s32 4, %v4088_v63  ;;  %v1214_v51 = vmul.f32 %v1213_v55, %v1211_v52  ;;  %v1045_v24 = vclz %v1044_v36 }
 0x1d3   : > { %v1495_v11 = vsel %vm1494_vm9, 1, %v6006_v56  ;;  %v1476_v0 = vadd.s32 %v1475_v39, %v1465_v21  ;;  %v1487_v29 = vshrl.u32 %v1483_v44, 16  ;;  %v1882_v3 = vadd.s32 1, %v3128_v4 }
 0x1d4   : > { %v4562_v16 = vsel %vm1564_vm12, %v6007_v5, %v4088_v63  ;;  %v1497_v15 = vadd.s32 %v1495_v11, %v1493_v19  ;;  %v4565_v32 = vmul.f32 2.0, %v938_v47  ;;  %v1702_v26 = vmul.f32 %v1701_v38, %v4417_v40 }
 0x1d5   : > { %6008 = vst [vmem:[#allocation14_spill] sm:$0xff] %v4562_v16  ;;  %v756_v30 = vsel %vm633_vm0, %v755_v34, %v4179_v27  ;;  %v763_v57 = vadd.f32 -0.4999988, %v762_v49  ;;  %v770_v10 = vadd.f32 -0.16666654, %v769_v22  ;;  %v1467_v63 = vshrl.u32 %v4538_v17, 16 }
 0x1d6   : > { %6009 = vst [vmem:[#allocation15_spill] sm:$0xff] %v4565_v32  ;;  %v1489_v52 = vshrl.u32 %v1484_v53, 16  ;;  %v1498_v36 = vadd.s32 %v1497_v15, %v1487_v29  ;;  %v6010_v54 = vand.u32 2147483647, %v4109_v35  ;;  %v1215_v44 = vxor.u32 2147483648, %v1214_v51  ;;  %v6021_v16 = vld [vmem:[#allocation7_spill] sm:$0xff] }
 0x1d7   : > { %v6013_v4 = vmov 683565275   ;;  %v5940_v48 = vand.u32 2147483647, %v4507_v14  ;;  %vm1883_vm10 = vcmp.gt.s32.totalorder %v1882_v3, 0  ;;  %v3111_v27 = vadd.s32 4294967294, %v1045_v24 }
 0x1d8   : > { %vm4574_vm12 = vcmp.le.f32.partialorder %v6010_v54, 0.7853982  ;;  %v1423_v38 = vshrl.u32 %v6013_v4, %v4421_v59  ;;  %v4581_v62 = vadd.s32 %v1476_v0, %v1467_v63  ;;  %v1499_v34 = vadd.s32 %v1498_v36, %v1489_v52 }
 0x1d9   : > { %v1884_v17 = vsel %vm1883_vm10, %v1882_v3, 0  ;;  %v1703_v53 = vadd.f32 1.0, %v1702_v26  ;;  %vm1095_vm0 = vcmp.lt.s32.totalorder %v4109_v35, 0  ;;  %v1444_v49 = vsel %vm1442_vm1, %v4481_v41, 2102212464 }
 0x1da   : > { %v1886_v55 = vand.u32 31, %v1884_v17  ;;  %v758_v19 = vsel %vm4432_vm2, 0, %v756_v30  ;;  %v764_v59 = vmul.f32 %v763_v57, %v4490_v8  ;;  %v771_v47 = vmul.f32 %v770_v10, %v4490_v8 }
 0x1db   : > { %v4591_v22 = vadd.s32 %v1492_v18, %v1488_v1  ;;  %v1216_v21 = vsel %vm1095_vm0, %v1215_v44, %v1214_v51  ;;  %v1443_v5 = vsel %vm1439_vm14, %v1423_v38, %v4471_v6  ;;  %v1879_v41 = vand.u32 8388607, %v5940_v48 }
 0x1dc   : > { %v4600_v24 = vsub.s32 32, %v1886_v55  ;;  %vm3112_vm11 = vcmp.lt.s32.totalorder %v3111_v27, 0  ;;  %v1445_v2 = vsel %vm1441_vm4, %v4473_v45, %v1444_v49  ;;  %v1503_v8 = vadd.s32 1, %v1499_v34 }
 0x1dd   : > { %vm1502_vm2 = vc.u32 %v4581_v62, %v4591_v22  ;;  %v1889_v1 = vshll.u32 %v6013_v4, %v1886_v55  ;;  %v1892_v18 = vshll.u32 %v6002_v43, %v1886_v55  ;;  %v1895_v6 = vshll.u32 %v5985_v37, %v1886_v55 }
 0x1de   : > { %v1898_v51 = vshll.u32 %v5986_v31, %v1886_v55  ;;  %v1890_v11 = vshrl.u32 %v6002_v43, %v4600_v24  ;;  %v1893_v0 = vshrl.u32 %v5985_v37, %v4600_v24  ;;  %v1896_v45 = vshrl.u32 %v5986_v31, %v4600_v24 }
 0x1df   : > { %v1899_v29 = vshrl.u32 %v5987_v60, %v4600_v24  ;;  %v4620_v15 = vmul.f32 %v1703_v53, %v4401_v12  ;;  %v772_v3 = vadd.f32 1.0, %v771_v47  ;;  %v4622_v26 = vand.u32 3, %v758_v19 }
 0x1e0   : > { %v4624_v30 = vshrl.u32 %v1884_v17, 5  ;;  %v765_v57 = vadd.f32 1.0, %v764_v59  ;;  %v4629_v10 = vsel %vm4574_vm12, %v4109_v35, %v1216_v21  ;;  %v1446_v63 = vsel %vm1440_vm6, %v1443_v5, %v1445_v2 }
 0x1e1   : > { %6014 = vst [vmem:[#allocation16_spill] sm:$0xff] %v4620_v15  ;;  %v1901_v52 = vshll.u32 %v5987_v60, %v1886_v55  ;;  %v1048_v36 = vsel %vm3112_vm11, 0, %v3111_v27  ;;  %v1504_v12 = vsel %vm1502_vm2, %v1503_v8, %v1499_v34  ;;  %v1880_v54 = vor.u32 8388608, %v1879_v41 }
 0x1e2   : > { %v1902_v44 = vshrl.u32 %v5988_v25, %v4600_v24  ;;  %v4640_v38 = vor.u32 %v1890_v11, %v1889_v1  ;;  %v4642_v17 = vor.u32 %v1893_v0, %v1892_v18  ;;  %v4644_v53 = vor.u32 %v1896_v45, %v1895_v6 }
 0x1e3   : > { %v1900_v9 = vor.u32 %v1899_v29, %v1898_v51  ;;  %v773_v49 = vmul.f32 %v772_v3, %v4468_v42  ;;  %vm780_vm14 = vcmp.eq.s32.totalorder %v4622_v26, 2  ;;  %v1500_v27 = vmul.u32 %v4505_v23, %v1446_v63 }
 0x1e4   : > { %vm1904_vm1 = vcmp.lt.s32.totalorder %v4624_v30, 1  ;;  %vm1907_vm4 = vcmp.lt.s32.totalorder %v4624_v30, 4  ;;  %vm777_vm6 = vcmp.eq.s32.totalorder %v4622_v26, 0  ;;  %v781_v34 = vxor.u32 2147483648, %v765_v57 }
 0x1e5   : > { %v1217_v55 = vsub.s32 4, %v4332_v61  ;;  %v1053_v19 = vsub.s32 4294967266, %v1048_v36  ;;  %v1903_v59 = vor.u32 %v1902_v44, %v1901_v52  ;;  %v4655_v47 = vmul.f32 %v4629_v10, %v4629_v10 }
 0x1e6   : > { %v4657_v42 = vadd.s32 %v1504_v12, %v1500_v27  ;;  %vm1906_vm7 = vcmp.lt.s32.totalorder %v4624_v30, 3  ;;  %v4660_v23 = vshll.u32 %v1880_v54, 8  ;;  %v1912_v21 = vsel %vm1904_vm1, %v4640_v38, %v4642_v17 }
 0x1e7   : > { %v1913_v5 = vsel %vm1907_vm4, %v1900_v9, 920167782  ;;  %v1916_v41 = vsel %vm1904_vm1, %v4642_v17, %v4644_v53  ;;  %v1917_v2 = vsel %vm1907_vm4, %v1903_v59, 1326507024  ;;  %v778_v8 = vxor.u32 2147483648, %v773_v49 }
 0x1e8   : > { %v1033_v1 = vadd.s32 %v4395_v20, %v4387_v13  ;;  %v1049_v18 = vsub.s32 32, %v1048_v36  ;;  %v4678_v6 = vadd.f32 %v4005_v46, %v4366_v7  ;;  %v1054_v51 = vadd.s32 127, %v1053_v19 }
 0x1e9   : > { %vm1905_vm8 = vcmp.lt.s32.totalorder %v4624_v30, 2  ;;  %v1914_v11 = vsel %vm1906_vm7, %v4644_v53, %v1913_v5  ;;  %v1918_v0 = vsel %vm1906_vm7, %v1900_v9, %v1917_v2  ;;  %v1222_v45 = vmul.f32 -0.001358992, %v4655_v47 }
 0x1ea   : > { %6015 = vst [vmem:[#allocation17_spill] sm:$0xff] %v4678_v6  ;;  %v1229_v29 = vmul.f32 -0.00019511016, %v4655_v47  ;;  %v1915_v13 = vsel %vm1905_vm8, %v1912_v21, %v1914_v11  ;;  %v1919_v20 = vsel %vm1905_vm8, %v1916_v41, %v1918_v0  ;;  %v1506_v3 = vadd.s32 536870912, %v4657_v42 }
 0x1eb   : > { %v1921_v63 = vand.u32 65535, %v4660_v23  ;;  %v1923_v52 = vand.u32 65535, %v1919_v20  ;;  %v1924_v12 = vshrl.u32 %v1919_v20, 16  ;;  %v1051_v54 = vshrl.u32 %v1033_v1, %v1049_v18 }
 0x1ec   : > { %v1922_v44 = vshrl.u32 %v4660_v23, 16  ;;  %v1945_v9 = vand.u32 65535, %v1915_v13  ;;  %v1946_v27 = vshrl.u32 %v1915_v13, 16  ;;  %v782_v19 = vsel %vm780_vm14, %v781_v34, %v773_v49 }
 0x1ed   : > { %v4700_v59 = vsel %vm1095_vm0, %v1217_v55, %v4332_v61  ;;  %v1055_v21 = vshll.u32 %v1054_v51, 23  ;;  %v1926_v5 = vmul.u32 %v1924_v12, %v1921_v63  ;;  %v779_v41 = vsel %vm777_vm6, %v765_v57, %v778_v8  ;;  %v4708_v55 = vpop.f32.mrf.mxu3 }
 0x1ee   : > { %v1050_v2 = vshll.u32 %v4536_v50, %v1048_v36  ;;  %v1927_v1 = vmul.u32 %v1923_v52, %v1922_v44  ;;  %v1948_v18 = vmul.u32 %v1946_v27, %v1921_v63  ;;  %v4705_v11 = vshrl.u32 %v1506_v3, 30 }
 0x1ef   : > { %v2190_v0 = vand.u32 2139095040, %v4678_v6  ;;  %v1925_v13 = vmul.u32 %v1923_v52, %v1921_v63  ;;  %v1929_v49 = vshll.u32 %v1926_v5, 16  ;;  %v1223_v34 = vadd.f32 0.041655596, %v1222_v45 }
 0x1f0   : > { %v1230_v20 = vadd.f32 0.008332121, %v1229_v29  ;;  %v1052_v48 = vor.u32 %v1051_v54, %v1050_v2  ;;  %v1949_v61 = vmul.u32 %v1945_v9, %v1922_v44  ;;  %v1056_v51 = vor.u32 4788187, %v1055_v21 }
 0x1f1   : > { %v1928_v32 = vmul.u32 %v1924_v12, %v1922_v44  ;;  %vm1933_vm13 = vc.u32 %v1925_v13, %v1929_v49  ;;  %v1947_v57 = vmul.u32 %v1945_v9, %v1921_v63  ;;  %vm776_vm15 = vcmp.lt.s32.totalorder %v4622_v26, 2 }
 0x1f2   : > { %v1931_v50 = vshll.u32 %v1927_v1, 16  ;;  %v1934_v36 = vsel %vm1933_vm13, 1, %v6006_v56  ;;  %v1935_v8 = vadd.s32 %v1929_v49, %v1925_v13  ;;  %v1951_v3 = vshll.u32 %v1948_v18, 16 }
 0x1f3   : > { %v1508_v52 = vshll.u32 %v4705_v11, 30  ;;  %v1936_v28 = vadd.s32 %v1934_v36, %v1928_v32  ;;  %v1950_v45 = vmul.u32 %v1946_v27, %v1922_v44  ;;  %v1720_v29 = vand.u32 2139095040, %v4708_v55 }
 0x1f4   : > { %vm1937_vm3 = vc.u32 %v1935_v8, %v1931_v50  ;;  %v1953_v54 = vshll.u32 %v1949_v61, 16  ;;  %vm1955_vm9 = vc.u32 %v1947_v57, %v1951_v3  ;;  %v1957_v21 = vadd.s32 %v1951_v3, %v1947_v57 }
 0x1f5   : > { %v1231_v12 = vmul.f32 %v1230_v20, %v4655_v47  ;;  %v1057_v63 = vand.u32 2147483647, %v1056_v51  ;;  %v1938_v9 = vsel %vm1937_vm3, 1, %v6006_v56  ;;  %v1956_v2 = vsel %vm1955_vm9, 1, %v6006_v56 }
 0x1f6   : > { %v1930_v15 = vshrl.u32 %v1926_v5, 16  ;;  %v1940_v13 = vadd.s32 %v1938_v9, %v1936_v28  ;;  %v1958_v49 = vadd.s32 %v1956_v2, %v1950_v45  ;;  %vm1959_vm10 = vc.u32 %v1957_v21, %v1953_v54 }
 0x1f7   : > { %vm774_vm0 = vweird.f32 %v4005_v46  ;;  %v1224_v32 = vmul.f32 %v1223_v34, %v4655_v47  ;;  %v1059_v44 = vcvt.s32.f32 %v1052_v48  ;;  %v4720_v27 = vsub.s32 %v4657_v42, %v1508_v52 }
 0x1f8   : > { %v1960_v57 = vsel %vm1959_vm10, 1, %v6006_v56  ;;  %v1941_v20 = vadd.s32 %v1940_v13, %v1930_v15  ;;  %v1952_v51 = vshrl.u32 %v1948_v18, 16  ;;  %v1721_v36 = vshrl.u32 %v1720_v29, 23 }
 0x1f9   : > { %v1962_v50 = vadd.s32 %v1960_v57, %v1958_v49  ;;  %v1232_v8 = vadd.f32 -0.16666654, %v1231_v12  ;;  %vm941_vm11 = vcmp.lt.s32.totalorder %v4174_v58, 0  ;;  %v1060_v28 = vmul.f32 %v1059_v44, %v1057_v63 }
 0x1fa   : > { %v1888_v5 = vshrl.u32 %v6013_v4, %v4600_v24  ;;  %v1909_v48 = vsel %vm1907_vm4, %v4644_v53, 2102212464  ;;  %v1932_v34 = vshrl.u32 %v1927_v1, 16  ;;  %v1954_v42 = vshrl.u32 %v1949_v61, 16 }
 0x1fb   : > { %v1963_v3 = vadd.s32 %v1962_v50, %v1952_v51  ;;  %v3125_v52 = vadd.s32 4294967169, %v1721_v36  ;;  %v783_v15 = vsel %vm776_vm15, %v779_v41, %v782_v19  ;;  %v1220_v18 = vsel %vm4574_vm12, 0, %v4700_v59 }
 0x1fc   : > { %v1511_v45 = vsub.s32 0, %v4720_v27  ;;  %v2191_v29 = vshrl.u32 %v2190_v0, 23  ;;  %vm1510_vm2 = vcmp.lt.s32.totalorder %v4720_v27, 0  ;;  %v4736_v24 = vadd.s32 %v1941_v20, %v1932_v34 }
 0x1fd   : > { %v1964_v12 = vadd.s32 %v1963_v3, %v1954_v42  ;;  %v1727_v53 = vadd.s32 1, %v3125_v52  ;;  %v1225_v1 = vadd.f32 -0.4999988, %v1224_v32  ;;  %v1233_v61 = vmul.f32 %v1232_v8, %v4655_v47 }
 0x1fe   : > { %v1908_v26 = vsel %vm1904_vm1, %v1888_v5, %v4640_v38  ;;  %v1910_v39 = vsel %vm1906_vm7, %v4642_v17, %v1909_v48  ;;  %v1061_v19 = vxor.u32 2147483648, %v1060_v28  ;;  %v4745_v59 = vadd.s32 %v1957_v21, %v1953_v54 }
 0x1ff   : > { %v5945_v41 = vand.u32 2147483647, %v4708_v55  ;;  %vm1728_vm12 = vcmp.gt.s32.totalorder %v1727_v53, 0  ;;  %v4748_v0 = vand.u32 3, %v1220_v18  ;;  %v6016_v63 = vand.u32 2147483647, %v4174_v58 }
 0x200   : > { %v1512_v38 = vsel %vm1510_vm2, %v1511_v45, %v4720_v27  ;;  %v1968_v2 = vadd.s32 1, %v1964_v12  ;;  %v1729_v13 = vsel %vm1728_vm12, %v1727_v53, 0  ;;  %v784_v17 = vsel %vm774_vm0, nan, %v783_v15 }
 0x201   : > { %vm4752_vm14 = vcmp.le.f32.partialorder %v6016_v63, 0.7853982  ;;  %v1911_v54 = vsel %vm1905_vm8, %v1908_v26, %v1910_v39  ;;  %vm1967_vm1 = vc.u32 %v4736_v24, %v4745_v59  ;;  %v1731_v21 = vand.u32 31, %v1729_v13 }
 0x202   : > { %v1226_v49 = vmul.f32 %v1225_v1, %v4655_v47  ;;  %v1234_v32 = vadd.f32 1.0, %v1233_v61  ;;  %v1063_v44 = vsub.s32 4, %v4476_v33  ;;  %v3134_v57 = vadd.s32 4294967169, %v2191_v29 }
 0x203   : > { %v1062_v20 = vsel %vm941_vm11, %v1061_v19, %v1060_v28  ;;  %v1513_v51 = vclz %v1512_v38  ;;  %v1724_v46 = vand.u32 8388607, %v5945_v41  ;;  %v4769_v50 = vsub.s32 32, %v1731_v21 }
 0x204   : > { %v1965_v30 = vmul.u32 %v4660_v23, %v1911_v54  ;;  %v1969_v36 = vsel %vm1967_vm1, %v1968_v2, %v1964_v12  ;;  %v4772_v8 = vshrl.u32 %v1729_v13, 5  ;;  %v1734_v47 = vshll.u32 %v6013_v4, %v1731_v21 }
 0x205   : > { %v1735_v5 = vshrl.u32 %v6002_v43, %v4769_v50  ;;  %v1737_v48 = vshll.u32 %v6002_v43, %v1731_v21  ;;  %v1738_v28 = vshrl.u32 %v5985_v37, %v4769_v50  ;;  %v1741_v34 = vshrl.u32 %v5986_v31, %v4769_v50 }
 0x206   : > { %v1740_v42 = vshll.u32 %v5985_v37, %v1731_v21  ;;  %v1743_v23 = vshll.u32 %v5986_v31, %v1731_v21  ;;  %v1744_v3 = vshrl.u32 %v5987_v60, %v4769_v50  ;;  %v1747_v52 = vshrl.u32 %v5988_v25, %v4769_v50 }
 0x207   : > { %vm1239_vm4 = vcmp.eq.s32.totalorder %v4748_v0, 0  ;;  %v1725_v15 = vor.u32 8388608, %v1724_v46  ;;  %v4789_v18 = vor.u32 %v1735_v5, %v1734_v47  ;;  %v4791_v45 = vor.u32 %v1738_v28, %v1737_v48 }
 0x208   : > { %v1746_v29 = vshll.u32 %v5987_v60, %v1731_v21  ;;  %v4794_v12 = vmul.f32 2.0, %v784_v17  ;;  %v1235_v53 = vmul.f32 %v1234_v32, %v4629_v10  ;;  %v4797_v1 = vor.u32 %v1741_v34, %v1740_v42 }
 0x209   : > { %v1745_v61 = vor.u32 %v1744_v3, %v1743_v23  ;;  %vm1242_vm6 = vcmp.eq.s32.totalorder %v4748_v0, 2  ;;  %v4803_v26 = vsel %vm4752_vm14, %v4174_v58, %v1062_v20  ;;  %v2197_v39 = vadd.s32 1, %v3134_v57 }
 0x20a   : > { %6019 = vst [vmem:[#allocation18_spill] sm:$0xff] %v4794_v12  ;;  %v4805_v19 = vadd.s32 %v1969_v36, %v1965_v30  ;;  %v1748_v63 = vor.u32 %v1747_v52, %v1746_v29  ;;  %v1227_v38 = vadd.f32 1.0, %v1226_v49  ;;  %vm1238_vm7 = vcmp.lt.s32.totalorder %v4748_v0, 2 }
 0x20b   : > { %v3120_v2 = vadd.s32 4294967294, %v1513_v51  ;;  %vm1749_vm8 = vcmp.lt.s32.totalorder %v4772_v8, 1  ;;  %vm1752_vm13 = vcmp.lt.s32.totalorder %v4772_v8, 4  ;;  %v4813_v10 = vsel %vm941_vm11, %v1063_v44, %v4476_v33 }
 0x20c   : > { %v1757_v13 = vsel %vm1749_vm8, %v4789_v18, %v4791_v45  ;;  %v1758_v17 = vsel %vm1752_vm13, %v1745_v61, 920167782  ;;  %v4821_v54 = vshll.u32 %v1725_v15, 8  ;;  %v1240_v21 = vxor.u32 2147483648, %v1235_v53 }
 0x20d   : > { %v4825_v49 = vmul.f32 %v4803_v26, %v4803_v26  ;;  %vm1751_vm15 = vcmp.lt.s32.totalorder %v4772_v8, 3  ;;  %v1761_v33 = vsel %vm1749_vm8, %v4791_v45, %v4797_v1  ;;  %v1971_v32 = vadd.s32 536870912, %v4805_v19 }
 0x20e   : > { %vm1750_vm3 = vcmp.lt.s32.totalorder %v4772_v8, 2  ;;  %v1759_v44 = vsel %vm1751_vm15, %v4797_v1, %v1758_v17  ;;  %v1762_v57 = vsel %vm1752_vm13, %v1748_v63, 1326507024  ;;  %v1243_v20 = vxor.u32 2147483648, %v1227_v38 }
 0x20f   : > { %vm3121_vm9 = vcmp.lt.s32.totalorder %v3120_v2, 0  ;;  %v1760_v51 = vsel %vm1750_vm3, %v1757_v13, %v1759_v44  ;;  %v1763_v46 = vsel %vm1751_vm15, %v1745_v61, %v1762_v57  ;;  %v1766_v36 = vand.u32 65535, %v4821_v54 }
 0x210   : > { %v1764_v30 = vsel %vm1750_vm3, %v1761_v33, %v1763_v46  ;;  %v1790_v47 = vand.u32 65535, %v1760_v51  ;;  %v1791_v5 = vshrl.u32 %v1760_v51, 16  ;;  %v1241_v48 = vsel %vm1239_vm4, %v1227_v38, %v1240_v21 }
 0x211   : > { %v1767_v28 = vshrl.u32 %v4821_v54, 16  ;;  %v1768_v34 = vand.u32 65535, %v1764_v30  ;;  %v1769_v42 = vshrl.u32 %v1764_v30, 16  ;;  %v1068_v23 = vmul.f32 -0.001358992, %v4825_v49 }
 0x212   : > { %vm2198_vm10 = vcmp.gt.s32.totalorder %v2197_v39, 0  ;;  %v4850_v3 = vshrl.u32 %v1971_v32, 30  ;;  %v1793_v52 = vmul.u32 %v1791_v5, %v1766_v36  ;;  %v1244_v15 = vsel %vm1242_vm6, %v1243_v20, %v1235_v53 }
 0x213   : > { %v4855_v29 = vsel %vm3121_vm9, 0, %v3120_v2  ;;  %v1771_v61 = vmul.u32 %v1769_v42, %v1766_v36  ;;  %v1772_v63 = vmul.u32 %v1768_v34, %v1767_v28  ;;  %v4859_v38 = vsel %vm1238_vm7, %v1241_v48, %v1244_v15 }
 0x214   : > { %6020 = vst [vmem:[#allocation19_spill] sm:$0xff] %v4850_v3  ;;  %v1794_v17 = vmul.u32 %v1790_v47, %v1767_v28  ;;  %v1796_v21 = vshll.u32 %v1793_v52, 16  ;;  %v1075_v33 = vmul.f32 -0.00019511016, %v4825_v49  ;;  %v4865_v32 = vsel %vm2198_vm10, %v2197_v39, 0 }
 0x215   : > { %v1770_v53 = vmul.u32 %v1768_v34, %v1766_v36  ;;  %v1774_v44 = vshll.u32 %v1771_v61, 16  ;;  %v1069_v2 = vadd.f32 0.041655596, %v1068_v23  ;;  %v1521_v57 = vsub.s32 4294967266, %v4855_v29 }
 0x216   : > { %v1973_v20 = vshll.u32 %v4850_v3, 30  ;;  %v1792_v0 = vmul.u32 %v1790_v47, %v1766_v36  ;;  %v1773_v51 = vmul.u32 %v1769_v42, %v1767_v28  ;;  %v1776_v46 = vshll.u32 %v1772_v63, 16 }
 0x217   : > { %vm1778_vm0 = vc.u32 %v1770_v53, %v1774_v44  ;;  %v1780_v30 = vadd.s32 %v1774_v44, %v1770_v53  ;;  %v1795_v15 = vmul.u32 %v1791_v5, %v1767_v28  ;;  %v1798_v41 = vshll.u32 %v1794_v17, 16 }
 0x218   : > { %v1779_v48 = vsel %vm1778_vm0, 1, %v6006_v56  ;;  %vm1800_vm11 = vc.u32 %v1792_v0, %v1796_v21  ;;  %v1802_v34 = vadd.s32 %v1796_v21, %v1792_v0  ;;  %v1522_v23 = vadd.s32 127, %v1521_v57 }
 0x219   : > { %v1781_v13 = vadd.s32 %v1779_v48, %v1773_v51  ;;  %vm1782_vm2 = vc.u32 %v1780_v30, %v1776_v46  ;;  %v1801_v39 = vsel %vm1800_vm11, 1, %v6006_v56  ;;  %v5950_v36 = vand.u32 2147483647, %v6021_v16  ;;  %v6022_v48 = vld [vmem:[#allocation11_spill] sm:$0xff] }
 0x21a   : > { %v1783_v12 = vsel %vm1782_vm2, 1, %v6006_v56  ;;  %v1803_v40 = vadd.s32 %v1801_v39, %v1795_v15  ;;  %v1501_v47 = vadd.s32 %v4591_v22, %v4581_v62  ;;  %v4877_v42 = vadd.f32 %v4109_v35, %v4507_v14 }
 0x21b   : > { %v1785_v5 = vadd.s32 %v1783_v12, %v1781_v13  ;;  %vm1804_vm12 = vc.u32 %v1802_v34, %v1798_v41  ;;  %v4880_v28 = vmul.f32 %v1069_v2, %v4825_v49  ;;  %v4882_v53 = vadd.f32 0.008332121, %v1075_v33 }
 0x21c   : > { %v1775_v21 = vshrl.u32 %v1771_v61, 16  ;;  %v1805_v44 = vsel %vm1804_vm12, 1, %v6006_v56  ;;  %v1517_v57 = vsub.s32 32, %v4855_v29  ;;  %v4887_v0 = vsub.s32 %v4805_v19, %v1973_v20 }
 0x21d   : > { %v1797_v62 = vshrl.u32 %v1793_v52, 16  ;;  %v1807_v22 = vadd.s32 %v1805_v44, %v1803_v40  ;;  %v1523_v51 = vshll.u32 %v1522_v23, 23  ;;  %v1733_v12 = vshrl.u32 %v6013_v4, %v4769_v50  ;;  %v6023_v52 = vld [vmem:[#allocation13_spill] sm:$0xff] }
 0x21e   : > { %v1786_v13 = vadd.s32 %v1785_v5, %v1775_v21  ;;  %v2349_v2 = vand.u32 8388607, %v5950_v36  ;;  %v1754_v61 = vsel %vm1752_vm13, %v4797_v1, 2102212464  ;;  %v1777_v33 = vshrl.u32 %v1772_v63, 16 }
 0x21f   : > { %v1799_v46 = vshrl.u32 %v1794_v17, 16  ;;  %v1808_v30 = vadd.s32 %v1807_v22, %v1797_v62  ;;  %v2359_v19 = vshll.u32 %v6013_v4, %v6022_v48  ;;  %v2360_v40 = vshrl.u32 %v6002_v43, %v6023_v52 }
 0x220   : > { %v2362_v50 = vshll.u32 %v6002_v43, %v6022_v48  ;;  %v2363_v20 = vshrl.u32 %v5985_v37, %v6023_v52  ;;  %vm1975_vm1 = vcmp.lt.s32.totalorder %v4887_v0, 0  ;;  %v1976_v15 = vsub.s32 0, %v4887_v0 }
 0x221   : > { %v1753_v1 = vsel %vm1749_vm8, %v1733_v12, %v4789_v18  ;;  %v1809_v63 = vadd.s32 %v1808_v30, %v1799_v46  ;;  %v1755_v17 = vsel %vm1751_vm15, %v4791_v45, %v1754_v61  ;;  %v4912_v39 = vadd.s32 %v1786_v13, %v1777_v33  ;;  %v6024_v33 = vld [vmem:[#allocation12_spill] sm:$0xff] }
 0x222   : > { %v2365_v23 = vshll.u32 %v5985_v37, %v6022_v48  ;;  %v2366_v5 = vshrl.u32 %v5986_v31, %v6023_v52  ;;  %v4918_v21 = vadd.s32 %v1802_v34, %v1798_v41  ;;  %v2368_v44 = vshll.u32 %v5986_v31, %v6022_v48 }
 0x223   : > { %v2369_v18 = vshrl.u32 %v5987_v60, %v6023_v52  ;;  %v2371_v62 = vshll.u32 %v5987_v60, %v6022_v48  ;;  %v2350_v45 = vor.u32 8388608, %v2349_v2  ;;  %v4926_v22 = vor.u32 %v2360_v40, %v2359_v19 }
 0x224   : > { %v4928_v12 = vor.u32 %v2363_v20, %v2362_v50  ;;  %v2372_v13 = vshrl.u32 %v5988_v25, %v6023_v52  ;;  %v1813_v61 = vadd.s32 1, %v1809_v63  ;;  %v4932_v41 = vor.u32 %v2366_v5, %v2365_v23 }
 0x225   : > { %v2370_v34 = vor.u32 %v2369_v18, %v2368_v44  ;;  %vm2374_vm4 = vcmp.lt.s32.totalorder %v6024_v33, 1  ;;  %vm1236_vm6 = vweird.f32 %v4109_v35  ;;  %v1518_v46 = vshll.u32 %v4720_v27, %v4855_v29 }
 0x226   : > { %v1519_v30 = vshrl.u32 %v1501_v47, %v1517_v57  ;;  %vm1812_vm7 = vc.u32 %v4912_v39, %v4918_v21  ;;  %v2373_v2 = vor.u32 %v2372_v13, %v2371_v62  ;;  %v1977_v48 = vsel %vm1975_vm1, %v1976_v15, %v4887_v0 }
 0x227   : > { %v1756_v19 = vsel %vm1750_vm3, %v1753_v1, %v1755_v17  ;;  %vm2376_vm8 = vcmp.lt.s32.totalorder %v6024_v33, 3  ;;  %vm2377_vm13 = vcmp.lt.s32.totalorder %v6024_v33, 4  ;;  %v1524_v40 = vor.u32 4788187, %v1523_v51 }
 0x228   : > { %vm2375_vm15 = vcmp.lt.s32.totalorder %v6024_v33, 2  ;;  %v2382_v27 = vsel %vm2374_vm4, %v4926_v22, %v4928_v12  ;;  %v4952_v29 = vshll.u32 %v2350_v45, 8  ;;  %v1814_v47 = vsel %vm1812_vm7, %v1813_v61, %v1809_v63 }
 0x229   : > { %v2383_v57 = vsel %vm2377_vm13, %v2370_v34, 920167782  ;;  %v2386_v8 = vsel %vm2374_vm4, %v4928_v12, %v4932_v41  ;;  %v2387_v51 = vsel %vm2377_vm13, %v2373_v2, 1326507024  ;;  %v1520_v50 = vor.u32 %v1519_v30, %v1518_v46 }
 0x22a   : > { %v1978_v20 = vclz %v1977_v48  ;;  %v1810_v15 = vmul.u32 %v4821_v54, %v1756_v19  ;;  %v2384_v1 = vsel %vm2376_vm8, %v4932_v41, %v2383_v57  ;;  %v2388_v17 = vsel %vm2376_vm8, %v2370_v34, %v2387_v51 }
 0x22b   : > { %v2385_v63 = vsel %vm2375_vm15, %v2382_v27, %v2384_v1  ;;  %v2391_v23 = vand.u32 65535, %v4952_v29  ;;  %v2392_v5 = vshrl.u32 %v4952_v29, 16  ;;  %v1077_v44 = vmul.f32 %v4882_v53, %v4825_v49 }
 0x22c   : > { %v2655_v18 = vand.u32 2139095040, %v4877_v42  ;;  %v4975_v54 = vadd.s32 %v1814_v47, %v1810_v15  ;;  %v2389_v62 = vsel %vm2375_vm15, %v2386_v8, %v2388_v17  ;;  %v1071_v45 = vadd.f32 -0.4999988, %v4880_v28 }
 0x22d   : > { %v1525_v13 = vand.u32 2147483647, %v1524_v40  ;;  %v2393_v61 = vand.u32 65535, %v2389_v62  ;;  %v2394_v46 = vshrl.u32 %v2389_v62, 16  ;;  %v6025_v34 = vsel %vm4752_vm14, 0, %v4813_v10 }
 0x22e   : > { %v4984_v30 = vand.u32 3, %v6025_v34  ;;  %v3129_v2 = vadd.s32 4294967294, %v1978_v20  ;;  %v2415_v53 = vand.u32 65535, %v2385_v63  ;;  %v2416_v48 = vshrl.u32 %v2385_v63, 16 }
 0x22f   : > { %v4989_v19 = vsel %vm1236_vm6, nan, %v4859_v38  ;;  %v1527_v27 = vcvt.s32.f32 %v1520_v50  ;;  %v2396_v47 = vmul.u32 %v2394_v46, %v2391_v23  ;;  %v2397_v28 = vmul.u32 %v2393_v61, %v2392_v5 }
 0x230   : > { %v1078_v40 = vadd.f32 -0.16666654, %v1077_v44  ;;  %v4992_v57 = vand.u32 31, %v4865_v32  ;;  %v2656_v9 = vshrl.u32 %v2655_v18, 23  ;;  %v1816_v10 = vadd.s32 536870912, %v4975_v54 }
 0x231   : > { %v1072_v8 = vmul.f32 %v1071_v45, %v4825_v49  ;;  %v1528_v51 = vmul.f32 %v1527_v27, %v1525_v13  ;;  %v2395_v20 = vmul.u32 %v2393_v61, %v2391_v23  ;;  %v2399_v15 = vshll.u32 %v2396_v47, 16 }
 0x232   : > { %vm3130_vm14 = vcmp.lt.s32.totalorder %v3129_v2, 0  ;;  %v2358_v35 = vshrl.u32 %v6013_v4, %v6023_v52  ;;  %v2418_v38 = vmul.u32 %v2416_v48, %v2391_v23  ;;  %v2419_v50 = vmul.u32 %v2415_v53, %v2392_v5 }
 0x233   : > { %v2398_v1 = vmul.u32 %v2394_v46, %v2392_v5  ;;  %v2401_v63 = vshll.u32 %v2397_v28, 16  ;;  %vm2403_vm3 = vc.u32 %v2395_v20, %v2399_v15  ;;  %v2405_v17 = vadd.s32 %v2399_v15, %v2395_v20 }
 0x234   : > { %v4998_v44 = vshrl.u32 %v1816_v10, 30  ;;  %v2404_v18 = vsel %vm2403_vm3, 1, %v6006_v56  ;;  %v2417_v62 = vmul.u32 %v2415_v53, %v2391_v23  ;;  %v2421_v34 = vshll.u32 %v2418_v38, 16 }
 0x235   : > { %vm1409_vm9 = vcmp.lt.s32.totalorder %v4366_v7, 0  ;;  %v2379_v45 = vsel %vm2377_vm13, %v4932_v41, 2102212464  ;;  %v2406_v13 = vadd.s32 %v2404_v18, %v2398_v1  ;;  %vm2407_vm10 = vc.u32 %v2405_v17, %v2401_v63 }
 0x236   : > { %v2420_v52 = vmul.u32 %v2416_v48, %v2392_v5  ;;  %v2408_v61 = vsel %vm2407_vm10, 1, %v6006_v56  ;;  %v2423_v46 = vshll.u32 %v2419_v50, 16  ;;  %vm2425_vm0 = vc.u32 %v2417_v62, %v2421_v34 }
 0x237   : > { %v2427_v27 = vadd.s32 %v2421_v34, %v2417_v62  ;;  %v3143_v10 = vadd.s32 4294967169, %v2656_v9  ;;  %v2400_v20 = vshrl.u32 %v2396_v47, 16  ;;  %v2410_v15 = vadd.s32 %v2408_v61, %v2406_v13 }
 0x238   : > { %v2426_v23 = vsel %vm2425_vm0, 1, %v6006_v56  ;;  %v5008_v53 = vsel %vm3130_vm14, 0, %v3129_v2  ;;  %v1818_v36 = vshll.u32 %v4998_v44, 30  ;;  %v1079_v41 = vmul.f32 %v1078_v40, %v4825_v49 }
 0x239   : > { %v2428_v3 = vadd.s32 %v2426_v23, %v2420_v52  ;;  %vm2429_vm11 = vc.u32 %v2427_v27, %v2423_v46  ;;  %v2378_v5 = vsel %vm2374_vm4, %v2358_v35, %v4926_v22  ;;  %v2380_v48 = vsel %vm2376_vm8, %v4928_v12, %v2379_v45 }
 0x23a   : > { %v2411_v47 = vadd.s32 %v2410_v15, %v2400_v20  ;;  %v1529_v9 = vxor.u32 2147483648, %v1528_v51  ;;  %v5019_v1 = vshrl.u32 %v4865_v32, 5  ;;  %v2402_v2 = vshrl.u32 %v2397_v28, 16 }
 0x23b   : > { %v2430_v63 = vsel %vm2429_vm11, 1, %v6006_v56  ;;  %v5023_v17 = vsub.s32 32, %v4992_v57  ;;  %v1986_v49 = vsub.s32 4294967266, %v5008_v53  ;;  %v2422_v40 = vshrl.u32 %v2418_v38, 16 }
 0x23c   : > { %v2432_v18 = vadd.s32 %v2430_v63, %v2428_v3  ;;  %v6026_v22 = vand.u32 2147483647, %v4366_v7  ;;  %v6027_v35 = vmov 0  ;;  %v2662_v12 = vadd.s32 1, %v3143_v10 }
 0x23d   : > { %v5033_v32 = vsub.s32 %v4975_v54, %v1818_v36  ;;  %v2381_v28 = vsel %vm2375_vm15, %v2378_v5, %v2380_v48  ;;  %v5037_v62 = vadd.s32 %v2411_v47, %v2402_v2  ;;  %v5039_v34 = vadd.f32 1.0, %v1072_v8 }
 0x23e   : > { %vm5028_vm2 = vcmp.le.f32.partialorder %v6026_v22, 0.7853982  ;;  %v5041_v45 = vadd.f32 1.0, %v1079_v41  ;;  %v2424_v3 = vshrl.u32 %v2419_v50, 16  ;;  %v2433_v38 = vadd.s32 %v2432_v18, %v2422_v40 }
 0x23f   : > { %v6028_v35 = vsel %vm5028_vm2, 4294967295, %v6027_v35  ;;  %v1530_v13 = vsel %vm1409_vm9, %v1529_v9, %v1528_v51  ;;  %v1531_v52 = vsub.s32 4, %v4705_v11  ;;  %v5048_v36 = vadd.f32 %v4174_v58, %v4708_v55 }
 0x240   : > { %6029 = vst [vmem:[#allocation7_spill] sm:$0xff] %v6028_v35  ;;  %v5050_v54 = vadd.s32 %v2427_v27, %v2423_v46  ;;  %v1987_v33 = vadd.s32 127, %v1986_v49  ;;  %v2434_v61 = vadd.s32 %v2433_v38, %v2424_v3  ;;  %v2435_v8 = vmul.u32 %v4952_v29, %v2381_v28 }
 0x241   : > { %6030 = vst [vmem:[#allocation11_spill] sm:$0xff] %v5048_v36  ;;  %v5953_v10 = vand.u32 2147483647, %v4678_v6  ;;  %vm2663_vm12 = vcmp.gt.s32.totalorder %v2662_v12, 0  ;;  %vm1820_vm1 = vcmp.lt.s32.totalorder %v5033_v32, 0  ;;  %v1821_v50 = vsub.s32 0, %v5033_v32 }
 0x242   : > { %vm2437_vm4 = vc.u32 %v5037_v62, %v5050_v54  ;;  %v2204_v51 = vshll.u32 %v6013_v4, %v4992_v57  ;;  %v2438_v20 = vadd.s32 1, %v2434_v61  ;;  %v2205_v46 = vshrl.u32 %v6002_v43, %v5023_v17 }
 0x243   : > { %v2207_v29 = vshll.u32 %v6002_v43, %v4992_v57  ;;  %v2208_v27 = vshrl.u32 %v5985_v37, %v5023_v17  ;;  %v2210_v15 = vshll.u32 %v5985_v37, %v4992_v57  ;;  %v2211_v23 = vshrl.u32 %v5986_v31, %v5023_v17 }
 0x244   : > { %v2213_v41 = vshll.u32 %v5986_v31, %v4992_v57  ;;  %v2214_v5 = vshrl.u32 %v5987_v60, %v5023_v17  ;;  %v1982_v48 = vsub.s32 32, %v5008_v53  ;;  %v2439_v47 = vsel %vm2437_vm4, %v2438_v20, %v2434_v61 }
 0x245   : > { %v2194_v9 = vand.u32 8388607, %v5953_v10  ;;  %v2216_v2 = vshll.u32 %v5987_v60, %v4992_v57  ;;  %v1966_v63 = vadd.s32 %v4745_v59, %v4736_v24  ;;  %v2440_v49 = vadd.s32 %v2439_v47, %v2435_v8 }
 0x246   : > { %v2215_v40 = vor.u32 %v2214_v5, %v2213_v41  ;;  %v2217_v18 = vshrl.u32 %v5988_v25, %v5023_v17  ;;  %v5086_v22 = vsel %vm5028_vm2, %v4366_v7, %v1530_v13  ;;  %v1988_v28 = vshll.u32 %v1987_v33, 23 }
 0x247   : > { %6031 = vst [vmem:[#allocation13_spill] sm:$0xff] %v5086_v22  ;;  %v1822_v3 = vsel %vm1820_vm1, %v1821_v50, %v5033_v32  ;;  %v5091_v38 = vor.u32 %v2205_v46, %v2204_v51  ;;  %v2441_v57 = vadd.s32 536870912, %v2440_v49  ;;  %v5093_v61 = vor.u32 %v2208_v27, %v2207_v29 }
 0x248   : > { %v5095_v24 = vor.u32 %v2211_v23, %v2210_v15  ;;  %vm2222_vm6 = vcmp.lt.s32.totalorder %v5019_v1, 4  ;;  %v1984_v59 = vshrl.u32 %v1966_v63, %v1982_v48  ;;  %v2195_v8 = vor.u32 8388608, %v2194_v9 }
 0x249   : > { %v2218_v20 = vor.u32 %v2217_v18, %v2216_v2  ;;  %v2228_v13 = vsel %vm2222_vm6, %v2215_v40, 920167782  ;;  %v5102_v33 = vmul.f32 %v5086_v22, %v5086_v22  ;;  %v1983_v50 = vshll.u32 %v4887_v0, %v5008_v53 }
 0x24a   : > { %v2500_v51 = vand.u32 2139095040, %v5048_v36  ;;  %v5107_v46 = vshrl.u32 %v2441_v57, 30  ;;  %v1989_v29 = vor.u32 4788187, %v1988_v28  ;;  %v1823_v27 = vclz %v1822_v3 }
 0x24b   : > { %vm2219_vm7 = vcmp.lt.s32.totalorder %v5019_v1, 1  ;;  %vm2221_vm8 = vcmp.lt.s32.totalorder %v5019_v1, 3  ;;  %v1985_v41 = vor.u32 %v1984_v59, %v1983_v50  ;;  %v2664_v5 = vsel %vm2663_vm12, %v2662_v12, 0 }
 0x24c   : > { %v2443_v15 = vshll.u32 %v5107_v46, 30  ;;  %v2227_v23 = vsel %vm2219_vm7, %v5091_v38, %v5093_v61  ;;  %v2229_v0 = vsel %vm2221_vm8, %v5095_v24, %v2228_v13  ;;  %v2231_v53 = vsel %vm2219_vm7, %v5093_v61, %v5095_v24 }
 0x24d   : > { %v2232_v48 = vsel %vm2222_vm6, %v2218_v20, 1326507024  ;;  %v5126_v47 = vshll.u32 %v2195_v8, 8  ;;  %v1543_v9 = vmul.f32 -0.00019511016, %v5102_v33  ;;  %vm2220_vm13 = vcmp.lt.s32.totalorder %v5019_v1, 2 }
 0x24e   : > { %v5129_v2 = vsub.s32 %v2440_v49, %v2443_v15  ;;  %v2233_v63 = vsel %vm2221_vm8, %v2215_v40, %v2232_v48  ;;  %v1990_v18 = vand.u32 2147483647, %v1989_v29  ;;  %v3126_v28 = vadd.s32 4294967294, %v1823_v27 }
 0x24f   : > { %v2230_v3 = vsel %vm2220_vm13, %v2227_v23, %v2229_v0  ;;  %v2234_v12 = vsel %vm2220_vm13, %v2231_v53, %v2233_v63  ;;  %v5140_v57 = vmul.f32 %v5041_v45, %v4803_v26  ;;  %v2501_v59 = vshrl.u32 %v2500_v51, 23 }
 0x250   : > { %vm2445_vm15 = vcmp.lt.s32.totalorder %v5129_v2, 0  ;;  %v2446_v49 = vsub.s32 0, %v5129_v2  ;;  %v1992_v8 = vcvt.s32.f32 %v1985_v41  ;;  %v2236_v40 = vand.u32 65535, %v5126_v47 }
 0x251   : > { %v2238_v20 = vand.u32 65535, %v2234_v12  ;;  %v2239_v13 = vshrl.u32 %v2234_v12, 16  ;;  %v1544_v50 = vadd.f32 0.008332121, %v1543_v9  ;;  %vm1874_vm14 = vcmp.lt.s32.totalorder %v4507_v14, 0 }
 0x252   : > { %v5146_v29 = vand.u32 31, %v2664_v5  ;;  %v2447_v27 = vsel %vm2445_vm15, %v2446_v49, %v5129_v2  ;;  %v2261_v15 = vshrl.u32 %v2230_v3, 16  ;;  %v1993_v26 = vmul.f32 %v1992_v8, %v1990_v18 }
 0x253   : > { %vm3127_vm3 = vcmp.lt.s32.totalorder %v3126_v28, 0  ;;  %v2237_v45 = vshrl.u32 %v5126_v47, 16  ;;  %v2241_v51 = vmul.u32 %v2239_v13, %v2236_v40  ;;  %v5151_v23 = vmul.f32 2.0, %v4989_v19 }
 0x254   : > { %v5159_v53 = vsel %vm1409_vm9, %v1531_v52, %v4705_v11  ;;  %v2448_v41 = vclz %v2447_v27  ;;  %v3140_v9 = vadd.s32 4294967169, %v2501_v59  ;;  %v2260_v18 = vand.u32 65535, %v2230_v3 }
 0x255   : > { %6032 = vst [vmem:[#allocation12_spill] sm:$0xff] %v5151_v23  ;;  %v2242_v63 = vmul.u32 %v2238_v20, %v2237_v45  ;;  %v1826_v12 = vsel %vm3127_vm3, 0, %v3126_v28  ;;  %v2240_v49 = vmul.u32 %v2238_v20, %v2236_v40  ;;  %v2244_v8 = vshll.u32 %v2241_v51, 16 }
 0x256   : > { %6033 = vst [vmem:[#allocation20_spill] sm:$0xff] %v5159_v53  ;;  %v2263_v19 = vmul.u32 %v2261_v15, %v2236_v40  ;;  %v1545_v10 = vmul.f32 %v1544_v50, %v5102_v33  ;;  %v6034_v0 = vand.u32 2147483647, %v4507_v14  ;;  %v6035_v23 = vmov 0 }
 0x257   : > { %v1994_v11 = vxor.u32 2147483648, %v1993_v26  ;;  %v5169_v52 = vshrl.u32 %v2664_v5, 5  ;;  %v5172_v27 = vsub.s32 32, %v5146_v29  ;;  %v3138_v59 = vadd.s32 4294967294, %v2448_v41 }
 0x258   : > { %vm5165_vm10 = vcmp.le.f32.partialorder %v6034_v0, 0.7853982  ;;  %v2246_v3 = vshll.u32 %v2242_v63, 16  ;;  %vm2248_vm9 = vc.u32 %v2240_v49, %v2244_v8  ;;  %v2250_v28 = vadd.s32 %v2244_v8, %v2240_v49 }
 0x259   : > { %v6036_v23 = vsel %vm5165_vm10, 4294967295, %v6035_v23  ;;  %v1831_v20 = vsub.s32 4294967266, %v1826_v12  ;;  %v2507_v48 = vadd.s32 1, %v3140_v9  ;;  %v2243_v58 = vmul.u32 %v2239_v13, %v2237_v45 }
 0x25a   : > { %6037 = vst [vmem:[#allocation21_spill] sm:$0xff] %v6036_v23  ;;  %v2262_v50 = vmul.u32 %v2260_v18, %v2236_v40  ;;  %v2249_v7 = vsel %vm2248_vm9, 1, %v6006_v56  ;;  %vm2252_vm0 = vc.u32 %v2250_v28, %v2246_v3  ;;  %v2264_v0 = vmul.u32 %v2260_v18, %v2237_v45 }
 0x25b   : > { %v2266_v22 = vshll.u32 %v2263_v19, 16  ;;  %v5175_v35 = vadd.f32 -0.16666654, %v1545_v10  ;;  %v1995_v5 = vsel %vm1874_vm14, %v1994_v11, %v1993_v26  ;;  %v2251_v53 = vadd.s32 %v2249_v7, %v2243_v58 }
 0x25c   : > { %v2253_v41 = vsel %vm2252_vm0, 1, %v6006_v56  ;;  %v1827_v6 = vsub.s32 32, %v1826_v12  ;;  %vm3139_vm11 = vcmp.lt.s32.totalorder %v3138_v59, 0  ;;  %v2265_v49 = vmul.u32 %v2261_v15, %v2237_v45 }
 0x25d   : > { %vm2270_vm12 = vc.u32 %v2262_v50, %v2266_v22  ;;  %v1832_v9 = vadd.s32 127, %v1831_v20  ;;  %v2245_v13 = vshrl.u32 %v2241_v51, 16  ;;  %v2255_v40 = vadd.s32 %v2253_v41, %v2251_v53 }
 0x25e   : > { %v2271_v8 = vsel %vm2270_vm12, 1, %v6006_v56  ;;  %vm2508_vm1 = vcmp.gt.s32.totalorder %v2507_v48, 0  ;;  %v2268_v18 = vshll.u32 %v2264_v0, 16  ;;  %v2272_v3 = vadd.s32 %v2266_v22, %v2262_v50 }
 0x25f   : > { %v2273_v10 = vadd.s32 %v2271_v8, %v2265_v49  ;;  %v1811_v28 = vadd.s32 %v4918_v21, %v4912_v39  ;;  %v5183_v26 = vsel %vm3139_vm11, 0, %v3138_v59  ;;  %v2203_v58 = vshrl.u32 %v6013_v4, %v5023_v17 }
 0x260   : > { %v2256_v7 = vadd.s32 %v2255_v40, %v2245_v13  ;;  %v5190_v15 = vsel %vm5165_vm10, %v4507_v14, %v1995_v5  ;;  %v2224_v45 = vsel %vm2222_vm6, %v5095_v24, 2102212464  ;;  %v2247_v22 = vshrl.u32 %v2242_v63, 16 }
 0x261   : > { %vm2274_vm4 = vc.u32 %v2272_v3, %v2268_v18  ;;  %v1829_v51 = vshrl.u32 %v1811_v28, %v1827_v6  ;;  %v1833_v53 = vshll.u32 %v1832_v9, 23  ;;  %v5195_v39 = vsel %vm2508_vm1, %v2507_v48, 0 }
 0x262   : > { %v2275_v21 = vsel %vm2274_vm4, 1, %v6006_v56  ;;  %v2456_v17 = vsub.s32 4294967266, %v5183_v26  ;;  %v5199_v11 = vadd.s32 %v2256_v7, %v2247_v22  ;;  %v2267_v59 = vshrl.u32 %v2263_v19, 16 }
 0x263   : > { %v2277_v20 = vadd.s32 %v2275_v21, %v2273_v10  ;;  %v5203_v50 = vmul.f32 %v5190_v15, %v5190_v15  ;;  %v1828_v24 = vshll.u32 %v5033_v32, %v1826_v12  ;;  %v2223_v6 = vsel %vm2219_vm7, %v2203_v58, %v5091_v38 }
 0x264   : > { %v2225_v48 = vsel %vm2221_vm8, %v5093_v61, %v2224_v45  ;;  %v2269_v63 = vshrl.u32 %v2264_v0, 16  ;;  %v5212_v5 = vadd.s32 %v2272_v3, %v2268_v18  ;;  %v5963_v19 = vand.u32 2147483647, %v4877_v42 }
 0x265   : > { %6038 = vst [vmem:[#allocation22_spill] sm:$0xff] %v5203_v50  ;;  %v2278_v41 = vadd.s32 %v2277_v20, %v2267_v59  ;;  %v1830_v49 = vor.u32 %v1829_v51, %v1828_v24  ;;  %v1834_v9 = vor.u32 4788187, %v1833_v53  ;;  %v2436_v13 = vadd.s32 %v5050_v54, %v5037_v62 }
 0x266   : > { %v2452_v32 = vsub.s32 32, %v5183_v26  ;;  %v2457_v12 = vadd.s32 127, %v2456_v17  ;;  %v2226_v38 = vsel %vm2220_vm13, %v2223_v6, %v2225_v48  ;;  %vm2282_vm6 = vc.u32 %v5199_v11, %v5212_v5 }
 0x267   : > { %v2279_v40 = vadd.s32 %v2278_v41, %v2269_v63  ;;  %vm1085_vm7 = vcmp.eq.s32.totalorder %v4984_v30, 0  ;;  %vm1088_vm8 = vcmp.eq.s32.totalorder %v4984_v30, 2  ;;  %v2672_v61 = vshll.u32 %v6002_v43, %v5146_v29 }
 0x268   : > { %v2673_v62 = vshrl.u32 %v5985_v37, %v5172_v27  ;;  %v2675_v54 = vshll.u32 %v5985_v37, %v5146_v29  ;;  %v2676_v1 = vshrl.u32 %v5986_v31, %v5172_v27  ;;  %v2659_v8 = vand.u32 8388607, %v5963_v19 }
 0x269   : > { %v2283_v0 = vadd.s32 1, %v2279_v40  ;;  %v2678_v18 = vshll.u32 %v5986_v31, %v5146_v29  ;;  %v2679_v3 = vshrl.u32 %v5987_v60, %v5172_v27  ;;  %v2454_v10 = vshrl.u32 %v2436_v13, %v2452_v32 }
 0x26a   : > { %v2280_v28 = vmul.u32 %v5126_v47, %v2226_v38  ;;  %v2681_v58 = vshll.u32 %v5987_v60, %v5146_v29  ;;  %v2682_v7 = vshrl.u32 %v5988_v25, %v5172_v27  ;;  %v2458_v45 = vshll.u32 %v2457_v12, 23 }
 0x26b   : > { %v2284_v22 = vsel %vm2282_vm6, %v2283_v0, %v2279_v40  ;;  %v2669_v51 = vshll.u32 %v6013_v4, %v5146_v29  ;;  %v2670_v53 = vshrl.u32 %v6002_v43, %v5172_v27  ;;  %v5250_v17 = vor.u32 %v2673_v62, %v2672_v61 }
 0x26c   : > { %v2285_v21 = vadd.s32 %v2284_v22, %v2280_v28  ;;  %v5252_v47 = vor.u32 %v2676_v1, %v2675_v54  ;;  %v2683_v59 = vor.u32 %v2682_v7, %v2681_v58  ;;  %v2008_v20 = vmul.f32 -0.00019511016, %v5203_v50 }
 0x26d   : > { %v2453_v24 = vshll.u32 %v5129_v2, %v5183_v26  ;;  %v2660_v6 = vor.u32 8388608, %v2659_v8  ;;  %v2680_v48 = vor.u32 %v2679_v3, %v2678_v18  ;;  %vm1084_vm13 = vcmp.lt.s32.totalorder %v4984_v30, 2 }
 0x26e   : > { %v1835_v63 = vand.u32 2147483647, %v1834_v9  ;;  %v1837_v29 = vcvt.s32.f32 %v1830_v49  ;;  %v2286_v41 = vadd.s32 536870912, %v2285_v21  ;;  %vm2687_vm15 = vcmp.lt.s32.totalorder %v5169_v52, 4 }
 0x26f   : > { %v2455_v13 = vor.u32 %v2454_v10, %v2453_v24  ;;  %v2459_v32 = vor.u32 4788187, %v2458_v45  ;;  %vm2684_vm3 = vcmp.lt.s32.totalorder %v5169_v52, 1  ;;  %v2697_v12 = vsel %vm2687_vm15, %v2683_v59, 1326507024 }
 0x270   : > { %v5262_v38 = vshrl.u32 %v2286_v41, 30  ;;  %v5264_v40 = vor.u32 %v2670_v53, %v2669_v51  ;;  %vm2686_vm9 = vcmp.lt.s32.totalorder %v5169_v52, 3  ;;  %v2696_v2 = vsel %vm2684_vm3, %v5250_v17, %v5252_v47 }
 0x271   : > { %v6039_v26 = vxor.u32 2147483648, %v5140_v57  ;;  %v6040_v9 = vxor.u32 2147483648, %v5039_v34  ;;  %vm1719_vm0 = vcmp.lt.s32.totalorder %v4708_v55, 0  ;;  %v2698_v62 = vsel %vm2686_vm9, %v2680_v48, %v2697_v12 }
 0x272   : > { %v5284_v54 = vshll.u32 %v2660_v6, 8  ;;  %v1838_v1 = vmul.f32 %v1837_v29, %v1835_v63  ;;  %v2288_v0 = vshll.u32 %v5262_v38, 30  ;;  %vm2685_vm11 = vcmp.lt.s32.totalorder %v5169_v52, 2  ;;  %v6046_v29 = vld [vmem:[#allocation19_spill] sm:$0xff] }
 0x273   : > { %v1087_v49 = vsel %vm1085_vm7, %v5039_v34, %v6039_v26  ;;  %v1090_v61 = vsel %vm1088_vm8, %v6040_v9, %v5140_v57  ;;  %v2693_v8 = vsel %vm2687_vm15, %v2680_v48, 920167782  ;;  %v1547_v34 = vmul.f32 %v5175_v35, %v5102_v33 }
 0x274   : > { %v5293_v57 = vand.u32 31, %v5195_v39  ;;  %v2460_v18 = vand.u32 2147483647, %v2459_v32  ;;  %v2699_v3 = vsel %vm2685_vm11, %v2696_v2, %v2698_v62  ;;  %v2009_v10 = vadd.f32 0.008332121, %v2008_v20 }
 0x275   : > { %v2462_v28 = vcvt.s32.f32 %v2455_v13  ;;  %v5297_v58 = vsub.s32 %v2285_v21, %v2288_v0  ;;  %v2692_v7 = vsel %vm2684_vm3, %v5264_v40, %v5250_v17  ;;  %v2694_v35 = vsel %vm2686_vm9, %v5252_v47, %v2693_v8 }
 0x276   : > { %v2701_v45 = vand.u32 65535, %v5284_v54  ;;  %v2703_v22 = vand.u32 65535, %v2699_v3  ;;  %v2704_v51 = vshrl.u32 %v2699_v3, 16  ;;  %v6041_v53 = vand.u32 2147483647, %v4708_v55 }
 0x277   : > { %v6042_v59 = vmov 0  ;;  %v1839_v21 = vxor.u32 2147483648, %v1838_v1  ;;  %vm2290_vm1 = vcmp.lt.s32.totalorder %v5297_v58, 0  ;;  %v2291_v20 = vsub.s32 0, %v5297_v58 }
 0x278   : > { %vm5309_vm12 = vcmp.le.f32.partialorder %v6041_v53, 0.7853982  ;;  %v2702_v24 = vshrl.u32 %v5284_v54, 16  ;;  %v5318_v6 = vsel %vm1084_vm13, %v1087_v49, %v1090_v61  ;;  %vm2344_vm4 = vcmp.lt.s32.totalorder %v6021_v16, 0 }
 0x279   : > { %v6043_v59 = vsel %vm5309_vm12, 4294967295, %v6042_v59  ;;  %6045 = vst [vmem:[#allocation24_spill] sm:$0xff] %v5318_v6  ;;  %v2463_v48 = vmul.f32 %v2462_v28, %v2460_v18  ;;  %v2706_v63 = vmul.u32 %v2704_v51, %v2701_v45  ;;  %v2292_v13 = vsel %vm2290_vm1, %v2291_v20, %v5297_v58 }
 0x27a   : > { %6044 = vst [vmem:[#allocation23_spill] sm:$0xff] %v6043_v59  ;;  %v2695_v32 = vsel %vm2685_vm11, %v2692_v7, %v2694_v35  ;;  %v2707_v12 = vmul.u32 %v2703_v22, %v2702_v24  ;;  %v5325_v2 = vadd.f32 1.0, %v1547_v34  ;;  %v2010_v26 = vmul.f32 %v2009_v10, %v5203_v50 }
 0x27b   : > { %v6047_v30 = vand.u32 2147483647, %v6021_v16  ;;  %v2293_v9 = vclz %v2292_v13  ;;  %v2709_v61 = vshll.u32 %v2706_v63, 16  ;;  %v1840_v62 = vsel %vm1719_vm0, %v1839_v21, %v1838_v1  ;;  %v6050_v1 = vld [vmem:[#allocation14_spill] sm:$0xff] }
 0x27c   : > { %v5337_v0 = vshrl.u32 %v5195_v39, 5  ;;  %v5340_v8 = vsub.s32 32, %v5293_v57  ;;  %v2705_v34 = vmul.u32 %v2703_v22, %v2701_v45  ;;  %v2464_v18 = vxor.u32 2147483648, %v2463_v48 }
 0x27d   : > { %vm5330_vm6 = vcmp.le.f32.partialorder %v6047_v30, 0.7853982  ;;  %v3135_v3 = vadd.s32 4294967294, %v2293_v9  ;;  %v2708_v10 = vmul.u32 %v2704_v51, %v2702_v24  ;;  %v2725_v28 = vand.u32 65535, %v2695_v32 }
 0x27e   : > { %v2711_v7 = vshll.u32 %v2707_v12, 16  ;;  %vm2713_vm7 = vc.u32 %v2705_v34, %v2709_v61  ;;  %v2715_v35 = vadd.s32 %v2709_v61, %v2705_v34  ;;  %v2726_v53 = vshrl.u32 %v2695_v32, 16 }
 0x27f   : > { %v5342_v20 = vadd.f32 -0.16666654, %v2010_v26  ;;  %vm3136_vm8 = vcmp.lt.s32.totalorder %v3135_v3, 0  ;;  %v2714_v39 = vsel %vm2713_vm7, 1, %v6006_v56  ;;  %v5352_v51 = vsel %vm5309_vm12, %v4708_v55, %v1840_v62 }
 0x280   : > { %v2296_v22 = vsel %vm3136_vm8, 0, %v3135_v3  ;;  %v2716_v41 = vadd.s32 %v2714_v39, %v2708_v10  ;;  %vm2717_vm13 = vc.u32 %v2715_v35, %v2711_v7  ;;  %6052 = vst [vmem:[#allocation19_spill] sm:$0xff] %v5352_v51  ;;  %v2465_v32 = vsel %vm2344_vm4, %v2464_v18, %v2463_v48 }
 0x281   : > { %v2281_v26 = vadd.s32 %v5212_v5, %v5199_v11  ;;  %v2297_v9 = vsub.s32 32, %v2296_v22  ;;  %v2301_v61 = vsub.s32 4294967266, %v2296_v22  ;;  %v2718_v34 = vsel %vm2717_vm13, 1, %v6006_v56 }
 0x282   : > { %v2728_v13 = vmul.u32 %v2726_v53, %v2701_v45  ;;  %v2729_v19 = vmul.u32 %v2725_v28, %v2702_v24  ;;  %v2668_v10 = vshrl.u32 %v6013_v4, %v5172_v27  ;;  %v2710_v7 = vshrl.u32 %v2706_v63, 16 }
 0x283   : > { %v2299_v3 = vshrl.u32 %v2281_v26, %v2297_v9  ;;  %v2720_v35 = vadd.s32 %v2718_v34, %v2716_v41  ;;  %v5364_v62 = vsel %vm5330_vm6, %v6021_v16, %v2465_v32  ;;  %v2302_v48 = vadd.s32 127, %v2301_v61 }
 0x284   : > { %v2727_v18 = vmul.u32 %v2725_v28, %v2701_v45  ;;  %v2731_v11 = vshll.u32 %v2728_v13, 16  ;;  %v2298_v5 = vshll.u32 %v5297_v58, %v2296_v22  ;;  %v2689_v39 = vsel %vm2687_vm15, %v5252_v47, 2102212464  ;;  %v6053_v28 = vld [vmem:[#allocation10_spill] sm:$0xff] }
 0x285   : > { %v2721_v26 = vadd.s32 %v2720_v35, %v2710_v7  ;;  %v2730_v9 = vmul.u32 %v2726_v53, %v2702_v24  ;;  %v2303_v30 = vshll.u32 %v2302_v48, 23  ;;  %v2733_v27 = vshll.u32 %v2729_v19, 16 }
 0x286   : > { %vm2735_vm1 = vc.u32 %v2727_v18, %v2731_v11  ;;  %v2737_v63 = vadd.s32 %v2731_v11, %v2727_v18  ;;  %v5372_v41 = vmul.f32 %v5364_v62, %v5364_v62  ;;  %v2300_v32 = vor.u32 %v2299_v3, %v2298_v5 }
 0x287   : > { %v2712_v61 = vshrl.u32 %v2707_v12, 16  ;;  %v2736_v45 = vsel %vm2735_vm1, 1, %v6006_v56  ;;  %v1691_v58 = vmul.f32 -0.001358992, %v6053_v28  ;;  %v2304_v22 = vor.u32 4788187, %v2303_v30 }
 0x288   : > { %v2738_v34 = vadd.s32 %v2736_v45, %v2730_v9  ;;  %vm2739_vm7 = vc.u32 %v2737_v63, %v2733_v27  ;;  %v2688_v47 = vsel %vm2684_vm3, %v2668_v10, %v5264_v40  ;;  %v2690_v24 = vsel %vm2686_vm9, %v5250_v17, %v2689_v39  ;;  %v6054_v10 = vld [vmem:[#allocation17_spill] sm:$0xff] }
 0x289   : > { %v5382_v53 = vadd.s32 %v2721_v26, %v2712_v61  ;;  %v2740_v3 = vsel %vm2739_vm7, 1, %v6006_v56  ;;  %v2305_v12 = vand.u32 2147483647, %v2304_v22  ;;  %v2732_v7 = vshrl.u32 %v2728_v13, 16 }
 0x28a   : > { %v2742_v35 = vadd.s32 %v2740_v3, %v2738_v34  ;;  %v5964_v48 = vand.u32 2147483647, %v5048_v36  ;;  %v2466_v30 = vsub.s32 4, %v5107_v46  ;;  %v2471_v18 = vmul.f32 -0.001358992, %v5372_v41 }
 0x28b   : > { %v2307_v11 = vcvt.s32.f32 %v2300_v32  ;;  %v5388_v5 = vadd.s32 %v2737_v63, %v2733_v27  ;;  %v2478_v40 = vmul.f32 -0.00019511016, %v5372_v41  ;;  %vm2189_vm15 = vcmp.lt.s32.totalorder %v6054_v10, 0 }
 0x28c   : > { %v2691_v17 = vsel %vm2685_vm11, %v2688_v47, %v2690_v24  ;;  %v2734_v39 = vshrl.u32 %v2729_v19, 16  ;;  %v2743_v26 = vadd.s32 %v2742_v35, %v2732_v7  ;;  %v2518_v9 = vshrl.u32 %v5985_v37, %v5340_v8 }
 0x28d   : > { %v2308_v13 = vmul.f32 %v2307_v11, %v2305_v12  ;;  %vm2747_vm3 = vc.u32 %v5382_v53, %v5388_v5  ;;  %v2521_v27 = vshrl.u32 %v5986_v31, %v5340_v8  ;;  %v2504_v32 = vand.u32 8388607, %v5964_v48 }
 0x28e   : > { %v2744_v63 = vadd.s32 %v2743_v26, %v2734_v39  ;;  %v2515_v52 = vshrl.u32 %v6002_v43, %v5340_v8  ;;  %v2517_v19 = vshll.u32 %v6002_v43, %v5293_v57  ;;  %v6055_v61 = vand.u32 2147483647, %v6054_v10 }
 0x28f   : > { %v2520_v22 = vshll.u32 %v5985_v37, %v5293_v57  ;;  %v2523_v34 = vshll.u32 %v5986_v31, %v5293_v57  ;;  %v2524_v47 = vshrl.u32 %v5987_v60, %v5340_v8  ;;  %v2527_v24 = vshrl.u32 %v5988_v25, %v5340_v8 }
 0x290   : > { %vm5408_vm9 = vcmp.le.f32.partialorder %v6055_v61, 0.7853982  ;;  %v2745_v43 = vmul.u32 %v5284_v54, %v2691_v17  ;;  %v2748_v3 = vadd.s32 1, %v2744_v63  ;;  %v2514_v12 = vshll.u32 %v6013_v4, %v5293_v57 }
 0x291   : > { %v2526_v7 = vshll.u32 %v5987_v60, %v5293_v57  ;;  %v2309_v35 = vxor.u32 2147483648, %v2308_v13  ;;  %v5425_v37 = vor.u32 %v2518_v9, %v2517_v19  ;;  %v5427_v11 = vor.u32 %v2521_v27, %v2520_v22 }
 0x292   : > { %v2525_v31 = vor.u32 %v2524_v47, %v2523_v34  ;;  %v2749_v39 = vsel %vm2747_vm3, %v2748_v3, %v2744_v63  ;;  %v5432_v25 = vor.u32 %v2515_v52, %v2514_v12  ;;  %vm2532_vm11 = vcmp.lt.s32.totalorder %v5337_v0, 4 }
 0x293   : > { %v2528_v54 = vor.u32 %v2527_v24, %v2526_v7  ;;  %v5437_v17 = vmul.f32 %v5352_v51, %v5352_v51  ;;  %v2750_v60 = vadd.s32 %v2749_v39, %v2745_v43  ;;  %v2505_v57 = vor.u32 8388608, %v2504_v32 }
 0x294   : > { %v2538_v26 = vsel %vm2532_vm11, %v2525_v31, 920167782  ;;  %v2467_v9 = vsel %vm2344_vm4, %v2466_v30, %v5107_v46  ;;  %v2479_v27 = vadd.f32 0.008332121, %v2478_v40  ;;  %v1692_v63 = vadd.f32 0.041655596, %v1691_v58 }
 0x295   : > { %vm2529_vm8 = vcmp.lt.s32.totalorder %v5337_v0, 1  ;;  %v2310_v52 = vsel %vm2189_vm15, %v2309_v35, %v2308_v13  ;;  %v2751_v19 = vadd.s32 536870912, %v2750_v60  ;;  %vm2531_vm13 = vcmp.lt.s32.totalorder %v5337_v0, 3 }
 0x296   : > { %v2541_v32 = vsel %vm2529_vm8, %v5425_v37, %v5427_v11  ;;  %v2472_v61 = vadd.f32 0.041655596, %v2471_v18  ;;  %v2537_v46 = vsel %vm2529_vm8, %v5432_v25, %v5425_v37  ;;  %v2539_v58 = vsel %vm2531_vm13, %v5427_v11, %v2538_v26 }
 0x297   : > { %v2542_v30 = vsel %vm2532_vm11, %v2528_v54, 1326507024  ;;  %v5461_v40 = vshrl.u32 %v2751_v19, 30  ;;  %vm2530_vm4 = vcmp.lt.s32.totalorder %v5337_v0, 2  ;;  %v5466_v18 = vshll.u32 %v2505_v57, 8 }
 0x298   : > { %v2543_v13 = vsel %vm2531_vm13, %v2525_v31, %v2542_v30  ;;  %v1853_v22 = vmul.f32 -0.00019511016, %v5437_v17  ;;  %v2480_v34 = vmul.f32 %v2479_v27, %v5372_v41  ;;  %v5473_v47 = vsel %vm5408_vm9, %v6054_v10, %v2310_v52 }
 0x299   : > { %v2544_v24 = vsel %vm2530_vm4, %v2541_v32, %v2543_v13  ;;  %v2012_v43 = vmul.f32 %v5342_v20, %v5203_v50  ;;  %v2469_v3 = vsel %vm5330_vm6, 0, %v2467_v9  ;;  %v2753_v12 = vshll.u32 %v5461_v40, 30 }
 0x29a   : > { %v2540_v7 = vsel %vm2530_vm4, %v2537_v46, %v2539_v58  ;;  %v2473_v35 = vmul.f32 %v2472_v61, %v5372_v41  ;;  %v1693_v31 = vmul.f32 %v1692_v63, %v6053_v28  ;;  %v6058_v39 = vsel %vm4370_vm5, 0, %v6050_v1 }
 0x29b   : > { %v1706_v54 = vadd.s32 3, %v6058_v39  ;;  %v2549_v57 = vshrl.u32 %v2544_v24, 16  ;;  %v5492_v20 = vmul.f32 %v5473_v47, %v5473_v47  ;;  %v2754_v49 = vsub.s32 %v2750_v60, %v2753_v12 }
 0x29c   : > { %v2546_v26 = vand.u32 65535, %v5466_v18  ;;  %v2548_v9 = vand.u32 65535, %v2544_v24  ;;  %v1854_v27 = vadd.f32 0.008332121, %v1853_v22  ;;  %v2481_v52 = vadd.f32 -0.16666654, %v2480_v34 }
 0x29d   : > { %v2486_v19 = vadd.s32 3, %v2469_v3  ;;  %v2571_v32 = vshrl.u32 %v2540_v7, 16  ;;  %vm2755_vm6 = vcmp.lt.s32.totalorder %v2754_v49, 0  ;;  %v2756_v63 = vsub.s32 0, %v2754_v49 }
 0x29e   : > { %v2547_v21 = vshrl.u32 %v5466_v18, 16  ;;  %v2551_v61 = vmul.u32 %v2549_v57, %v2546_v26  ;;  %v5496_v1 = vadd.f32 1.0, %v2012_v43  ;;  %v2474_v46 = vadd.f32 -0.4999988, %v2473_v35 }
 0x29f   : > { %v5498_v58 = vadd.f32 -0.4999988, %v1693_v31  ;;  %v5500_v30 = vand.u32 3, %v1706_v54  ;;  %v2323_v60 = vmul.f32 -0.00019511016, %v5492_v20  ;;  %v2757_v13 = vsel %vm2755_vm6, %v2756_v63, %v2754_v49 }
 0x2a0   : > { %6059 = vst [vmem:[#allocation14_spill] sm:$0xff] %v5496_v1  ;;  %v2552_v24 = vmul.u32 %v2548_v9, %v2547_v21  ;;  %v2554_v22 = vshll.u32 %v2551_v61, 16  ;;  %v5504_v34 = vmul.f32 %v1854_v27, %v5437_v17  ;;  %v2482_v3 = vmul.f32 %v2481_v52, %v5372_v41 }
 0x2a1   : > { %v2758_v12 = vclz %v2757_v13  ;;  %v2550_v39 = vmul.u32 %v2548_v9, %v2546_v26  ;;  %v5507_v48 = vand.u32 3, %v2486_v19  ;;  %v2570_v35 = vand.u32 65535, %v2540_v7 }
 0x2a2   : > { %v2573_v31 = vmul.u32 %v2571_v32, %v2546_v26  ;;  %v2475_v54 = vmul.f32 %v2474_v46, %v5372_v41  ;;  %v2553_v59 = vmul.u32 %v2549_v57, %v2547_v21  ;;  %v2324_v63 = vadd.f32 0.008332121, %v2323_v60 }
 0x2a3   : > { %v3144_v6 = vadd.s32 4294967294, %v2758_v12  ;;  %vm2558_vm5 = vc.u32 %v2550_v39, %v2554_v22  ;;  %v2556_v50 = vshll.u32 %v2552_v24, 16  ;;  %v2560_v36 = vadd.s32 %v2554_v22, %v2550_v39 }
 0x2a4   : > { %v2559_v27 = vsel %vm2558_vm5, 1, %v6006_v56  ;;  %v2483_v23 = vadd.f32 1.0, %v2482_v3  ;;  %v2513_v9 = vshrl.u32 %v6013_v4, %v5340_v8  ;;  %v2574_v7 = vmul.u32 %v2570_v35, %v2547_v21 }
 0x2a5   : > { %vm3145_vm1 = vcmp.lt.s32.totalorder %v3144_v6, 0  ;;  %v2561_v52 = vadd.s32 %v2559_v27, %v2553_v59  ;;  %vm2562_vm7 = vc.u32 %v2560_v36, %v2556_v50  ;;  %v2576_v13 = vshll.u32 %v2573_v31, 16 }
 0x2a6   : > { %v2761_v19 = vsel %vm3145_vm1, 0, %v3144_v6  ;;  %v2316_v41 = vmul.f32 -0.001358992, %v5492_v20  ;;  %v2746_v57 = vadd.s32 %v5388_v5, %v5382_v53  ;;  %v2325_v12 = vmul.f32 %v2324_v63, %v5492_v20 }
 0x2a7   : > { %v2762_v46 = vsub.s32 32, %v2761_v19  ;;  %v2766_v60 = vsub.s32 4294967266, %v2761_v19  ;;  %v2555_v22 = vshrl.u32 %v2551_v61, 16  ;;  %v2563_v3 = vsel %vm2562_vm7, 1, %v6006_v56 }
 0x2a8   : > { %v2572_v39 = vmul.u32 %v2570_v35, %v2546_v26  ;;  %v2763_v43 = vshll.u32 %v2754_v49, %v2761_v19  ;;  %v2565_v6 = vadd.s32 %v2563_v3, %v2561_v52  ;;  %v2575_v36 = vmul.u32 %v2571_v32, %v2547_v21 }
 0x2a9   : > { %v2764_v4 = vshrl.u32 %v2746_v57, %v2762_v46  ;;  %v2767_v59 = vadd.s32 127, %v2766_v60  ;;  %v2578_v50 = vshll.u32 %v2574_v7, 16  ;;  %v2317_v5 = vadd.f32 0.041655596, %v2316_v41 }
 0x2aa   : > { %vm2580_vm3 = vc.u32 %v2572_v39, %v2576_v13  ;;  %v2582_v8 = vadd.s32 %v2576_v13, %v2572_v39  ;;  %v2566_v1 = vadd.s32 %v2565_v6, %v2555_v22  ;;  %v2534_v61 = vsel %vm2532_vm11, %v5427_v11, 2102212464 }
 0x2ab   : > { %v2765_v27 = vor.u32 %v2764_v4, %v2763_v43  ;;  %v2768_v51 = vshll.u32 %v2767_v59, 23  ;;  %v2581_v53 = vsel %vm2580_vm3, 1, %v6006_v56  ;;  %v2484_v49 = vmul.f32 %v2483_v23, %v5364_v62 }
 0x2ac   : > { %v2583_v63 = vadd.s32 %v2581_v53, %v2575_v36  ;;  %vm2584_vm6 = vc.u32 %v2582_v8, %v2578_v50  ;;  %v2557_v35 = vshrl.u32 %v2552_v24, 16  ;;  %v2326_v21 = vadd.f32 -0.16666654, %v2325_v12  ;;  %v5536_v24 = vpop.f32.mrf.mxu2 }
 0x2ad   : > { %v2769_v26 = vor.u32 4788187, %v2768_v51  ;;  %v2585_v32 = vsel %vm2584_vm6, 1, %v6006_v56  ;;  %v2533_v43 = vsel %vm2529_vm8, %v2513_v9, %v5432_v25  ;;  %v2577_v52 = vshrl.u32 %v2573_v31, 16 }
 0x2ae   : > { %v2587_v19 = vadd.s32 %v2585_v32, %v2583_v63  ;;  %v2772_v41 = vcvt.s32.f32 %v2765_v27  ;;  %v2535_v11 = vsel %vm2531_vm13, %v5425_v37, %v2534_v61  ;;  %v5531_v57 = vadd.s32 %v2566_v1, %v2557_v35  ;;  %v6064_v27 = vld [vmem:[#allocation16_spill] sm:$0xff]  ;;  %v6065_v35 = vld [vmem:[#allocation5_spill] sm:$0xff] }
 0x2af   : > { %v2770_v13 = vand.u32 2147483647, %v2769_v26  ;;  %v1695_v23 = vmul.f32 %v5498_v58, %v6053_v28  ;;  %v2318_v56 = vmul.f32 %v2317_v5, %v5492_v20  ;;  %v2579_v51 = vshrl.u32 %v2574_v7, 16 }
 0x2b0   : > { %v2588_v62 = vadd.s32 %v2587_v19, %v2577_v52  ;;  %v2476_v25 = vadd.f32 1.0, %v2475_v54  ;;  %vm2488_vm11 = vcmp.lt.s32.totalorder %v5507_v48, 2  ;;  %v5539_v9 = vadd.s32 %v2582_v8, %v2578_v50 }
 0x2b1   : > { %v2773_v31 = vmul.f32 %v2772_v41, %v2770_v13  ;;  %vm1709_vm8 = vcmp.eq.s32.totalorder %v5500_v30, 0  ;;  %v6060_v37 = vsub.s32 4, %v5262_v38  ;;  %v2327_v1 = vmul.f32 %v2326_v21, %v5492_v20 }
 0x2b2   : > { %v2536_v58 = vsel %vm2530_vm4, %v2533_v43, %v2535_v11  ;;  %v2589_v7 = vadd.s32 %v2588_v62, %v2579_v51  ;;  %vm2489_vm13 = vcmp.eq.s32.totalorder %v5507_v48, 0  ;;  %v2490_v54 = vxor.u32 2147483648, %v2484_v49 }
 0x2b3   : > { %v2312_v28 = vsel %vm2189_vm15, %v6060_v37, %v5262_v38  ;;  %v2774_v46 = vxor.u32 2147483648, %v2773_v31  ;;  %vm2592_vm5 = vc.u32 %v5531_v57, %v5539_v9  ;;  %vm2485_vm1 = vweird.f32 %v6021_v16 }
 0x2b4   : > { %v2319_v60 = vadd.f32 -0.4999988, %v2318_v56  ;;  %v6061_v12 = vand.u32 2147483647, %v4877_v42  ;;  %vm2654_vm15 = vcmp.lt.s32.totalorder %v4877_v42, 0  ;;  %v2593_v0 = vadd.s32 1, %v2589_v7  ;;  %v5589_v41 = vpop.f32.mrf.mxu2 }
 0x2b5   : > { %v2493_v22 = vxor.u32 2147483648, %v2476_v25  ;;  %v2314_v3 = vsel %vm5408_vm9, 0, %v2312_v28  ;;  %v2775_v39 = vsel %vm2654_vm15, %v2774_v46, %v2773_v31  ;;  %v2590_v4 = vmul.u32 %v5466_v18, %v2536_v58  ;;  %v6066_v46 = vld [vmem:[#allocation15_spill] sm:$0xff] }
 0x2b6   : > { %vm5556_vm7 = vcmp.le.f32.partialorder %v6061_v12, 0.7853982  ;;  %v1696_v59 = vadd.f32 1.0, %v1695_v23  ;;  %v2328_v6 = vadd.f32 1.0, %v2327_v1  ;;  %v2594_v50 = vsel %vm2592_vm5, %v2593_v0, %v2589_v7 }
 0x2b7   : > { %v5569_v36 = vsel %vm5556_vm7, %v4877_v42, %v2775_v39  ;;  %v2491_v8 = vsel %vm2489_vm13, %v2476_v25, %v2490_v54  ;;  %v1710_v53 = vxor.u32 2147483648, %v6064_v27  ;;  %v2595_v5 = vadd.s32 %v2594_v50, %v2590_v4  ;;  %v6067_v50 = vld [vmem:[#allocation20_spill] sm:$0xff] }
 0x2b8   : > { %v5576_v45 = vmul.f32 %v5569_v36, %v5569_v36  ;;  %vm2492_vm9 = vcmp.eq.s32.totalorder %v5507_v48, 2  ;;  %v2320_v18 = vmul.f32 %v2319_v60, %v5492_v20  ;;  %v2331_v61 = vadd.s32 3, %v2314_v3 }
 0x2b9   : > { %v2776_v63 = vsub.s32 4, %v5461_v40  ;;  %v2494_v26 = vsel %vm2492_vm9, %v2493_v22, %v2484_v49  ;;  %vm1705_vm4 = vweird.f32 %v6065_v35  ;;  %v2596_v43 = vadd.s32 536870912, %v2595_v5  ;;  %v5617_v22 = vpop.f32.mrf.mxu1 }
 0x2ba   : > { %v2781_v32 = vmul.f32 -0.001358992, %v5576_v45  ;;  %v2788_v21 = vmul.f32 -0.00019511016, %v5576_v45  ;;  %v2495_v52 = vsel %vm2488_vm11, %v2491_v8, %v2494_v26  ;;  %vm1712_vm3 = vcmp.eq.s32.totalorder %v5500_v30, 2 }
 0x2bb   : > { %v1713_v19 = vxor.u32 2147483648, %v1696_v59  ;;  %v2329_v13 = vmul.f32 %v2328_v6, %v5473_v47  ;;  %v1856_v20 = vadd.f32 -0.16666654, %v5504_v34  ;;  %v1711_v49 = vsel %vm1709_vm8, %v1696_v59, %v1710_v53 }
 0x2bc   : > { %v2789_v11 = vadd.f32 0.008332121, %v2788_v21  ;;  %v5593_v23 = vshrl.u32 %v2596_v43, 30  ;;  %v2321_v56 = vadd.f32 1.0, %v2320_v18  ;;  %v2332_v51 = vand.u32 3, %v2331_v61  ;;  %v5636_v21 = vpop.f32.mrf.mxu0 }
 0x2bd   : > { %v2777_v48 = vsel %vm2654_vm15, %v2776_v63, %v5461_v40  ;;  %v1536_v62 = vmul.f32 -0.001358992, %v5102_v33  ;;  %v5601_v47 = vsel %vm2485_vm1, nan, %v2495_v52  ;;  %v2782_v34 = vadd.f32 0.041655596, %v2781_v32  ;;  %v5638_v52 = vpop.f32.mrf.mxu2 }
 0x2be   : > { %v2790_v25 = vmul.f32 %v2789_v11, %v5576_v45  ;;  %v2598_v31 = vshll.u32 %v5593_v23, 30  ;;  %vm1708_vm6 = vcmp.lt.s32.totalorder %v5500_v30, 2  ;;  %v1714_v37 = vsel %vm1712_vm3, %v1713_v19, %v6064_v27  ;;  %v6070_v19 = vld [vmem:[#allocation13_spill] sm:$0xff]  ;;  %v5649_v11 = vpop.f32.mrf.mxu3 }
 0x2bf   : > { %v2335_v28 = vxor.u32 2147483648, %v2329_v13  ;;  %v1537_v1 = vadd.f32 0.041655596, %v1536_v62  ;;  %v1715_v40 = vsel %vm1708_vm6, %v1711_v49, %v1714_v37  ;;  %v2779_v58 = vsel %vm5556_vm7, 0, %v2777_v48 }
 0x2c0   : > { %v2791_v16 = vadd.f32 -0.16666654, %v2790_v25  ;;  %v5611_v7 = vsub.s32 %v2595_v5, %v2598_v31  ;;  %v1857_v54 = vmul.f32 %v1856_v20, %v5437_v17  ;;  %v2814_v60 = vmul.f32 %v5601_v47, %v6066_v46  ;;  %v6073_v31 = vld [vmem:[#allocation19_spill] sm:$0xff] }
 0x2c1   : > { %v2338_v12 = vxor.u32 2147483648, %v2321_v56  ;;  %v1538_v0 = vmul.f32 %v1537_v1, %v5102_v33  ;;  %vm2334_vm11 = vcmp.eq.s32.totalorder %v2332_v51, 0  ;;  %v2783_v30 = vmul.f32 %v2782_v34, %v5576_v45 }
 0x2c2   : > { %vm2600_vm8 = vcmp.lt.s32.totalorder %v5611_v7, 0  ;;  %v2601_v38 = vsub.s32 0, %v5611_v7  ;;  %v1716_v3 = vsel %vm1705_vm4, nan, %v1715_v40  ;;  %v2336_v39 = vsel %vm2334_vm11, %v2321_v56, %v2335_v28 }
 0x2c3   : > { %vm2337_vm13 = vcmp.eq.s32.totalorder %v2332_v51, 2  ;;  %v2796_v4 = vadd.s32 3, %v2779_v58  ;;  %v2792_v59 = vmul.f32 %v2791_v16, %v5576_v45  ;;  %v1534_v27 = vsel %vm5028_vm2, 0, %v6067_v50 }
 0x2c4   : > { %v2602_v6 = vsel %vm2600_vm8, %v2601_v38, %v5611_v7  ;;  %v1539_v53 = vadd.f32 -0.4999988, %v1538_v0  ;;  %v5629_v5 = vsub.f32 %v2814_v60, %v1716_v3  ;;  %vm2333_vm5 = vcmp.lt.s32.totalorder %v2332_v51, 2  ;;  %v5675_v0 = vpop.f32.mrf.mxu1 }
 0x2c5   : > { %v2339_v18 = vsel %vm2337_vm13, %v2338_v12, %v2329_v13  ;;  %v2603_v61 = vclz %v2602_v6  ;;  %v6069_v63 = vsub.s32 4, %v6046_v29  ;;  %v1858_v35 = vadd.f32 1.0, %v1857_v54  ;;  %v6075_v54 = vld [vmem:[#allocation18_spill] sm:$0xff] }
 0x2c6   : > { %v2340_v32 = vsel %vm2333_vm5, %v2336_v39, %v2339_v18  ;;  %v2784_v43 = vadd.f32 -0.4999988, %v2783_v30  ;;  %v1549_v20 = vmul.f32 %v5325_v2, %v6070_v19  ;;  %v6071_v13 = vsub.s32 4, %v4998_v44  ;;  %v6072_v2 = vld [vmem:[#allocation14_spill] sm:$0xff]  ;;  %v5697_v19 = vpop.f32.mrf.mxu3 }
 0x2c7   : > { %v1997_v26 = vsel %vm1874_vm14, %v6069_v63, %v6046_v29  ;;  %v3141_v29 = vadd.s32 4294967294, %v2603_v61  ;;  %v1551_v56 = vadd.s32 3, %v1534_v27  ;;  %vm2330_vm2 = vweird.f32 %v6054_v10  ;;  %v5690_v61 = vpop.f32.mrf.mxu0  ;;  %v6081_v63 = vld [vmem:[#allocation22_spill] sm:$0xff] }
 0x2c8   : > { %v5647_v49 = vsel %vm1719_vm0, %v6071_v13, %v4998_v44  ;;  %v2793_v51 = vadd.f32 1.0, %v2792_v59  ;;  %v5652_v48 = vand.u32 3, %v2796_v4  ;;  %v1540_v62 = vmul.f32 %v1539_v53, %v5102_v33  ;;  %v6077_v59 = vld [vmem:[#allocation8_spill] sm:$0xff] }
 0x2c9   : > { %v5657_v34 = vmul.f32 %v6072_v2, %v5190_v15  ;;  %v5659_v25 = vsel %vm2330_vm2, nan, %v2340_v32  ;;  %v2834_v44 = vmul.f32 %v5629_v5, %v6066_v46  ;;  %vm3142_vm14 = vcmp.lt.s32.totalorder %v3141_v29, 0 }
 0x2ca   : > { %v5664_v37 = vmul.f32 %v1858_v35, %v6073_v31  ;;  %v2785_v10 = vmul.f32 %v2784_v43, %v5576_v45  ;;  %v2591_v28 = vadd.s32 %v5539_v9, %v5531_v57  ;;  %v2606_v1 = vsel %vm3142_vm14, 0, %v3141_v29  ;;  %v6076_v57 = vld [vmem:[#allocation11_spill] sm:$0xff]  ;;  %v5693_v35 = vpop.f32.mrf.mxu2 }
 0x2cb   : > { %v2607_v33 = vsub.s32 32, %v2606_v1  ;;  %v2611_v40 = vsub.s32 4294967266, %v2606_v1  ;;  %v1552_v58 = vand.u32 3, %v1551_v56  ;;  %v1999_v16 = vsel %vm5165_vm10, 0, %v1997_v26 }
 0x2cc   : > { %v2813_v60 = vmul.f32 %v5659_v25, %v6075_v54  ;;  %v2794_v12 = vmul.f32 %v2793_v51, %v5569_v36  ;;  %vm2799_vm0 = vcmp.eq.s32.totalorder %v5652_v48, 0  ;;  %v1541_v45 = vadd.f32 1.0, %v1540_v62 }
 0x2cd   : > { %v5678_v30 = vsub.f32 %v2834_v44, %v5601_v47  ;;  %vm2499_vm1 = vcmp.lt.s32.totalorder %v6076_v57, 0  ;;  %v2608_v9 = vshll.u32 %v5611_v7, %v2606_v1  ;;  %v2609_v38 = vshrl.u32 %v2591_v28, %v2607_v33 }
 0x2ce   : > { %v2612_v3 = vadd.s32 127, %v2611_v40  ;;  %v2786_v39 = vadd.f32 1.0, %v2785_v10  ;;  %v2621_v4 = vsub.s32 4, %v5593_v23  ;;  %vm1550_vm10 = vweird.f32 %v6077_v59 }
 0x2cf   : > { %v2016_v36 = vadd.s32 3, %v1999_v16  ;;  %v2610_v6 = vor.u32 %v2609_v38, %v2608_v9  ;;  %vm1553_vm7 = vcmp.lt.s32.totalorder %v1552_v58, 2  ;;  %vm1554_vm15 = vcmp.eq.s32.totalorder %v1552_v58, 0  ;;  %v5716_v9 = vpop.f32.mrf.mxu1 }
 0x2d0   : > { %v2613_v50 = vshll.u32 %v2612_v3, 23  ;;  %v2800_v8 = vxor.u32 2147483648, %v2794_v12  ;;  %v6078_v27 = vand.u32 2147483647, %v6076_v57  ;;  %v1555_v7 = vxor.u32 2147483648, %v1549_v20 }
 0x2d1   : > { %v1558_v18 = vxor.u32 2147483648, %v1541_v45  ;;  %v2001_v26 = vmul.f32 -0.001358992, %v6081_v63  ;;  %vm1557_vm4 = vcmp.eq.s32.totalorder %v1552_v58, 2  ;;  %v2854_v43 = vmul.f32 %v5678_v30, %v6066_v46 }
 0x2d2   : > { %vm5686_vm9 = vcmp.le.f32.partialorder %v6078_v27, 0.7853982  ;;  %v2614_v32 = vor.u32 4788187, %v2613_v50  ;;  %v1846_v13 = vmul.f32 -0.001358992, %v5437_v17  ;;  %v1556_v56 = vsel %vm1554_vm15, %v1541_v45, %v1555_v7  ;;  %v5725_v50 = vpop.f32.mrf.mxu0  ;;  %v5739_v7 = vpop.f32.mrf.mxu3 }
 0x2d3   : > { %v2803_v29 = vxor.u32 2147483648, %v2786_v39  ;;  %v1559_v51 = vsel %vm1557_vm4, %v1558_v18, %v1549_v20  ;;  %v2002_v62 = vadd.f32 0.041655596, %v2001_v26  ;;  %v2617_v44 = vcvt.s32.f32 %v2610_v6  ;;  %v6082_v18 = vld [vmem:[#allocation6_spill] sm:$0xff] }
 0x2d4   : > { %v2615_v2 = vand.u32 2147483647, %v2614_v32  ;;  %v1560_v31 = vsel %vm1553_vm7, %v1556_v56, %v1559_v51  ;;  %v5702_v10 = vsub.f32 %v2854_v43, %v5629_v5  ;;  %v2801_v28 = vsel %vm2799_vm0, %v2786_v39, %v2800_v8  ;;  %v6083_v51 = vld [vmem:[#allocation12_spill] sm:$0xff] }
 0x2d5   : > { %v1561_v1 = vsel %vm1550_vm10, nan, %v1560_v31  ;;  %v2003_v33 = vmul.f32 %v2002_v62, %v6081_v63  ;;  %v1847_v40 = vadd.f32 0.041655596, %v1846_v13  ;;  %vm2798_vm3 = vcmp.lt.s32.totalorder %v5652_v48, 2 }
 0x2d6   : > { %vm2802_vm6 = vcmp.eq.s32.totalorder %v5652_v48, 2  ;;  %v2618_v20 = vmul.f32 %v2617_v44, %v2615_v2  ;;  %v5711_v15 = vsub.f32 %v2813_v60, %v1561_v1  ;;  %v2622_v16 = vsel %vm2499_vm1, %v2621_v4, %v5593_v23  ;;  %v5727_v23 = vpop.f32.mrf.mxu2 }
 0x2d7   : > { %v2804_v58 = vsel %vm2802_vm6, %v2803_v29, %v2794_v12  ;;  %v2004_v45 = vadd.f32 -0.4999988, %v2003_v33  ;;  %v2874_v38 = vmul.f32 %v5702_v10, %v6066_v46  ;;  %v2017_v59 = vand.u32 3, %v2016_v36  ;;  %v5762_v1 = vpop.f32.mrf.mxu1 }
 0x2d8   : > { %v2805_v3 = vsel %vm2798_vm3, %v2801_v28, %v2804_v58  ;;  %v2619_v39 = vxor.u32 2147483648, %v2618_v20  ;;  %v2020_v6 = vxor.u32 2147483648, %v5657_v34  ;;  %v1848_v60 = vmul.f32 %v1847_v40, %v5437_v17 }
 0x2d9   : > { %v2005_v48 = vmul.f32 %v2004_v45, %v6081_v63  ;;  %v2833_v12 = vmul.f32 %v5711_v15, %v6075_v54  ;;  %v5730_v4 = vsub.f32 %v2874_v38, %v5678_v30  ;;  %v2824_v8 = vmul.f32 %v5629_v5, %v5589_v41 }
 0x2da   : > { %vm2795_vm11 = vweird.f32 %v4877_v42  ;;  %v2620_v36 = vsel %vm2499_vm1, %v2619_v39, %v2618_v20  ;;  %v2624_v27 = vsel %vm5686_vm9, 0, %v2622_v16  ;;  %vm1082_vm8 = vweird.f32 %v6082_v18 }
 0x2db   : > { %v5742_v63 = vsel %vm2795_vm11, nan, %v2805_v3  ;;  %v5747_v26 = vsel %vm5686_vm9, %v6076_v57, %v2620_v36  ;;  %v2006_v41 = vadd.f32 1.0, %v2005_v48  ;;  %v5750_v42 = vsub.f32 %v2833_v12, %v5659_v25 }
 0x2dc   : > { %v2625_v5 = vmul.f32 %v5747_v26, %v5747_v26  ;;  %vm2018_vm13 = vcmp.lt.s32.totalorder %v2017_v59, 2  ;;  %vm2019_vm5 = vcmp.eq.s32.totalorder %v2017_v59, 0  ;;  %v2894_v32 = vmul.f32 %v5730_v4, %v6066_v46 }
 0x2dd   : > { %v2641_v43 = vadd.s32 3, %v2624_v27  ;;  %v2021_v13 = vsel %vm2019_vm5, %v2006_v41, %v2020_v6  ;;  %v2023_v29 = vxor.u32 2147483648, %v2006_v41  ;;  %v1849_v56 = vadd.f32 -0.4999988, %v1848_v60  ;;  %v6085_v41 = vld [vmem:[#allocation24_spill] sm:$0xff] }
 0x2de   : > { %v2816_v53 = vmul.f32 %v5742_v63, %v6083_v51  ;;  %v2626_v62 = vmul.f32 -0.001358992, %v2625_v5  ;;  %v2633_v2 = vmul.f32 -0.00019511016, %v2625_v5  ;;  %vm2022_vm2 = vcmp.eq.s32.totalorder %v2017_v59, 2  ;;  %v346_v3 = vpop.f32.mrf.mxu2 }
 0x2df   : > { %v2024_v44 = vsel %vm2022_vm2, %v2023_v29, %v5657_v34  ;;  %v1844_v28 = vsel %vm5309_vm12, 0, %v5647_v49  ;;  %v2853_v33 = vmul.f32 %v5750_v42, %v6075_v54  ;;  %v5767_v40 = vsub.f32 %v2894_v32, %v5702_v10  ;;  %v5775_v49 = vpop.f32.mrf.mxu0 }
 0x2e0   : > { %v2627_v20 = vadd.f32 0.041655596, %v2626_v62  ;;  %v2634_v58 = vadd.f32 0.008332121, %v2633_v2  ;;  %vm2015_vm14 = vweird.f32 %v4507_v14  ;;  %v2025_v16 = vsel %vm2018_vm13, %v2021_v13, %v2024_v44  ;;  %v5781_v14 = vpop.f32.mrf.mxu3 }
 0x2e1   : > { %v2026_v45 = vsel %vm2015_vm14, nan, %v2025_v16  ;;  %v1850_v34 = vmul.f32 %v1849_v56, %v5437_v17  ;;  %v5773_v38 = vsub.f32 %v2853_v33, %v5711_v15  ;;  %v2914_v39 = vmul.f32 %v5767_v40, %v6066_v46 }
 0x2e2   : > { %v2628_v6 = vmul.f32 %v2627_v20, %v2625_v5  ;;  %v2635_v48 = vmul.f32 %v2634_v58, %v2625_v5  ;;  %v5779_v60 = vsub.f32 %v2816_v53, %v2026_v45  ;;  %v1861_v12 = vadd.s32 3, %v1844_v28 }
 0x2e3   : > { %v2809_v59 = vmul.f32 %v5601_v47, %v5536_v24  ;;  %v2844_v17 = vmul.f32 %v5678_v30, %v5638_v52  ;;  %v2642_v36 = vand.u32 3, %v2641_v43  ;;  %v2873_v27 = vmul.f32 %v5773_v38, %v6075_v54 }
 0x2e4   : > { %v1092_v32 = vsel %vm1082_vm8, nan, %v6085_v41  ;;  %v2629_v13 = vadd.f32 -0.4999988, %v2628_v6  ;;  %v2636_v29 = vadd.f32 -0.16666654, %v2635_v48  ;;  %v2836_v56 = vmul.f32 %v5779_v60, %v6083_v51 }
 0x2e5   : > { %v2829_v53 = vadd.f32 %v2824_v8, %v2809_v59  ;;  %v1851_v62 = vadd.f32 1.0, %v1850_v34  ;;  %v5795_v24 = vsub.f32 %v2873_v27, %v5750_v42  ;;  %v2919_v47 = vsub.f32 %v2914_v39, %v5730_v4  ;;  %v5804_v8 = vpop.f32.mrf.mxu1 }
 0x2e6   : > { %v2630_v52 = vmul.f32 %v2629_v13, %v2625_v5  ;;  %v2637_v30 = vmul.f32 %v2636_v29, %v2625_v5  ;;  %v1862_v43 = vand.u32 3, %v1861_v12  ;;  %v5799_v2 = vsub.f32 %v2836_v56, %v5742_v63 }
 0x2e7   : > { %v2849_v18 = vadd.f32 %v2844_v17, %v2829_v53  ;;  %vm2643_vm12 = vcmp.lt.s32.totalorder %v2642_v36, 2  ;;  %v2864_v44 = vmul.f32 %v5702_v10, %v5693_v35  ;;  %v1865_v31 = vxor.u32 2147483648, %v5664_v37  ;;  %v5812_v45 = vpop.f32.mrf.mxu0  ;;  %v349_v35 = vpop.f32.mrf.mxu2 }
 0x2e8   : > { %v2631_v28 = vadd.f32 1.0, %v2630_v52  ;;  %v2638_v33 = vadd.f32 1.0, %v2637_v30  ;;  %v2856_v20 = vmul.f32 %v5799_v2, %v6083_v51  ;;  %v2893_v5 = vmul.f32 %v5795_v24, %v6075_v54 }
 0x2e9   : > { %vm2644_vm0 = vcmp.eq.s32.totalorder %v2642_v36, 0  ;;  %v1868_v58 = vxor.u32 2147483648, %v1851_v62  ;;  %v2884_v16 = vmul.f32 %v5730_v4, %v5727_v23  ;;  %v2934_v10 = vmul.f32 %v2919_v47, %v6066_v46  ;;  %v5819_v4 = vpop.f32.mrf.mxu3 }
 0x2ea   : > { %v2639_v34 = vmul.f32 %v2638_v33, %v5747_v26  ;;  %v2648_v39 = vxor.u32 2147483648, %v2631_v28  ;;  %vm1864_vm1 = vcmp.eq.s32.totalorder %v1862_v43, 0  ;;  %v2861_v6 = vsub.f32 %v2856_v20, %v5779_v60 }
 0x2eb   : > { %vm2647_vm10 = vcmp.eq.s32.totalorder %v2642_v36, 2  ;;  %v2869_v48 = vadd.f32 %v2864_v44, %v2849_v18  ;;  %v1866_v12 = vsel %vm1864_vm1, %v1851_v62, %v1865_v31  ;;  %vm1867_vm7 = vcmp.eq.s32.totalorder %v1862_v43, 2 }
 0x2ec   : > { %v2645_v59 = vxor.u32 2147483648, %v2639_v34  ;;  %v2904_v17 = vmul.f32 %v5767_v40, %v346_v3  ;;  %v2876_v23 = vmul.f32 %v2861_v6, %v6083_v51  ;;  %v5822_v27 = vsub.f32 %v2893_v5, %v5773_v38 }
 0x2ed   : > { %vm1863_vm15 = vcmp.lt.s32.totalorder %v1862_v43, 2  ;;  %v1869_v46 = vsel %vm1867_vm7, %v1868_v58, %v5664_v37  ;;  %v2889_v26 = vadd.f32 %v2884_v16, %v2869_v48  ;;  %v2939_v41 = vsub.f32 %v2934_v10, %v5767_v40  ;;  %v299_v30 = vpop.f32.mrf.mxu1 }
 0x2ee   : > { %v2646_v13 = vsel %vm2644_vm0, %v2631_v28, %v2645_v59  ;;  %v2649_v29 = vsel %vm2647_vm10, %v2648_v39, %v2639_v34  ;;  %v2881_v56 = vsub.f32 %v2876_v23, %v5799_v2  ;;  %v2924_v53 = vmul.f32 %v2919_v47, %v349_v35 }
 0x2ef   : > { %v5828_v3 = vmul.f32 2.0, %v1092_v32  ;;  %vm2640_vm9 = vweird.f32 %v6076_v57  ;;  %v2650_v62 = vsel %vm2643_vm12, %v2646_v13, %v2649_v29  ;;  %v1870_v52 = vsel %vm1863_vm15, %v1866_v12, %v1869_v46  ;;  %v440_v32 = vpop.f32.mrf.mxu0  ;;  %v352_v57 = vpop.f32.mrf.mxu2 }
 0x2f0   : > { %v2651_v43 = vsel %vm2640_vm9, nan, %v2650_v62  ;;  %v2909_v18 = vadd.f32 %v2904_v17, %v2889_v26  ;;  %v2896_v37 = vmul.f32 %v2881_v56, %v6083_v51  ;;  %v2913_v40 = vmul.f32 %v5822_v27, %v6075_v54 }
 0x2f1   : > { %v2815_v44 = vmul.f32 %v2651_v43, %v5828_v3  ;;  %v2823_v47 = vmul.f32 %v5711_v15, %v5675_v0  ;;  %vm1860_vm4 = vweird.f32 %v4708_v55  ;;  %v2944_v33 = vmul.f32 %v2939_v41, %v352_v57 }
 0x2f2   : > { %v1871_v36 = vsel %vm1860_vm4, nan, %v1870_v52  ;;  %v2929_v31 = vadd.f32 %v2924_v53, %v2909_v18  ;;  %v2901_v28 = vsub.f32 %v2896_v37, %v2861_v6  ;;  %v2808_v20 = vmul.f32 %v5659_v25, %v5617_v22 }
 0x2f3   : > { %v2820_v5 = vsub.f32 %v2815_v44, %v1871_v36  ;;  %v2843_v58 = vmul.f32 %v5750_v42, %v5716_v9  ;;  %v2826_v16 = vmul.f32 %v5779_v60, %v5690_v61  ;;  %v2918_v55 = vsub.f32 %v2913_v40, %v5795_v24  ;;  %v393_v9 = vpop.f32.mrf.mxu3 }
 0x2f4   : > { %v2949_v0 = vadd.f32 %v2944_v33, %v2929_v31  ;;  %v2916_v15 = vmul.f32 %v2901_v28, %v6083_v51  ;;  %v2828_v35 = vadd.f32 %v2823_v47, %v2808_v20  ;;  %v2863_v34 = vmul.f32 %v5773_v38, %v5762_v1 }
 0x2f5   : > { %v2835_v10 = vmul.f32 %v2820_v5, %v5828_v3  ;;  %v2811_v22 = vmul.f32 %v5742_v63, %v5636_v21  ;;  %v2846_v25 = vmul.f32 %v5799_v2, %v5725_v50  ;;  %v2883_v39 = vmul.f32 %v5795_v24, %v5804_v8  ;;  %v302_v48 = vpop.f32.mrf.mxu1 }
 0x2f6   : > { %2954 = vst [vmem:[%s4044_s4 + $0x10] sm:$0xff] %v2949_v0  ;;  %v2921_v61 = vsub.f32 %v2916_v15, %v2881_v56  ;;  %v2848_v42 = vadd.f32 %v2843_v58, %v2828_v35  ;;  %v2866_v59 = vmul.f32 %v2861_v6, %v5775_v49  ;;  %v2933_v1 = vmul.f32 %v2918_v55, %v6075_v54 }
 0x2f7   : > { %v2840_v60 = vsub.f32 %v2835_v10, %v2651_v43  ;;  %v2831_v12 = vadd.f32 %v2826_v16, %v2811_v22  ;;  %v443_v63 = vpop.f32.mrf.mxu0  ;;  %v2886_v50 = vmul.f32 %v2881_v56, %v5812_v45  ;;  %v2903_v2 = vmul.f32 %v5822_v27, %v299_v30 }
 0x2f8   : > { %v2868_v38 = vadd.f32 %v2863_v34, %v2848_v42  ;;  %v2936_v23 = vmul.f32 %v2921_v61, %v6083_v51  ;;  %v2906_v8 = vmul.f32 %v2901_v28, %v440_v32  ;;  %v2923_v41 = vmul.f32 %v2918_v55, %v302_v48 }
 0x2f9   : > { %v2855_v21 = vmul.f32 %v2840_v60, %v5828_v3  ;;  %v2851_v17 = vadd.f32 %v2846_v25, %v2831_v12  ;;  %v2938_v49 = vsub.f32 %v2933_v1, %v5822_v27  ;;  %v2926_v29 = vmul.f32 %v2921_v61, %v443_v63 }
 0x2fa   : > { %v2888_v26 = vadd.f32 %v2883_v39, %v2868_v38  ;;  %v2941_v53 = vsub.f32 %v2936_v23, %v2901_v28  ;;  %v2825_v62 = vmul.f32 %v2820_v5, %v5697_v19  ;;  %v2810_v37 = vmul.f32 %v2651_v43, %v5649_v11 }
 0x2fb   : > { %v2860_v46 = vsub.f32 %v2855_v21, %v2820_v5  ;;  %v2871_v24 = vadd.f32 %v2866_v59, %v2851_v17  ;;  %v396_v30 = vpop.f32.mrf.mxu3  ;;  %v2845_v27 = vmul.f32 %v2840_v60, %v5739_v7 }
 0x2fc   : > { %v2908_v13 = vadd.f32 %v2903_v2, %v2888_v26  ;;  %v2830_v19 = vadd.f32 %v2825_v62, %v2810_v37 }
 0x2fd   : > { %v2875_v54 = vmul.f32 %v2860_v46, %v5828_v3  ;;  %v2891_v6 = vadd.f32 %v2886_v50, %v2871_v24  ;;  %v305_v56 = vpop.f32.mrf.mxu1  ;;  %v2865_v36 = vmul.f32 %v2860_v46, %v5781_v14 }
 0x2fe   : > { %v2928_v51 = vadd.f32 %v2923_v41, %v2908_v13  ;;  %v2943_v18 = vmul.f32 %v2938_v49, %v305_v56  ;;  %v2850_v33 = vadd.f32 %v2845_v27, %v2830_v19 }
 0x2ff   : > { %v2880_v45 = vsub.f32 %v2875_v54, %v2840_v60  ;;  %v2911_v52 = vadd.f32 %v2906_v8, %v2891_v6  ;;  %v446_v44 = vpop.f32.mrf.mxu0 }
 0x300   : > { %v2948_v32 = vadd.f32 %v2943_v18, %v2928_v51  ;;  %v2946_v57 = vmul.f32 %v2941_v53, %v446_v44  ;;  %v2870_v7 = vadd.f32 %v2865_v36, %v2850_v33 }
 0x301   : > { %v2895_v40 = vmul.f32 %v2880_v45, %v5828_v3  ;;  %v2931_v47 = vadd.f32 %v2926_v29, %v2911_v52  ;;  %v2885_v20 = vmul.f32 %v2880_v45, %v5819_v4 }
 0x302   : > { %2953 = vst [vmem:[%s4044_s4 + $0x8] sm:$0xff] %v2948_v32 }
 0x303   : > { %v2900_v31 = vsub.f32 %v2895_v40, %v2860_v46  ;;  %v2951_v28 = vadd.f32 %v2946_v57, %v2931_v47  ;;  %v2890_v58 = vadd.f32 %v2885_v20, %v2870_v7  ;;  %v399_v0 = vpop.f32.mrf.mxu3 }
 0x305   : > { %v2915_v11 = vmul.f32 %v2900_v31, %v5828_v3  ;;  %2956 = vst [vmem:[%s4044_s4 + $0x20] sm:$0xff] %v2951_v28  ;;  %v2905_v43 = vmul.f32 %v2900_v31, %v393_v9 }
 0x307   : > { %v2920_v5 = vsub.f32 %v2915_v11, %v2880_v45  ;;  %v2910_v4 = vadd.f32 %v2905_v43, %v2890_v58 }
 0x309   : > { %v2925_v16 = vmul.f32 %v2920_v5, %v396_v30  ;;  %v2935_v14 = vmul.f32 %v2920_v5, %v5828_v3 }
 0x30b   : > { %v2940_v55 = vsub.f32 %v2935_v14, %v2900_v31  ;;  %v2930_v15 = vadd.f32 %v2925_v16, %v2910_v4 }
 0x30d   : > { %v2945_v35 = vmul.f32 %v2940_v55, %v399_v0 }
 0x30f   : > { %v2950_v10 = vadd.f32 %v2945_v35, %v2930_v15 }
 0x311   : > { %2955 = vst [vmem:[%s4044_s4 + $0x18] sm:$0xff] %v2950_v10 }
 0x312   : > { %3231 = shalt.err (!%p3228_p3)
}
 0x313   : > { %3158 = dma.vmem_to_hbm [thread:$0]  (%p3328_p5), %s2972_s14, 640, %s2974_s13, %s2958_s16  }
 0x314 PF: > { %p3164_p4 = scmp.ge.s32.totalorder %s3266_s12, 2  ;;  %s2985_s27 = sand.u32 1, %s3254_s9  }
 0x315   : > { %s2986_s28 = scalar_lea.sflag [#allocation3], %s2985_s27 }
 0x316   : > { %p3161_p7 = pnand %p3164_p4, %p3332_p6 }
 0x318   : > { %p3162_p8 = pneg %p3161_p7 }
 0x31a   : > { %3249 = dma.done.wait (%p3162_p8), %s2986_s28, 640  }
 0x31b   : > { %3251 = vsyncadd (%p3162_p8), %s2986_s28, 4294966656  ;;  %p12_p9 = scmp.ge.s32.totalorder %s3315_s15, 4   ;;  %s6086_s9 = smov %s3258_s10 }
 0x31c   : > { %s6087_s10 = smov %s3262_s11  ;;  %s6088_s11 = smov %s3326_s18 }
 0x31d   : > { %s6089_s12 = smov %s3315_s15  ;;  %14 = sbr.rel (!%p12_p9) target bundleno = 3 (0x3), region = 66 }
 0x322   :  { %2992 = vsyncpa [#allocation3], 1 }
 0x323   :  { %2994 = vsyncpa [#allocation3 + $0x1], 1 }

</bundles_post_ra>
